<compile_context>
chip_gen: v6e
topology: v6e:2x2x1
jax: 0.10.0
libtpu: 0.0.40
codegen_flags: <defaults>
</compile_context>

<pallas_src>
import functools
import jax
import jax.numpy as jnp
from jax.experimental import pallas as pl
from jax.experimental.pallas import tpu as pltpu

# ---- model hyper-parameters (small, consistent with the module) ----
D_MODEL   = 64                      # args.d_model
N_HEAD    = max(1, D_MODEL // 64)   # nhead = d_model // 64  -> 1
D_FF      = 4 * D_MODEL             # dim_feedforward = d_model * 4
D_OUTPUT  = 32                      # args.d_output
D_OUT_PAD = 128                     # lane-dense output slab, sliced to D_OUTPUT in wrapper
N_LAYERS  = 2                       # args.n_TE_layers
LN_EPS    = 1e-5
NEG_INF   = -1e30
BF        = jnp.bfloat16
ROW_TILE_TARGET = 256               # target MXU M-rows per grid step (>=128 for v5e too)


def _const_map(ndim, i):
    return (0,) * ndim


def _round_up(x, m):
    return (x + m - 1) // m * m


def _choose_b_tile(B, N):
    """Sequences per grid step: enough rows (B_tile*N) to feed the MXU M-axis,
    multiple of 8 for sublane-aligned output stores, no larger than the padded batch."""
    bt = max(8, ROW_TILE_TARGET // max(N, 1))
    bt = min(bt, _round_up(max(B, 1), 8))
    return max(8, _round_up(bt, 8))


def _layernorm(x, g, b):
    mu = jnp.mean(x, axis=-1, keepdims=True)
    var = jnp.mean((x - mu) ** 2, axis=-1, keepdims=True)
    return (x - mu) * jax.lax.rsqrt(var + LN_EPS) * g + b


# ---------------------------------------------------------------------------
# One grid step = one batch tile of sequences: embedding + all encoder layers
# + masked attention pooling + bottleneck.
# ---------------------------------------------------------------------------
def _encoder_tile_kernel(tok_ref, emb_ref,
                         wq_ref, wk_ref, wv_ref, bq_ref, bk_ref, bv_ref,
                         wo_ref, bo_ref,
                         ln1_g_ref, ln1_b_ref, ln2_g_ref, ln2_b_ref,
                         w1_ref, b1_ref, w2_ref, b2_ref,
                         pool_w_ref, pool_b_ref, wb_ref, bb_ref,
                         o_ref, *, pad_idx, n_layers, n_head):
    f32 = jnp.float32
    tok = tok_ref[...]                                   # (Bt, N) int32
    Bt, N = tok.shape
    BN = Bt * N
    vocab, D = emb_ref.shape
    hd = D // n_head
    scale = 1.0 / float(hd) ** 0.5

    # additive key-padding mask (per sequence)
    key_pad = jnp.where(tok == pad_idx, NEG_INF, 0.0).astype(f32)    # (Bt, N)
    attn_bias = key_pad[:, None, :]                                  # (Bt, 1, N)

    # ---- embedding lookup: vocab is tiny, select-accumulate on the VPU ----
    # (PAD row of the embedding table is zero, so pads embed to zero automatically.)
    # TODO(synk): for realistic vocab sizes (hundreds+) replace with a DMA row-gather
    # (pl.Element index_map + scalar prefetch) or a bf16 one-hot MXU matmul.
    emb = emb_ref[...].astype(f32)                                   # (vocab, D)
    x3 = jnp.zeros((Bt, N, D), f32)
    for v_id in range(vocab):
        sel = (tok == v_id).astype(f32)[:, :, None]                  # (Bt, N, 1)
        x3 = x3 + sel * emb[v_id:v_id + 1][None, :, :]               # (1, 1, D)
    x = x3.reshape(BN, D)                                            # (BN, D) f32

    # ---- transformer encoder layers (post-LN, ReLU FFN), unrolled ----
    # NOTE: n_layers=2; switch to lax.fori_loop over the stacked weight refs if it grows.
    for l in range(n_layers):
        xb = x.astype(BF)
        # lane-aligned Q/K/V GEMMs on the flattened (BN, D) activation (bf16 ops, f32 acc)
        q = jnp.dot(xb, wq_ref[l], preferred_element_type=f32) + bq_ref[l]
        k = jnp.dot(xb, wk_ref[l], preferred_element_type=f32) + bk_ref[l]
        v = jnp.dot(xb, wv_ref[l], preferred_element_type=f32) + bv_ref[l]
        q3 = q.reshape(Bt, N, D)
        k3 = k.reshape(Bt, N, D)
        v3 = v.reshape(Bt, N, D)

        # per-sequence attention (scores (Bt, N, N), no cross-sequence redundancy)
        heads = []
        for h in range(n_head):
            qh = q3[..., h * hd:(h + 1) * hd]
            kh = k3[..., h * hd:(h + 1) * hd]
            vh = v3[..., h * hd:(h + 1) * hd]
            s = jnp.einsum('bqd,bkd->bqk', qh, kh,
                           preferred_element_type=f32) * scale + attn_bias
            s = s - jnp.max(s, axis=-1, keepdims=True)
            p = jnp.exp(s)
            p = p * pl.reciprocal(jnp.sum(p, axis=-1, keepdims=True), approx=True)
            heads.append(jnp.einsum('bqk,bkd->bqd', p, vh, preferred_element_type=f32))
        attn3 = heads[0] if n_head == 1 else jnp.concatenate(heads, axis=-1)
        attn = attn3.reshape(BN, D)
        attn = jnp.dot(attn.astype(BF), wo_ref[l],
                       preferred_element_type=f32) + bo_ref[l]

        # residual + LayerNorm 1 (f32 elementwise)
        h1 = _layernorm(x + attn, ln1_g_ref[l], ln1_b_ref[l])

        # feed-forward (ReLU)
        f = jnp.dot(h1.astype(BF), w1_ref[l], preferred_element_type=f32) + b1_ref[l]
        f = jnp.maximum(f, 0.0)
        f = jnp.dot(f.astype(BF), w2_ref[l], preferred_element_type=f32) + b2_ref[l]

        # residual + LayerNorm 2
        x = _layernorm(h1 + f, ln2_g_ref[l], ln2_b_ref[l])

    # ---- masked attention pooling: learned-scalar score, per-sequence softmax ----
    # TODO(synk): AttentionPooling source is not in the provided module; standard
    # Linear(d_model,1) -> masked softmax over sequence -> weighted sum is implemented.
    x3 = x.reshape(Bt, N, D)
    pool_w = pool_w_ref[...][:, None, :]                             # (1, 1, D)
    scores = jnp.sum(x3 * pool_w, axis=-1) + pool_b_ref[...]         # (Bt, N)  VPU+XLU
    scores = scores + key_pad
    m = jnp.max(scores, axis=-1, keepdims=True)                      # per-sequence max
    e = jnp.exp(scores - m)                                          # pads underflow to 0
    z = jnp.sum(e, axis=-1, keepdims=True)                           # >= 1 always (finite NEG_INF)
    p = e * pl.reciprocal(z, approx=True)                            # (Bt, N)
    pooled = jnp.sum(p[:, :, None] * x3, axis=1)                     # (Bt, D)

    # ---- bottleneck Linear into a lane-dense (Bt, 128) slab (f32 GEMM, zero-padded W) ----
    o_ref[...] = (jnp.dot(pooled, wb_ref[...], preferred_element_type=f32)
                  + bb_ref[...])


# ---------------------------------------------------------------------------
# Parameter packing: stack per-layer weights, cast GEMM weights to bf16,
# pad the bottleneck to a 128-wide lane-dense slab. Done once, outside forward.
# ---------------------------------------------------------------------------
def pack_params(params):
    layers = params['layers']
    f32 = jnp.float32

    def stack(key, dtype):
        return jnp.stack([lp[key] for lp in layers], axis=0).astype(dtype)

    head = params['head']
    wb_pad = jnp.zeros((D_MODEL, D_OUT_PAD), f32).at[:, :D_OUTPUT].set(head['wb'])
    bb_pad = jnp.zeros((1, D_OUT_PAD), f32).at[:, :D_OUTPUT].set(head['bb'])
    return dict(
        emb=params['embedding'].astype(f32),
        wq=stack('wq', BF), wk=stack('wk', BF), wv=stack('wv', BF),
        bq=stack('bq', f32), bk=stack('bk', f32), bv=stack('bv', f32),
        wo=stack('wo', BF), bo=stack('bo', f32),
        ln1_g=stack('ln1_g', f32), ln1_b=stack('ln1_b', f32),
        ln2_g=stack('ln2_g', f32), ln2_b=stack('ln2_b', f32),
        w1=stack('w1', BF), b1=stack('b1', f32),
        w2=stack('w2', BF), b2=stack('b2', f32),
        pool_w=head['pool_w'].T.astype(f32),       # (1, D) row for VPU broadcast
        pool_b=head['pool_b'].astype(f32),         # (1, 1)
        wb=wb_pad, bb=bb_pad,
        n_layers=len(layers),
    )


# ---------------------------------------------------------------------------
# Full FormulaEncoder forward: grid over batch tiles, weights VMEM-resident.
# ---------------------------------------------------------------------------
def formula_encoder_forward(tokens, packed, pad_idx):
    B, N = tokens.shape
    b_tile = _choose_b_tile(B, N)
    B_pad = _round_up(B, b_tile)
    tok = jnp.full((B_pad, N), pad_idx, jnp.int32).at[:B, :].set(tokens.astype(jnp.int32))

    args = [tok, packed['emb'],
            packed['wq'], packed['wk'], packed['wv'],
            packed['bq'], packed['bk'], packed['bv'],
            packed['wo'], packed['bo'],
            packed['ln1_g'], packed['ln1_b'], packed['ln2_g'], packed['ln2_b'],
            packed['w1'], packed['b1'], packed['w2'], packed['b2'],
            packed['pool_w'], packed['pool_b'], packed['wb'], packed['bb']]

    kernel = functools.partial(_encoder_tile_kernel, pad_idx=pad_idx,
                               n_layers=packed['n_layers'], n_head=N_HEAD)

    # tokens / output are tiled over the batch grid; weights use constant index maps
    in_specs = [pl.BlockSpec((b_tile, N), lambda i: (i, 0))]
    in_specs += [pl.BlockSpec(a.shape, functools.partial(_const_map, a.ndim))
                 for a in args[1:]]

    out = pl.pallas_call(
        kernel,
        out_shape=jax.ShapeDtypeStruct((B_pad, D_OUT_PAD), jnp.float32),
        grid=(B_pad // b_tile,),
        in_specs=in_specs,
        out_specs=pl.BlockSpec((b_tile, D_OUT_PAD), lambda i: (i, 0)),
        compiler_params=pltpu.CompilerParams(
            dimension_semantics=("parallel",)),   # batch tiles shard across TCs on v7x
    )(*args)
    return out[:B, :D_OUTPUT]


# ---------------------------------------------------------------------------
# Pure-JAX f32 reference (same math) for a correctness check.
# ---------------------------------------------------------------------------
def _layernorm_ref(x, g, b):
    mu = jnp.mean(x, axis=-1, keepdims=True)
    var = jnp.mean((x - mu) ** 2, axis=-1, keepdims=True)
    return (x - mu) * jax.lax.rsqrt(var + LN_EPS) * g + b


def _layer_ref(x, mask_add, lp):
    B, N, D = x.shape
    hd = D // N_HEAD
    scale = 1.0 / (hd ** 0.5)
    q = x @ lp['wq'] + lp['bq'][0]
    k = x @ lp['wk'] + lp['bk'][0]
    v = x @ lp['wv'] + lp['bv'][0]
    outs = []
    for h in range(N_HEAD):
        qh, kh, vh = (t[..., h * hd:(h + 1) * hd] for t in (q, k, v))
        s = jnp.einsum('bqd,bkd->bqk', qh, kh) * scale + mask_add
        p = jax.nn.softmax(s, axis=-1)
        outs.append(jnp.einsum('bqk,bkd->bqd', p, vh))
    a = jnp.concatenate(outs, -1) @ lp['wo'] + lp['bo'][0]
    h1 = _layernorm_ref(x + a, lp['ln1_g'][0], lp['ln1_b'][0])
    f = jnp.maximum(h1 @ lp['w1'] + lp['b1'][0], 0.0) @ lp['w2'] + lp['b2'][0]
    return _layernorm_ref(h1 + f, lp['ln2_g'][0], lp['ln2_b'][0])


def reference_forward(tokens, params, pad_idx):
    mask = tokens == pad_idx
    mask_add = jnp.where(mask, NEG_INF, 0.0).astype(jnp.float32)[:, None, :]
    x = params['embedding'][tokens]
    for lp in params['layers']:
        x = _layer_ref(x, mask_add, lp)
    pp = params['head']
    scores = (x @ pp['pool_w'])[..., 0] + pp['pool_b'][0, 0]
    scores = scores + mask_add[:, 0, :]
    p = jax.nn.softmax(scores, axis=-1)
    pooled = jnp.einsum('bn,bnd->bd', p, x)
    return pooled @ pp['wb'] + pp['bb']


# ---------------------------------------------------------------------------
# Deterministic parameter init
# ---------------------------------------------------------------------------
def init_params(key, vocab_size, pad_idx):
    keys = iter(jax.random.split(key, 64))

    def nrm(shape, scale=0.05):
        return (scale * jax.random.normal(next(keys), shape)).astype(jnp.float32)

    emb = nrm((vocab_size, D_MODEL), 0.1)
    emb = emb.at[pad_idx].set(0.0)          # nn.Embedding padding_idx row is zero

    layers = []
    for _ in range(N_LAYERS):
        layers.append(dict(
            wq=nrm((D_MODEL, D_MODEL)), bq=nrm((1, D_MODEL)),
            wk=nrm((D_MODEL, D_MODEL)), bk=nrm((1, D_MODEL)),
            wv=nrm((D_MODEL, D_MODEL)), bv=nrm((1, D_MODEL)),
            wo=nrm((D_MODEL, D_MODEL)), bo=nrm((1, D_MODEL)),
            ln1_g=jnp.ones((1, D_MODEL), jnp.float32),
            ln1_b=jnp.zeros((1, D_MODEL), jnp.float32),
            ln2_g=jnp.ones((1, D_MODEL), jnp.float32),
            ln2_b=jnp.zeros((1, D_MODEL), jnp.float32),
            w1=nrm((D_MODEL, D_FF)), b1=nrm((1, D_FF)),
            w2=nrm((D_FF, D_MODEL)), b2=nrm((1, D_MODEL)),
        ))

    head = dict(
        pool_w=nrm((D_MODEL, 1)), pool_b=nrm((1, 1)),
        wb=nrm((D_MODEL, D_OUTPUT)), bb=nrm((1, D_OUTPUT)),
    )
    return dict(embedding=emb, layers=layers, head=head)


if __name__ == "__main__":
    token_list = ['PAD', 'x1', 'x2', 'x3', '+', '-', '*', '/', 'sin', 'cos']
    pad_idx = token_list.index('PAD')
    vocab = len(token_list)

    key = jax.random.PRNGKey(0)
    params = init_params(key, vocab, pad_idx)
    packed = pack_params(params)

    # (B, N) = (2, 8) padded token-index tensor; second sequence has trailing PAD.
    tokens = jnp.array([[1, 4, 2, 6, 3, 8, 5, 7],
                        [2, 5, 1, 9, 3, 0, 0, 0]], dtype=jnp.int32)

    out = formula_encoder_forward(tokens, packed, pad_idx)
    out = jax.block_until_ready(out)

    ref = jax.block_until_ready(reference_forward(tokens, params, pad_idx))
    assert out.shape == (tokens.shape[0], D_OUTPUT)
    assert jnp.all(jnp.isfinite(out))
    # tolerance covers bf16 GEMM operands + approx reciprocal vs the f32 reference
    assert jnp.allclose(out, ref, atol=2e-2, rtol=2e-2), (
        f"max abs diff {jnp.max(jnp.abs(out - ref))}")

    print("KERNEL_OK")
</pallas_src>

<mosaic_0001>
module attributes {stable_mosaic.version = 11 : i64} {
  func.func @_encoder_tile_kernel(%arg0: i32, %arg1: memref<8x8xi32, #tpu.memory_space<vmem>>, %arg2: memref<10x64xf32, #tpu.memory_space<vmem>>, %arg3: memref<2x64x64xbf16, #tpu.memory_space<vmem>>, %arg4: memref<2x64x64xbf16, #tpu.memory_space<vmem>>, %arg5: memref<2x64x64xbf16, #tpu.memory_space<vmem>>, %arg6: memref<2x1x64xf32, #tpu.memory_space<vmem>>, %arg7: memref<2x1x64xf32, #tpu.memory_space<vmem>>, %arg8: memref<2x1x64xf32, #tpu.memory_space<vmem>>, %arg9: memref<2x64x64xbf16, #tpu.memory_space<vmem>>, %arg10: memref<2x1x64xf32, #tpu.memory_space<vmem>>, %arg11: memref<2x1x64xf32, #tpu.memory_space<vmem>>, %arg12: memref<2x1x64xf32, #tpu.memory_space<vmem>>, %arg13: memref<2x1x64xf32, #tpu.memory_space<vmem>>, %arg14: memref<2x1x64xf32, #tpu.memory_space<vmem>>, %arg15: memref<2x64x256xbf16, #tpu.memory_space<vmem>>, %arg16: memref<2x1x256xf32, #tpu.memory_space<vmem>>, %arg17: memref<2x256x64xbf16, #tpu.memory_space<vmem>>, %arg18: memref<2x1x64xf32, #tpu.memory_space<vmem>>, %arg19: memref<1x64xf32, #tpu.memory_space<vmem>>, %arg20: memref<1x1xf32, #tpu.memory_space<vmem>>, %arg21: memref<64x128xf32, #tpu.memory_space<vmem>>, %arg22: memref<1x128xf32, #tpu.memory_space<vmem>>, %arg23: memref<8x128xf32, #tpu.memory_space<vmem>>) attributes {dimension_semantics = [#tpu.dimension_semantics<parallel>], iteration_bounds = array<i64: 1>, scalar_prefetch = 0 : i64, scratch_operands = 0 : i64, tpu.core_type = #tpu.core_type<tc>, window_params = [{transform_indices = @transform_0, window_bounds = array<i64: 8, 8>}, {pipeline_mode = #tpu.pipeline_mode<synchronous>, transform_indices = @transform_1, window_bounds = array<i64: 10, 64>}, {pipeline_mode = #tpu.pipeline_mode<synchronous>, transform_indices = @transform_2, window_bounds = array<i64: 2, 64, 64>}, {pipeline_mode = #tpu.pipeline_mode<synchronous>, transform_indices = @transform_3, window_bounds = array<i64: 2, 64, 64>}, {pipeline_mode = #tpu.pipeline_mode<synchronous>, transform_indices = @transform_4, window_bounds = array<i64: 2, 64, 64>}, {pipeline_mode = #tpu.pipeline_mode<synchronous>, transform_indices = @transform_5, window_bounds = array<i64: 2, 1, 64>}, {pipeline_mode = #tpu.pipeline_mode<synchronous>, transform_indices = @transform_6, window_bounds = array<i64: 2, 1, 64>}, {pipeline_mode = #tpu.pipeline_mode<synchronous>, transform_indices = @transform_7, window_bounds = array<i64: 2, 1, 64>}, {pipeline_mode = #tpu.pipeline_mode<synchronous>, transform_indices = @transform_8, window_bounds = array<i64: 2, 64, 64>}, {pipeline_mode = #tpu.pipeline_mode<synchronous>, transform_indices = @transform_9, window_bounds = array<i64: 2, 1, 64>}, {pipeline_mode = #tpu.pipeline_mode<synchronous>, transform_indices = @transform_10, window_bounds = array<i64: 2, 1, 64>}, {pipeline_mode = #tpu.pipeline_mode<synchronous>, transform_indices = @transform_11, window_bounds = array<i64: 2, 1, 64>}, {pipeline_mode = #tpu.pipeline_mode<synchronous>, transform_indices = @transform_12, window_bounds = array<i64: 2, 1, 64>}, {pipeline_mode = #tpu.pipeline_mode<synchronous>, transform_indices = @transform_13, window_bounds = array<i64: 2, 1, 64>}, {pipeline_mode = #tpu.pipeline_mode<synchronous>, transform_indices = @transform_14, window_bounds = array<i64: 2, 64, 256>}, {pipeline_mode = #tpu.pipeline_mode<synchronous>, transform_indices = @transform_15, window_bounds = array<i64: 2, 1, 256>}, {pipeline_mode = #tpu.pipeline_mode<synchronous>, transform_indices = @transform_16, window_bounds = array<i64: 2, 256, 64>}, {pipeline_mode = #tpu.pipeline_mode<synchronous>, transform_indices = @transform_17, window_bounds = array<i64: 2, 1, 64>}, {pipeline_mode = #tpu.pipeline_mode<synchronous>, transform_indices = @transform_18, window_bounds = array<i64: 1, 64>}, {pipeline_mode = #tpu.pipeline_mode<synchronous>, transform_indices = @transform_19, window_bounds = array<i64: 1, 1>}, {pipeline_mode = #tpu.pipeline_mode<synchronous>, transform_indices = @transform_20, window_bounds = array<i64: 64, 128>}, {pipeline_mode = #tpu.pipeline_mode<synchronous>, transform_indices = @transform_21, window_bounds = array<i64: 1, 128>}, {transform_indices = @transform_22, window_bounds = array<i64: 8, 128>}]} {
    %c0 = arith.constant 0 : index
    %c0_0 = arith.constant 0 : index
    %0 = vector.load %arg1[%c0, %c0_0] : memref<8x8xi32, #tpu.memory_space<vmem>>, vector<8x8xi32>
    %c0_i32 = arith.constant 0 : i32
    %1 = vector.broadcast %c0_i32 : i32 to vector<8x8xi32>
    %2 = arith.cmpi eq, %0, %1 : vector<8x8xi32>
    %cst = arith.constant -1.000000e+30 : f32
    %cst_1 = arith.constant 0.000000e+00 : f32
    %3 = vector.broadcast %cst : f32 to vector<8x8xf32>
    %4 = vector.broadcast %cst_1 : f32 to vector<8x8xf32>
    %5 = arith.select %2, %3, %4 : vector<8x8xi1>, vector<8x8xf32>
    %6 = vector.shape_cast %5 : vector<8x8xf32> to vector<8x1x8xf32>
    %c0_2 = arith.constant 0 : index
    %c0_3 = arith.constant 0 : index
    %7 = vector.load %arg2[%c0_2, %c0_3] : memref<10x64xf32, #tpu.memory_space<vmem>>, vector<10x64xf32>
    %cst_4 = arith.constant 0.000000e+00 : f32
    %8 = vector.broadcast %cst_4 : f32 to vector<8x8x64xf32>
    %c0_i32_5 = arith.constant 0 : i32
    %9 = vector.broadcast %c0_i32_5 : i32 to vector<8x8xi32>
    %10 = arith.cmpi eq, %0, %9 : vector<8x8xi32>
    %11 = arith.extui %10 : vector<8x8xi1> to vector<8x8xi32>
    %12 = arith.sitofp %11 : vector<8x8xi32> to vector<8x8xf32>
    %13 = vector.shape_cast %12 : vector<8x8xf32> to vector<8x8x1xf32>
    %14 = vector.extract_strided_slice %7 {offsets = [0, 0], sizes = [1, 64], strides = [1, 1]} : vector<10x64xf32> to vector<1x64xf32>
    %15 = vector.shape_cast %14 : vector<1x64xf32> to vector<1x1x64xf32>
    %16 = vector.broadcast %13 : vector<8x8x1xf32> to vector<8x8x64xf32>
    %17 = vector.broadcast %15 : vector<1x1x64xf32> to vector<8x8x64xf32>
    %18 = arith.mulf %16, %17 : vector<8x8x64xf32>
    %19 = arith.addf %8, %18 : vector<8x8x64xf32>
    %c1_i32 = arith.constant 1 : i32
    %20 = vector.broadcast %c1_i32 : i32 to vector<8x8xi32>
    %21 = arith.cmpi eq, %0, %20 : vector<8x8xi32>
    %22 = arith.extui %21 : vector<8x8xi1> to vector<8x8xi32>
    %23 = arith.sitofp %22 : vector<8x8xi32> to vector<8x8xf32>
    %24 = vector.shape_cast %23 : vector<8x8xf32> to vector<8x8x1xf32>
    %25 = vector.extract_strided_slice %7 {offsets = [1, 0], sizes = [1, 64], strides = [1, 1]} : vector<10x64xf32> to vector<1x64xf32>
    %26 = vector.shape_cast %25 : vector<1x64xf32> to vector<1x1x64xf32>
    %27 = vector.broadcast %24 : vector<8x8x1xf32> to vector<8x8x64xf32>
    %28 = vector.broadcast %26 : vector<1x1x64xf32> to vector<8x8x64xf32>
    %29 = arith.mulf %27, %28 : vector<8x8x64xf32>
    %30 = arith.addf %19, %29 : vector<8x8x64xf32>
    %c2_i32 = arith.constant 2 : i32
    %31 = vector.broadcast %c2_i32 : i32 to vector<8x8xi32>
    %32 = arith.cmpi eq, %0, %31 : vector<8x8xi32>
    %33 = arith.extui %32 : vector<8x8xi1> to vector<8x8xi32>
    %34 = arith.sitofp %33 : vector<8x8xi32> to vector<8x8xf32>
    %35 = vector.shape_cast %34 : vector<8x8xf32> to vector<8x8x1xf32>
    %36 = vector.extract_strided_slice %7 {offsets = [2, 0], sizes = [1, 64], strides = [1, 1]} : vector<10x64xf32> to vector<1x64xf32>
    %37 = vector.shape_cast %36 : vector<1x64xf32> to vector<1x1x64xf32>
    %38 = vector.broadcast %35 : vector<8x8x1xf32> to vector<8x8x64xf32>
    %39 = vector.broadcast %37 : vector<1x1x64xf32> to vector<8x8x64xf32>
    %40 = arith.mulf %38, %39 : vector<8x8x64xf32>
    %41 = arith.addf %30, %40 : vector<8x8x64xf32>
    %c3_i32 = arith.constant 3 : i32
    %42 = vector.broadcast %c3_i32 : i32 to vector<8x8xi32>
    %43 = arith.cmpi eq, %0, %42 : vector<8x8xi32>
    %44 = arith.extui %43 : vector<8x8xi1> to vector<8x8xi32>
    %45 = arith.sitofp %44 : vector<8x8xi32> to vector<8x8xf32>
    %46 = vector.shape_cast %45 : vector<8x8xf32> to vector<8x8x1xf32>
    %47 = vector.extract_strided_slice %7 {offsets = [3, 0], sizes = [1, 64], strides = [1, 1]} : vector<10x64xf32> to vector<1x64xf32>
    %48 = vector.shape_cast %47 : vector<1x64xf32> to vector<1x1x64xf32>
    %49 = vector.broadcast %46 : vector<8x8x1xf32> to vector<8x8x64xf32>
    %50 = vector.broadcast %48 : vector<1x1x64xf32> to vector<8x8x64xf32>
    %51 = arith.mulf %49, %50 : vector<8x8x64xf32>
    %52 = arith.addf %41, %51 : vector<8x8x64xf32>
    %c4_i32 = arith.constant 4 : i32
    %53 = vector.broadcast %c4_i32 : i32 to vector<8x8xi32>
    %54 = arith.cmpi eq, %0, %53 : vector<8x8xi32>
    %55 = arith.extui %54 : vector<8x8xi1> to vector<8x8xi32>
    %56 = arith.sitofp %55 : vector<8x8xi32> to vector<8x8xf32>
    %57 = vector.shape_cast %56 : vector<8x8xf32> to vector<8x8x1xf32>
    %58 = vector.extract_strided_slice %7 {offsets = [4, 0], sizes = [1, 64], strides = [1, 1]} : vector<10x64xf32> to vector<1x64xf32>
    %59 = vector.shape_cast %58 : vector<1x64xf32> to vector<1x1x64xf32>
    %60 = vector.broadcast %57 : vector<8x8x1xf32> to vector<8x8x64xf32>
    %61 = vector.broadcast %59 : vector<1x1x64xf32> to vector<8x8x64xf32>
    %62 = arith.mulf %60, %61 : vector<8x8x64xf32>
    %63 = arith.addf %52, %62 : vector<8x8x64xf32>
    %c5_i32 = arith.constant 5 : i32
    %64 = vector.broadcast %c5_i32 : i32 to vector<8x8xi32>
    %65 = arith.cmpi eq, %0, %64 : vector<8x8xi32>
    %66 = arith.extui %65 : vector<8x8xi1> to vector<8x8xi32>
    %67 = arith.sitofp %66 : vector<8x8xi32> to vector<8x8xf32>
    %68 = vector.shape_cast %67 : vector<8x8xf32> to vector<8x8x1xf32>
    %69 = vector.extract_strided_slice %7 {offsets = [5, 0], sizes = [1, 64], strides = [1, 1]} : vector<10x64xf32> to vector<1x64xf32>
    %70 = vector.shape_cast %69 : vector<1x64xf32> to vector<1x1x64xf32>
    %71 = vector.broadcast %68 : vector<8x8x1xf32> to vector<8x8x64xf32>
    %72 = vector.broadcast %70 : vector<1x1x64xf32> to vector<8x8x64xf32>
    %73 = arith.mulf %71, %72 : vector<8x8x64xf32>
    %74 = arith.addf %63, %73 : vector<8x8x64xf32>
    %c6_i32 = arith.constant 6 : i32
    %75 = vector.broadcast %c6_i32 : i32 to vector<8x8xi32>
    %76 = arith.cmpi eq, %0, %75 : vector<8x8xi32>
    %77 = arith.extui %76 : vector<8x8xi1> to vector<8x8xi32>
    %78 = arith.sitofp %77 : vector<8x8xi32> to vector<8x8xf32>
    %79 = vector.shape_cast %78 : vector<8x8xf32> to vector<8x8x1xf32>
    %80 = vector.extract_strided_slice %7 {offsets = [6, 0], sizes = [1, 64], strides = [1, 1]} : vector<10x64xf32> to vector<1x64xf32>
    %81 = vector.shape_cast %80 : vector<1x64xf32> to vector<1x1x64xf32>
    %82 = vector.broadcast %79 : vector<8x8x1xf32> to vector<8x8x64xf32>
    %83 = vector.broadcast %81 : vector<1x1x64xf32> to vector<8x8x64xf32>
    %84 = arith.mulf %82, %83 : vector<8x8x64xf32>
    %85 = arith.addf %74, %84 : vector<8x8x64xf32>
    %c7_i32 = arith.constant 7 : i32
    %86 = vector.broadcast %c7_i32 : i32 to vector<8x8xi32>
    %87 = arith.cmpi eq, %0, %86 : vector<8x8xi32>
    %88 = arith.extui %87 : vector<8x8xi1> to vector<8x8xi32>
    %89 = arith.sitofp %88 : vector<8x8xi32> to vector<8x8xf32>
    %90 = vector.shape_cast %89 : vector<8x8xf32> to vector<8x8x1xf32>
    %91 = vector.extract_strided_slice %7 {offsets = [7, 0], sizes = [1, 64], strides = [1, 1]} : vector<10x64xf32> to vector<1x64xf32>
    %92 = vector.shape_cast %91 : vector<1x64xf32> to vector<1x1x64xf32>
    %93 = vector.broadcast %90 : vector<8x8x1xf32> to vector<8x8x64xf32>
    %94 = vector.broadcast %92 : vector<1x1x64xf32> to vector<8x8x64xf32>
    %95 = arith.mulf %93, %94 : vector<8x8x64xf32>
    %96 = arith.addf %85, %95 : vector<8x8x64xf32>
    %c8_i32 = arith.constant 8 : i32
    %97 = vector.broadcast %c8_i32 : i32 to vector<8x8xi32>
    %98 = arith.cmpi eq, %0, %97 : vector<8x8xi32>
    %99 = arith.extui %98 : vector<8x8xi1> to vector<8x8xi32>
    %100 = arith.sitofp %99 : vector<8x8xi32> to vector<8x8xf32>
    %101 = vector.shape_cast %100 : vector<8x8xf32> to vector<8x8x1xf32>
    %102 = vector.extract_strided_slice %7 {offsets = [8, 0], sizes = [1, 64], strides = [1, 1]} : vector<10x64xf32> to vector<1x64xf32>
    %103 = vector.shape_cast %102 : vector<1x64xf32> to vector<1x1x64xf32>
    %104 = vector.broadcast %101 : vector<8x8x1xf32> to vector<8x8x64xf32>
    %105 = vector.broadcast %103 : vector<1x1x64xf32> to vector<8x8x64xf32>
    %106 = arith.mulf %104, %105 : vector<8x8x64xf32>
    %107 = arith.addf %96, %106 : vector<8x8x64xf32>
    %c9_i32 = arith.constant 9 : i32
    %108 = vector.broadcast %c9_i32 : i32 to vector<8x8xi32>
    %109 = arith.cmpi eq, %0, %108 : vector<8x8xi32>
    %110 = arith.extui %109 : vector<8x8xi1> to vector<8x8xi32>
    %111 = arith.sitofp %110 : vector<8x8xi32> to vector<8x8xf32>
    %112 = vector.shape_cast %111 : vector<8x8xf32> to vector<8x8x1xf32>
    %113 = vector.extract_strided_slice %7 {offsets = [9, 0], sizes = [1, 64], strides = [1, 1]} : vector<10x64xf32> to vector<1x64xf32>
    %114 = vector.shape_cast %113 : vector<1x64xf32> to vector<1x1x64xf32>
    %115 = vector.broadcast %112 : vector<8x8x1xf32> to vector<8x8x64xf32>
    %116 = vector.broadcast %114 : vector<1x1x64xf32> to vector<8x8x64xf32>
    %117 = arith.mulf %115, %116 : vector<8x8x64xf32>
    %118 = arith.addf %107, %117 : vector<8x8x64xf32>
    %119 = vector.shape_cast %118 : vector<8x8x64xf32> to vector<64x64xf32>
    %120 = arith.truncf %119 : vector<64x64xf32> to vector<64x64xbf16>
    %c0_6 = arith.constant 0 : index
    %c0_7 = arith.constant 0 : index
    %c0_8 = arith.constant 0 : index
    %121 = vector.load %arg3[%c0_6, %c0_7, %c0_8] : memref<2x64x64xbf16, #tpu.memory_space<vmem>>, vector<1x64x64xbf16>
    %122 = vector.shape_cast %121 : vector<1x64x64xbf16> to vector<64x64xbf16>
    %cst_9 = arith.constant dense<0.000000e+00> : vector<64x64xf32>
    %123 = tpu.matmul %120, %122, %cst_9 {dimension_numbers = #tpu.dot_dimension_numbers<[1], [0], [0], [1], [0, 0, 1, 1], [], []>} : vector<64x64xbf16>, vector<64x64xbf16>, vector<64x64xf32> -> vector<64x64xf32>
    %c0_10 = arith.constant 0 : index
    %c0_11 = arith.constant 0 : index
    %c0_12 = arith.constant 0 : index
    %124 = vector.load %arg6[%c0_10, %c0_11, %c0_12] : memref<2x1x64xf32, #tpu.memory_space<vmem>>, vector<1x1x64xf32>
    %125 = vector.shape_cast %124 : vector<1x1x64xf32> to vector<1x64xf32>
    %126 = vector.broadcast %125 : vector<1x64xf32> to vector<64x64xf32>
    %127 = arith.addf %123, %126 : vector<64x64xf32>
    %c0_13 = arith.constant 0 : index
    %c0_14 = arith.constant 0 : index
    %c0_15 = arith.constant 0 : index
    %128 = vector.load %arg4[%c0_13, %c0_14, %c0_15] : memref<2x64x64xbf16, #tpu.memory_space<vmem>>, vector<1x64x64xbf16>
    %129 = vector.shape_cast %128 : vector<1x64x64xbf16> to vector<64x64xbf16>
    %cst_16 = arith.constant dense<0.000000e+00> : vector<64x64xf32>
    %130 = tpu.matmul %120, %129, %cst_16 {dimension_numbers = #tpu.dot_dimension_numbers<[1], [0], [0], [1], [0, 0, 1, 1], [], []>} : vector<64x64xbf16>, vector<64x64xbf16>, vector<64x64xf32> -> vector<64x64xf32>
    %c0_17 = arith.constant 0 : index
    %c0_18 = arith.constant 0 : index
    %c0_19 = arith.constant 0 : index
    %131 = vector.load %arg7[%c0_17, %c0_18, %c0_19] : memref<2x1x64xf32, #tpu.memory_space<vmem>>, vector<1x1x64xf32>
    %132 = vector.shape_cast %131 : vector<1x1x64xf32> to vector<1x64xf32>
    %133 = vector.broadcast %132 : vector<1x64xf32> to vector<64x64xf32>
    %134 = arith.addf %130, %133 : vector<64x64xf32>
    %c0_20 = arith.constant 0 : index
    %c0_21 = arith.constant 0 : index
    %c0_22 = arith.constant 0 : index
    %135 = vector.load %arg5[%c0_20, %c0_21, %c0_22] : memref<2x64x64xbf16, #tpu.memory_space<vmem>>, vector<1x64x64xbf16>
    %136 = vector.shape_cast %135 : vector<1x64x64xbf16> to vector<64x64xbf16>
    %cst_23 = arith.constant dense<0.000000e+00> : vector<64x64xf32>
    %137 = tpu.matmul %120, %136, %cst_23 {dimension_numbers = #tpu.dot_dimension_numbers<[1], [0], [0], [1], [0, 0, 1, 1], [], []>} : vector<64x64xbf16>, vector<64x64xbf16>, vector<64x64xf32> -> vector<64x64xf32>
    %c0_24 = arith.constant 0 : index
    %c0_25 = arith.constant 0 : index
    %c0_26 = arith.constant 0 : index
    %138 = vector.load %arg8[%c0_24, %c0_25, %c0_26] : memref<2x1x64xf32, #tpu.memory_space<vmem>>, vector<1x1x64xf32>
    %139 = vector.shape_cast %138 : vector<1x1x64xf32> to vector<1x64xf32>
    %140 = vector.broadcast %139 : vector<1x64xf32> to vector<64x64xf32>
    %141 = arith.addf %137, %140 : vector<64x64xf32>
    %142 = vector.shape_cast %127 : vector<64x64xf32> to vector<8x8x64xf32>
    %143 = vector.shape_cast %134 : vector<64x64xf32> to vector<8x8x64xf32>
    %144 = vector.shape_cast %141 : vector<64x64xf32> to vector<8x8x64xf32>
    "tpu.trace_start"() <{level = 10 : i32, message = "bqd,bkd->bqk"}> : () -> ()
    %cst_27 = arith.constant dense<0.000000e+00> : vector<8x8x8xf32>
    %145 = tpu.matmul %142, %143, %cst_27 {dimension_numbers = #tpu.dot_dimension_numbers<[2], [2], [1], [1], [0, 0, 0, 1, 1, 1], [0], [0]>} : vector<8x8x64xf32>, vector<8x8x64xf32>, vector<8x8x8xf32> -> vector<8x8x8xf32>
    "tpu.trace_stop"() : () -> ()
    %cst_28 = arith.constant 1.250000e-01 : f32
    %146 = vector.broadcast %cst_28 : f32 to vector<8x8x8xf32>
    %147 = arith.mulf %145, %146 : vector<8x8x8xf32>
    %148 = vector.broadcast %6 : vector<8x1x8xf32> to vector<8x8x8xf32>
    %149 = arith.addf %147, %148 : vector<8x8x8xf32>
    %cst_29 = arith.constant dense<0xFF800000> : vector<8x8xf32>
    %150 = vector.multi_reduction <maximumf>, %149, %cst_29 [2] : vector<8x8x8xf32> to vector<8x8xf32>
    %151 = vector.shape_cast %150 : vector<8x8xf32> to vector<8x8x1xf32>
    %152 = vector.broadcast %151 : vector<8x8x1xf32> to vector<8x8x8xf32>
    %153 = arith.subf %149, %152 : vector<8x8x8xf32>
    %154 = math.exp %153 : vector<8x8x8xf32>
    %cst_30 = arith.constant dense<0.000000e+00> : vector<8x8xf32>
    %155 = vector.multi_reduction <add>, %154, %cst_30 [2] : vector<8x8x8xf32> to vector<8x8xf32>
    %156 = vector.shape_cast %155 : vector<8x8xf32> to vector<8x8x1xf32>
    %157 = tpu.reciprocal %156 {approx = true} : vector<8x8x1xf32> -> vector<8x8x1xf32>
    %158 = vector.broadcast %157 : vector<8x8x1xf32> to vector<8x8x8xf32>
    %159 = arith.mulf %154, %158 : vector<8x8x8xf32>
    "tpu.trace_start"() <{level = 10 : i32, message = "bqk,bkd->bqd"}> : () -> ()
    %cst_31 = arith.constant dense<0.000000e+00> : vector<8x8x64xf32>
    %160 = tpu.matmul %159, %144, %cst_31 {dimension_numbers = #tpu.dot_dimension_numbers<[2], [1], [1], [2], [0, 0, 0, 1, 1, 2], [0], [0]>} : vector<8x8x8xf32>, vector<8x8x64xf32>, vector<8x8x64xf32> -> vector<8x8x64xf32>
    "tpu.trace_stop"() : () -> ()
    %161 = vector.shape_cast %160 : vector<8x8x64xf32> to vector<64x64xf32>
    %162 = arith.truncf %161 : vector<64x64xf32> to vector<64x64xbf16>
    %c0_32 = arith.constant 0 : index
    %c0_33 = arith.constant 0 : index
    %c0_34 = arith.constant 0 : index
    %163 = vector.load %arg9[%c0_32, %c0_33, %c0_34] : memref<2x64x64xbf16, #tpu.memory_space<vmem>>, vector<1x64x64xbf16>
    %164 = vector.shape_cast %163 : vector<1x64x64xbf16> to vector<64x64xbf16>
    %cst_35 = arith.constant dense<0.000000e+00> : vector<64x64xf32>
    %165 = tpu.matmul %162, %164, %cst_35 {dimension_numbers = #tpu.dot_dimension_numbers<[1], [0], [0], [1], [0, 0, 1, 1], [], []>} : vector<64x64xbf16>, vector<64x64xbf16>, vector<64x64xf32> -> vector<64x64xf32>
    %c0_36 = arith.constant 0 : index
    %c0_37 = arith.constant 0 : index
    %c0_38 = arith.constant 0 : index
    %166 = vector.load %arg10[%c0_36, %c0_37, %c0_38] : memref<2x1x64xf32, #tpu.memory_space<vmem>>, vector<1x1x64xf32>
    %167 = vector.shape_cast %166 : vector<1x1x64xf32> to vector<1x64xf32>
    %168 = vector.broadcast %167 : vector<1x64xf32> to vector<64x64xf32>
    %169 = arith.addf %165, %168 : vector<64x64xf32>
    %170 = arith.addf %119, %169 : vector<64x64xf32>
    %c0_39 = arith.constant 0 : index
    %c0_40 = arith.constant 0 : index
    %c0_41 = arith.constant 0 : index
    %171 = vector.load %arg11[%c0_39, %c0_40, %c0_41] : memref<2x1x64xf32, #tpu.memory_space<vmem>>, vector<1x1x64xf32>
    %172 = vector.shape_cast %171 : vector<1x1x64xf32> to vector<1x64xf32>
    %c0_42 = arith.constant 0 : index
    %c0_43 = arith.constant 0 : index
    %c0_44 = arith.constant 0 : index
    %173 = vector.load %arg12[%c0_42, %c0_43, %c0_44] : memref<2x1x64xf32, #tpu.memory_space<vmem>>, vector<1x1x64xf32>
    %174 = vector.shape_cast %173 : vector<1x1x64xf32> to vector<1x64xf32>
    %cst_45 = arith.constant dense<0.000000e+00> : vector<64xf32>
    %175 = vector.multi_reduction <add>, %170, %cst_45 [1] : vector<64x64xf32> to vector<64xf32>
    %176 = vector.shape_cast %175 : vector<64xf32> to vector<64x1xf32>
    %cst_46 = arith.constant 6.400000e+01 : f32
    %177 = vector.broadcast %cst_46 : f32 to vector<64x1xf32>
    %178 = arith.divf %176, %177 : vector<64x1xf32>
    %179 = vector.broadcast %178 : vector<64x1xf32> to vector<64x64xf32>
    %180 = arith.subf %170, %179 : vector<64x64xf32>
    %181 = arith.mulf %180, %180 : vector<64x64xf32>
    %cst_47 = arith.constant dense<0.000000e+00> : vector<64xf32>
    %182 = vector.multi_reduction <add>, %181, %cst_47 [1] : vector<64x64xf32> to vector<64xf32>
    %183 = vector.shape_cast %182 : vector<64xf32> to vector<64x1xf32>
    %cst_48 = arith.constant 6.400000e+01 : f32
    %184 = vector.broadcast %cst_48 : f32 to vector<64x1xf32>
    %185 = arith.divf %183, %184 : vector<64x1xf32>
    %186 = vector.broadcast %178 : vector<64x1xf32> to vector<64x64xf32>
    %187 = arith.subf %170, %186 : vector<64x64xf32>
    %cst_49 = arith.constant 9.99999974E-6 : f32
    %188 = vector.broadcast %cst_49 : f32 to vector<64x1xf32>
    %189 = arith.addf %185, %188 : vector<64x1xf32>
    %190 = math.rsqrt %189 : vector<64x1xf32>
    %191 = vector.broadcast %190 : vector<64x1xf32> to vector<64x64xf32>
    %192 = arith.mulf %187, %191 : vector<64x64xf32>
    %193 = vector.broadcast %172 : vector<1x64xf32> to vector<64x64xf32>
    %194 = arith.mulf %192, %193 : vector<64x64xf32>
    %195 = vector.broadcast %174 : vector<1x64xf32> to vector<64x64xf32>
    %196 = arith.addf %194, %195 : vector<64x64xf32>
    %197 = arith.truncf %196 : vector<64x64xf32> to vector<64x64xbf16>
    %c0_50 = arith.constant 0 : index
    %c0_51 = arith.constant 0 : index
    %c0_52 = arith.constant 0 : index
    %198 = vector.load %arg15[%c0_50, %c0_51, %c0_52] : memref<2x64x256xbf16, #tpu.memory_space<vmem>>, vector<1x64x256xbf16>
    %199 = vector.shape_cast %198 : vector<1x64x256xbf16> to vector<64x256xbf16>
    %cst_53 = arith.constant dense<0.000000e+00> : vector<64x256xf32>
    %200 = tpu.matmul %197, %199, %cst_53 {dimension_numbers = #tpu.dot_dimension_numbers<[1], [0], [0], [1], [0, 0, 1, 1], [], []>} : vector<64x64xbf16>, vector<64x256xbf16>, vector<64x256xf32> -> vector<64x256xf32>
    %c0_54 = arith.constant 0 : index
    %c0_55 = arith.constant 0 : index
    %c0_56 = arith.constant 0 : index
    %201 = vector.load %arg16[%c0_54, %c0_55, %c0_56] : memref<2x1x256xf32, #tpu.memory_space<vmem>>, vector<1x1x256xf32>
    %202 = vector.shape_cast %201 : vector<1x1x256xf32> to vector<1x256xf32>
    %203 = vector.broadcast %202 : vector<1x256xf32> to vector<64x256xf32>
    %204 = arith.addf %200, %203 : vector<64x256xf32>
    %cst_57 = arith.constant 0.000000e+00 : f32
    %205 = vector.broadcast %cst_57 : f32 to vector<64x256xf32>
    %206 = arith.maximumf %204, %205 : vector<64x256xf32>
    %207 = arith.truncf %206 : vector<64x256xf32> to vector<64x256xbf16>
    %c0_58 = arith.constant 0 : index
    %c0_59 = arith.constant 0 : index
    %c0_60 = arith.constant 0 : index
    %208 = vector.load %arg17[%c0_58, %c0_59, %c0_60] : memref<2x256x64xbf16, #tpu.memory_space<vmem>>, vector<1x256x64xbf16>
    %209 = vector.shape_cast %208 : vector<1x256x64xbf16> to vector<256x64xbf16>
    %cst_61 = arith.constant dense<0.000000e+00> : vector<64x64xf32>
    %210 = tpu.matmul %207, %209, %cst_61 {dimension_numbers = #tpu.dot_dimension_numbers<[1], [0], [0], [1], [0, 0, 1, 1], [], []>} : vector<64x256xbf16>, vector<256x64xbf16>, vector<64x64xf32> -> vector<64x64xf32>
    %c0_62 = arith.constant 0 : index
    %c0_63 = arith.constant 0 : index
    %c0_64 = arith.constant 0 : index
    %211 = vector.load %arg18[%c0_62, %c0_63, %c0_64] : memref<2x1x64xf32, #tpu.memory_space<vmem>>, vector<1x1x64xf32>
    %212 = vector.shape_cast %211 : vector<1x1x64xf32> to vector<1x64xf32>
    %213 = vector.broadcast %212 : vector<1x64xf32> to vector<64x64xf32>
    %214 = arith.addf %210, %213 : vector<64x64xf32>
    %215 = arith.addf %196, %214 : vector<64x64xf32>
    %c0_65 = arith.constant 0 : index
    %c0_66 = arith.constant 0 : index
    %c0_67 = arith.constant 0 : index
    %216 = vector.load %arg13[%c0_65, %c0_66, %c0_67] : memref<2x1x64xf32, #tpu.memory_space<vmem>>, vector<1x1x64xf32>
    %217 = vector.shape_cast %216 : vector<1x1x64xf32> to vector<1x64xf32>
    %c0_68 = arith.constant 0 : index
    %c0_69 = arith.constant 0 : index
    %c0_70 = arith.constant 0 : index
    %218 = vector.load %arg14[%c0_68, %c0_69, %c0_70] : memref<2x1x64xf32, #tpu.memory_space<vmem>>, vector<1x1x64xf32>
    %219 = vector.shape_cast %218 : vector<1x1x64xf32> to vector<1x64xf32>
    %cst_71 = arith.constant dense<0.000000e+00> : vector<64xf32>
    %220 = vector.multi_reduction <add>, %215, %cst_71 [1] : vector<64x64xf32> to vector<64xf32>
    %221 = vector.shape_cast %220 : vector<64xf32> to vector<64x1xf32>
    %cst_72 = arith.constant 6.400000e+01 : f32
    %222 = vector.broadcast %cst_72 : f32 to vector<64x1xf32>
    %223 = arith.divf %221, %222 : vector<64x1xf32>
    %224 = vector.broadcast %223 : vector<64x1xf32> to vector<64x64xf32>
    %225 = arith.subf %215, %224 : vector<64x64xf32>
    %226 = arith.mulf %225, %225 : vector<64x64xf32>
    %cst_73 = arith.constant dense<0.000000e+00> : vector<64xf32>
    %227 = vector.multi_reduction <add>, %226, %cst_73 [1] : vector<64x64xf32> to vector<64xf32>
    %228 = vector.shape_cast %227 : vector<64xf32> to vector<64x1xf32>
    %cst_74 = arith.constant 6.400000e+01 : f32
    %229 = vector.broadcast %cst_74 : f32 to vector<64x1xf32>
    %230 = arith.divf %228, %229 : vector<64x1xf32>
    %231 = vector.broadcast %223 : vector<64x1xf32> to vector<64x64xf32>
    %232 = arith.subf %215, %231 : vector<64x64xf32>
    %cst_75 = arith.constant 9.99999974E-6 : f32
    %233 = vector.broadcast %cst_75 : f32 to vector<64x1xf32>
    %234 = arith.addf %230, %233 : vector<64x1xf32>
    %235 = math.rsqrt %234 : vector<64x1xf32>
    %236 = vector.broadcast %235 : vector<64x1xf32> to vector<64x64xf32>
    %237 = arith.mulf %232, %236 : vector<64x64xf32>
    %238 = vector.broadcast %217 : vector<1x64xf32> to vector<64x64xf32>
    %239 = arith.mulf %237, %238 : vector<64x64xf32>
    %240 = vector.broadcast %219 : vector<1x64xf32> to vector<64x64xf32>
    %241 = arith.addf %239, %240 : vector<64x64xf32>
    %242 = arith.truncf %241 : vector<64x64xf32> to vector<64x64xbf16>
    %c1 = arith.constant 1 : index
    %c0_76 = arith.constant 0 : index
    %c0_77 = arith.constant 0 : index
    %243 = vector.load %arg3[%c1, %c0_76, %c0_77] : memref<2x64x64xbf16, #tpu.memory_space<vmem>>, vector<1x64x64xbf16>
    %244 = vector.shape_cast %243 : vector<1x64x64xbf16> to vector<64x64xbf16>
    %cst_78 = arith.constant dense<0.000000e+00> : vector<64x64xf32>
    %245 = tpu.matmul %242, %244, %cst_78 {dimension_numbers = #tpu.dot_dimension_numbers<[1], [0], [0], [1], [0, 0, 1, 1], [], []>} : vector<64x64xbf16>, vector<64x64xbf16>, vector<64x64xf32> -> vector<64x64xf32>
    %c1_79 = arith.constant 1 : index
    %c0_80 = arith.constant 0 : index
    %c0_81 = arith.constant 0 : index
    %246 = vector.load %arg6[%c1_79, %c0_80, %c0_81] : memref<2x1x64xf32, #tpu.memory_space<vmem>>, vector<1x1x64xf32>
    %247 = vector.shape_cast %246 : vector<1x1x64xf32> to vector<1x64xf32>
    %248 = vector.broadcast %247 : vector<1x64xf32> to vector<64x64xf32>
    %249 = arith.addf %245, %248 : vector<64x64xf32>
    %c1_82 = arith.constant 1 : index
    %c0_83 = arith.constant 0 : index
    %c0_84 = arith.constant 0 : index
    %250 = vector.load %arg4[%c1_82, %c0_83, %c0_84] : memref<2x64x64xbf16, #tpu.memory_space<vmem>>, vector<1x64x64xbf16>
    %251 = vector.shape_cast %250 : vector<1x64x64xbf16> to vector<64x64xbf16>
    %cst_85 = arith.constant dense<0.000000e+00> : vector<64x64xf32>
    %252 = tpu.matmul %242, %251, %cst_85 {dimension_numbers = #tpu.dot_dimension_numbers<[1], [0], [0], [1], [0, 0, 1, 1], [], []>} : vector<64x64xbf16>, vector<64x64xbf16>, vector<64x64xf32> -> vector<64x64xf32>
    %c1_86 = arith.constant 1 : index
    %c0_87 = arith.constant 0 : index
    %c0_88 = arith.constant 0 : index
    %253 = vector.load %arg7[%c1_86, %c0_87, %c0_88] : memref<2x1x64xf32, #tpu.memory_space<vmem>>, vector<1x1x64xf32>
    %254 = vector.shape_cast %253 : vector<1x1x64xf32> to vector<1x64xf32>
    %255 = vector.broadcast %254 : vector<1x64xf32> to vector<64x64xf32>
    %256 = arith.addf %252, %255 : vector<64x64xf32>
    %c1_89 = arith.constant 1 : index
    %c0_90 = arith.constant 0 : index
    %c0_91 = arith.constant 0 : index
    %257 = vector.load %arg5[%c1_89, %c0_90, %c0_91] : memref<2x64x64xbf16, #tpu.memory_space<vmem>>, vector<1x64x64xbf16>
    %258 = vector.shape_cast %257 : vector<1x64x64xbf16> to vector<64x64xbf16>
    %cst_92 = arith.constant dense<0.000000e+00> : vector<64x64xf32>
    %259 = tpu.matmul %242, %258, %cst_92 {dimension_numbers = #tpu.dot_dimension_numbers<[1], [0], [0], [1], [0, 0, 1, 1], [], []>} : vector<64x64xbf16>, vector<64x64xbf16>, vector<64x64xf32> -> vector<64x64xf32>
    %c1_93 = arith.constant 1 : index
    %c0_94 = arith.constant 0 : index
    %c0_95 = arith.constant 0 : index
    %260 = vector.load %arg8[%c1_93, %c0_94, %c0_95] : memref<2x1x64xf32, #tpu.memory_space<vmem>>, vector<1x1x64xf32>
    %261 = vector.shape_cast %260 : vector<1x1x64xf32> to vector<1x64xf32>
    %262 = vector.broadcast %261 : vector<1x64xf32> to vector<64x64xf32>
    %263 = arith.addf %259, %262 : vector<64x64xf32>
    %264 = vector.shape_cast %249 : vector<64x64xf32> to vector<8x8x64xf32>
    %265 = vector.shape_cast %256 : vector<64x64xf32> to vector<8x8x64xf32>
    %266 = vector.shape_cast %263 : vector<64x64xf32> to vector<8x8x64xf32>
    "tpu.trace_start"() <{level = 10 : i32, message = "bqd,bkd->bqk"}> : () -> ()
    %cst_96 = arith.constant dense<0.000000e+00> : vector<8x8x8xf32>
    %267 = tpu.matmul %264, %265, %cst_96 {dimension_numbers = #tpu.dot_dimension_numbers<[2], [2], [1], [1], [0, 0, 0, 1, 1, 1], [0], [0]>} : vector<8x8x64xf32>, vector<8x8x64xf32>, vector<8x8x8xf32> -> vector<8x8x8xf32>
    "tpu.trace_stop"() : () -> ()
    %cst_97 = arith.constant 1.250000e-01 : f32
    %268 = vector.broadcast %cst_97 : f32 to vector<8x8x8xf32>
    %269 = arith.mulf %267, %268 : vector<8x8x8xf32>
    %270 = vector.broadcast %6 : vector<8x1x8xf32> to vector<8x8x8xf32>
    %271 = arith.addf %269, %270 : vector<8x8x8xf32>
    %cst_98 = arith.constant dense<0xFF800000> : vector<8x8xf32>
    %272 = vector.multi_reduction <maximumf>, %271, %cst_98 [2] : vector<8x8x8xf32> to vector<8x8xf32>
    %273 = vector.shape_cast %272 : vector<8x8xf32> to vector<8x8x1xf32>
    %274 = vector.broadcast %273 : vector<8x8x1xf32> to vector<8x8x8xf32>
    %275 = arith.subf %271, %274 : vector<8x8x8xf32>
    %276 = math.exp %275 : vector<8x8x8xf32>
    %cst_99 = arith.constant dense<0.000000e+00> : vector<8x8xf32>
    %277 = vector.multi_reduction <add>, %276, %cst_99 [2] : vector<8x8x8xf32> to vector<8x8xf32>
    %278 = vector.shape_cast %277 : vector<8x8xf32> to vector<8x8x1xf32>
    %279 = tpu.reciprocal %278 {approx = true} : vector<8x8x1xf32> -> vector<8x8x1xf32>
    %280 = vector.broadcast %279 : vector<8x8x1xf32> to vector<8x8x8xf32>
    %281 = arith.mulf %276, %280 : vector<8x8x8xf32>
    "tpu.trace_start"() <{level = 10 : i32, message = "bqk,bkd->bqd"}> : () -> ()
    %cst_100 = arith.constant dense<0.000000e+00> : vector<8x8x64xf32>
    %282 = tpu.matmul %281, %266, %cst_100 {dimension_numbers = #tpu.dot_dimension_numbers<[2], [1], [1], [2], [0, 0, 0, 1, 1, 2], [0], [0]>} : vector<8x8x8xf32>, vector<8x8x64xf32>, vector<8x8x64xf32> -> vector<8x8x64xf32>
    "tpu.trace_stop"() : () -> ()
    %283 = vector.shape_cast %282 : vector<8x8x64xf32> to vector<64x64xf32>
    %284 = arith.truncf %283 : vector<64x64xf32> to vector<64x64xbf16>
    %c1_101 = arith.constant 1 : index
    %c0_102 = arith.constant 0 : index
    %c0_103 = arith.constant 0 : index
    %285 = vector.load %arg9[%c1_101, %c0_102, %c0_103] : memref<2x64x64xbf16, #tpu.memory_space<vmem>>, vector<1x64x64xbf16>
    %286 = vector.shape_cast %285 : vector<1x64x64xbf16> to vector<64x64xbf16>
    %cst_104 = arith.constant dense<0.000000e+00> : vector<64x64xf32>
    %287 = tpu.matmul %284, %286, %cst_104 {dimension_numbers = #tpu.dot_dimension_numbers<[1], [0], [0], [1], [0, 0, 1, 1], [], []>} : vector<64x64xbf16>, vector<64x64xbf16>, vector<64x64xf32> -> vector<64x64xf32>
    %c1_105 = arith.constant 1 : index
    %c0_106 = arith.constant 0 : index
    %c0_107 = arith.constant 0 : index
    %288 = vector.load %arg10[%c1_105, %c0_106, %c0_107] : memref<2x1x64xf32, #tpu.memory_space<vmem>>, vector<1x1x64xf32>
    %289 = vector.shape_cast %288 : vector<1x1x64xf32> to vector<1x64xf32>
    %290 = vector.broadcast %289 : vector<1x64xf32> to vector<64x64xf32>
    %291 = arith.addf %287, %290 : vector<64x64xf32>
    %292 = arith.addf %241, %291 : vector<64x64xf32>
    %c1_108 = arith.constant 1 : index
    %c0_109 = arith.constant 0 : index
    %c0_110 = arith.constant 0 : index
    %293 = vector.load %arg11[%c1_108, %c0_109, %c0_110] : memref<2x1x64xf32, #tpu.memory_space<vmem>>, vector<1x1x64xf32>
    %294 = vector.shape_cast %293 : vector<1x1x64xf32> to vector<1x64xf32>
    %c1_111 = arith.constant 1 : index
    %c0_112 = arith.constant 0 : index
    %c0_113 = arith.constant 0 : index
    %295 = vector.load %arg12[%c1_111, %c0_112, %c0_113] : memref<2x1x64xf32, #tpu.memory_space<vmem>>, vector<1x1x64xf32>
    %296 = vector.shape_cast %295 : vector<1x1x64xf32> to vector<1x64xf32>
    %cst_114 = arith.constant dense<0.000000e+00> : vector<64xf32>
    %297 = vector.multi_reduction <add>, %292, %cst_114 [1] : vector<64x64xf32> to vector<64xf32>
    %298 = vector.shape_cast %297 : vector<64xf32> to vector<64x1xf32>
    %cst_115 = arith.constant 6.400000e+01 : f32
    %299 = vector.broadcast %cst_115 : f32 to vector<64x1xf32>
    %300 = arith.divf %298, %299 : vector<64x1xf32>
    %301 = vector.broadcast %300 : vector<64x1xf32> to vector<64x64xf32>
    %302 = arith.subf %292, %301 : vector<64x64xf32>
    %303 = arith.mulf %302, %302 : vector<64x64xf32>
    %cst_116 = arith.constant dense<0.000000e+00> : vector<64xf32>
    %304 = vector.multi_reduction <add>, %303, %cst_116 [1] : vector<64x64xf32> to vector<64xf32>
    %305 = vector.shape_cast %304 : vector<64xf32> to vector<64x1xf32>
    %cst_117 = arith.constant 6.400000e+01 : f32
    %306 = vector.broadcast %cst_117 : f32 to vector<64x1xf32>
    %307 = arith.divf %305, %306 : vector<64x1xf32>
    %308 = vector.broadcast %300 : vector<64x1xf32> to vector<64x64xf32>
    %309 = arith.subf %292, %308 : vector<64x64xf32>
    %cst_118 = arith.constant 9.99999974E-6 : f32
    %310 = vector.broadcast %cst_118 : f32 to vector<64x1xf32>
    %311 = arith.addf %307, %310 : vector<64x1xf32>
    %312 = math.rsqrt %311 : vector<64x1xf32>
    %313 = vector.broadcast %312 : vector<64x1xf32> to vector<64x64xf32>
    %314 = arith.mulf %309, %313 : vector<64x64xf32>
    %315 = vector.broadcast %294 : vector<1x64xf32> to vector<64x64xf32>
    %316 = arith.mulf %314, %315 : vector<64x64xf32>
    %317 = vector.broadcast %296 : vector<1x64xf32> to vector<64x64xf32>
    %318 = arith.addf %316, %317 : vector<64x64xf32>
    %319 = arith.truncf %318 : vector<64x64xf32> to vector<64x64xbf16>
    %c1_119 = arith.constant 1 : index
    %c0_120 = arith.constant 0 : index
    %c0_121 = arith.constant 0 : index
    %320 = vector.load %arg15[%c1_119, %c0_120, %c0_121] : memref<2x64x256xbf16, #tpu.memory_space<vmem>>, vector<1x64x256xbf16>
    %321 = vector.shape_cast %320 : vector<1x64x256xbf16> to vector<64x256xbf16>
    %cst_122 = arith.constant dense<0.000000e+00> : vector<64x256xf32>
    %322 = tpu.matmul %319, %321, %cst_122 {dimension_numbers = #tpu.dot_dimension_numbers<[1], [0], [0], [1], [0, 0, 1, 1], [], []>} : vector<64x64xbf16>, vector<64x256xbf16>, vector<64x256xf32> -> vector<64x256xf32>
    %c1_123 = arith.constant 1 : index
    %c0_124 = arith.constant 0 : index
    %c0_125 = arith.constant 0 : index
    %323 = vector.load %arg16[%c1_123, %c0_124, %c0_125] : memref<2x1x256xf32, #tpu.memory_space<vmem>>, vector<1x1x256xf32>
    %324 = vector.shape_cast %323 : vector<1x1x256xf32> to vector<1x256xf32>
    %325 = vector.broadcast %324 : vector<1x256xf32> to vector<64x256xf32>
    %326 = arith.addf %322, %325 : vector<64x256xf32>
    %cst_126 = arith.constant 0.000000e+00 : f32
    %327 = vector.broadcast %cst_126 : f32 to vector<64x256xf32>
    %328 = arith.maximumf %326, %327 : vector<64x256xf32>
    %329 = arith.truncf %328 : vector<64x256xf32> to vector<64x256xbf16>
    %c1_127 = arith.constant 1 : index
    %c0_128 = arith.constant 0 : index
    %c0_129 = arith.constant 0 : index
    %330 = vector.load %arg17[%c1_127, %c0_128, %c0_129] : memref<2x256x64xbf16, #tpu.memory_space<vmem>>, vector<1x256x64xbf16>
    %331 = vector.shape_cast %330 : vector<1x256x64xbf16> to vector<256x64xbf16>
    %cst_130 = arith.constant dense<0.000000e+00> : vector<64x64xf32>
    %332 = tpu.matmul %329, %331, %cst_130 {dimension_numbers = #tpu.dot_dimension_numbers<[1], [0], [0], [1], [0, 0, 1, 1], [], []>} : vector<64x256xbf16>, vector<256x64xbf16>, vector<64x64xf32> -> vector<64x64xf32>
    %c1_131 = arith.constant 1 : index
    %c0_132 = arith.constant 0 : index
    %c0_133 = arith.constant 0 : index
    %333 = vector.load %arg18[%c1_131, %c0_132, %c0_133] : memref<2x1x64xf32, #tpu.memory_space<vmem>>, vector<1x1x64xf32>
    %334 = vector.shape_cast %333 : vector<1x1x64xf32> to vector<1x64xf32>
    %335 = vector.broadcast %334 : vector<1x64xf32> to vector<64x64xf32>
    %336 = arith.addf %332, %335 : vector<64x64xf32>
    %337 = arith.addf %318, %336 : vector<64x64xf32>
    %c1_134 = arith.constant 1 : index
    %c0_135 = arith.constant 0 : index
    %c0_136 = arith.constant 0 : index
    %338 = vector.load %arg13[%c1_134, %c0_135, %c0_136] : memref<2x1x64xf32, #tpu.memory_space<vmem>>, vector<1x1x64xf32>
    %339 = vector.shape_cast %338 : vector<1x1x64xf32> to vector<1x64xf32>
    %c1_137 = arith.constant 1 : index
    %c0_138 = arith.constant 0 : index
    %c0_139 = arith.constant 0 : index
    %340 = vector.load %arg14[%c1_137, %c0_138, %c0_139] : memref<2x1x64xf32, #tpu.memory_space<vmem>>, vector<1x1x64xf32>
    %341 = vector.shape_cast %340 : vector<1x1x64xf32> to vector<1x64xf32>
    %cst_140 = arith.constant dense<0.000000e+00> : vector<64xf32>
    %342 = vector.multi_reduction <add>, %337, %cst_140 [1] : vector<64x64xf32> to vector<64xf32>
    %343 = vector.shape_cast %342 : vector<64xf32> to vector<64x1xf32>
    %cst_141 = arith.constant 6.400000e+01 : f32
    %344 = vector.broadcast %cst_141 : f32 to vector<64x1xf32>
    %345 = arith.divf %343, %344 : vector<64x1xf32>
    %346 = vector.broadcast %345 : vector<64x1xf32> to vector<64x64xf32>
    %347 = arith.subf %337, %346 : vector<64x64xf32>
    %348 = arith.mulf %347, %347 : vector<64x64xf32>
    %cst_142 = arith.constant dense<0.000000e+00> : vector<64xf32>
    %349 = vector.multi_reduction <add>, %348, %cst_142 [1] : vector<64x64xf32> to vector<64xf32>
    %350 = vector.shape_cast %349 : vector<64xf32> to vector<64x1xf32>
    %cst_143 = arith.constant 6.400000e+01 : f32
    %351 = vector.broadcast %cst_143 : f32 to vector<64x1xf32>
    %352 = arith.divf %350, %351 : vector<64x1xf32>
    %353 = vector.broadcast %345 : vector<64x1xf32> to vector<64x64xf32>
    %354 = arith.subf %337, %353 : vector<64x64xf32>
    %cst_144 = arith.constant 9.99999974E-6 : f32
    %355 = vector.broadcast %cst_144 : f32 to vector<64x1xf32>
    %356 = arith.addf %352, %355 : vector<64x1xf32>
    %357 = math.rsqrt %356 : vector<64x1xf32>
    %358 = vector.broadcast %357 : vector<64x1xf32> to vector<64x64xf32>
    %359 = arith.mulf %354, %358 : vector<64x64xf32>
    %360 = vector.broadcast %339 : vector<1x64xf32> to vector<64x64xf32>
    %361 = arith.mulf %359, %360 : vector<64x64xf32>
    %362 = vector.broadcast %341 : vector<1x64xf32> to vector<64x64xf32>
    %363 = arith.addf %361, %362 : vector<64x64xf32>
    %364 = vector.shape_cast %363 : vector<64x64xf32> to vector<8x8x64xf32>
    %c0_145 = arith.constant 0 : index
    %c0_146 = arith.constant 0 : index
    %365 = vector.load %arg19[%c0_145, %c0_146] : memref<1x64xf32, #tpu.memory_space<vmem>>, vector<1x64xf32>
    %366 = vector.shape_cast %365 : vector<1x64xf32> to vector<1x1x64xf32>
    %367 = vector.broadcast %366 : vector<1x1x64xf32> to vector<8x8x64xf32>
    %368 = arith.mulf %364, %367 : vector<8x8x64xf32>
    %cst_147 = arith.constant dense<0.000000e+00> : vector<8x8xf32>
    %369 = vector.multi_reduction <add>, %368, %cst_147 [2] : vector<8x8x64xf32> to vector<8x8xf32>
    %c0_148 = arith.constant 0 : index
    %c0_149 = arith.constant 0 : index
    %370 = vector.load %arg20[%c0_148, %c0_149] : memref<1x1xf32, #tpu.memory_space<vmem>>, vector<1x1xf32>
    %371 = vector.broadcast %370 : vector<1x1xf32> to vector<8x8xf32>
    %372 = arith.addf %369, %371 : vector<8x8xf32>
    %373 = arith.addf %372, %5 : vector<8x8xf32>
    %cst_150 = arith.constant dense<0xFF800000> : vector<8xf32>
    %374 = vector.multi_reduction <maximumf>, %373, %cst_150 [1] : vector<8x8xf32> to vector<8xf32>
    %375 = vector.shape_cast %374 : vector<8xf32> to vector<8x1xf32>
    %376 = vector.broadcast %375 : vector<8x1xf32> to vector<8x8xf32>
    %377 = arith.subf %373, %376 : vector<8x8xf32>
    %378 = math.exp %377 : vector<8x8xf32>
    %cst_151 = arith.constant dense<0.000000e+00> : vector<8xf32>
    %379 = vector.multi_reduction <add>, %378, %cst_151 [1] : vector<8x8xf32> to vector<8xf32>
    %380 = vector.shape_cast %379 : vector<8xf32> to vector<8x1xf32>
    %381 = tpu.reciprocal %380 {approx = true} : vector<8x1xf32> -> vector<8x1xf32>
    %382 = vector.broadcast %381 : vector<8x1xf32> to vector<8x8xf32>
    %383 = arith.mulf %378, %382 : vector<8x8xf32>
    %384 = vector.shape_cast %383 : vector<8x8xf32> to vector<8x8x1xf32>
    %385 = vector.broadcast %384 : vector<8x8x1xf32> to vector<8x8x64xf32>
    %386 = arith.mulf %385, %364 : vector<8x8x64xf32>
    %cst_152 = arith.constant dense<0.000000e+00> : vector<8x64xf32>
    %387 = vector.multi_reduction <add>, %386, %cst_152 [1] : vector<8x8x64xf32> to vector<8x64xf32>
    %c0_153 = arith.constant 0 : index
    %c0_154 = arith.constant 0 : index
    %388 = vector.load %arg21[%c0_153, %c0_154] : memref<64x128xf32, #tpu.memory_space<vmem>>, vector<64x128xf32>
    %cst_155 = arith.constant dense<0.000000e+00> : vector<8x128xf32>
    %389 = tpu.matmul %387, %388, %cst_155 {dimension_numbers = #tpu.dot_dimension_numbers<[1], [0], [0], [1], [0, 0, 1, 1], [], []>} : vector<8x64xf32>, vector<64x128xf32>, vector<8x128xf32> -> vector<8x128xf32>
    %c0_156 = arith.constant 0 : index
    %c0_157 = arith.constant 0 : index
    %390 = vector.load %arg22[%c0_156, %c0_157] : memref<1x128xf32, #tpu.memory_space<vmem>>, vector<1x128xf32>
    %391 = vector.broadcast %390 : vector<1x128xf32> to vector<8x128xf32>
    %392 = arith.addf %389, %391 : vector<8x128xf32>
    %c0_158 = arith.constant 0 : index
    %c0_159 = arith.constant 0 : index
    %393 = vector.load %arg23[%c0_158, %c0_159] : memref<8x128xf32, #tpu.memory_space<vmem>>, vector<8x128xf32>
    tpu.vector_store %arg23[%c0_158, %c0_159], %392 {strides = array<i32>} : memref<8x128xf32, #tpu.memory_space<vmem>>, vector<8x128xf32>,
    return
  }
  func.func @transform_0(%arg0: i32) -> (i32, i32) {
    %c0_i32 = arith.constant 0 : i32
    %c0_i32_0 = arith.constant 0 : i32
    return %arg0, %c0_i32 : i32, i32
  }
  func.func @transform_1(%arg0: i32) -> (i32, i32) {
    %c0_i32 = arith.constant 0 : i32
    %c0_i32_0 = arith.constant 0 : i32
    %c0_i32_1 = arith.constant 0 : i32
    return %c0_i32, %c0_i32_0 : i32, i32
  }
  func.func @transform_2(%arg0: i32) -> (i32, i32, i32) {
    %c0_i32 = arith.constant 0 : i32
    %c0_i32_0 = arith.constant 0 : i32
    %c0_i32_1 = arith.constant 0 : i32
    %c0_i32_2 = arith.constant 0 : i32
    return %c0_i32, %c0_i32_0, %c0_i32_1 : i32, i32, i32
  }
  func.func @transform_3(%arg0: i32) -> (i32, i32, i32) {
    %c0_i32 = arith.constant 0 : i32
    %c0_i32_0 = arith.constant 0 : i32
    %c0_i32_1 = arith.constant 0 : i32
    %c0_i32_2 = arith.constant 0 : i32
    return %c0_i32, %c0_i32_0, %c0_i32_1 : i32, i32, i32
  }
  func.func @transform_4(%arg0: i32) -> (i32, i32, i32) {
    %c0_i32 = arith.constant 0 : i32
    %c0_i32_0 = arith.constant 0 : i32
    %c0_i32_1 = arith.constant 0 : i32
    %c0_i32_2 = arith.constant 0 : i32
    return %c0_i32, %c0_i32_0, %c0_i32_1 : i32, i32, i32
  }
  func.func @transform_5(%arg0: i32) -> (i32, i32, i32) {
    %c0_i32 = arith.constant 0 : i32
    %c0_i32_0 = arith.constant 0 : i32
    %c0_i32_1 = arith.constant 0 : i32
    %c0_i32_2 = arith.constant 0 : i32
    return %c0_i32, %c0_i32_0, %c0_i32_1 : i32, i32, i32
  }
  func.func @transform_6(%arg0: i32) -> (i32, i32, i32) {
    %c0_i32 = arith.constant 0 : i32
    %c0_i32_0 = arith.constant 0 : i32
    %c0_i32_1 = arith.constant 0 : i32
    %c0_i32_2 = arith.constant 0 : i32
    return %c0_i32, %c0_i32_0, %c0_i32_1 : i32, i32, i32
  }
  func.func @transform_7(%arg0: i32) -> (i32, i32, i32) {
    %c0_i32 = arith.constant 0 : i32
    %c0_i32_0 = arith.constant 0 : i32
    %c0_i32_1 = arith.constant 0 : i32
    %c0_i32_2 = arith.constant 0 : i32
    return %c0_i32, %c0_i32_0, %c0_i32_1 : i32, i32, i32
  }
  func.func @transform_8(%arg0: i32) -> (i32, i32, i32) {
    %c0_i32 = arith.constant 0 : i32
    %c0_i32_0 = arith.constant 0 : i32
    %c0_i32_1 = arith.constant 0 : i32
    %c0_i32_2 = arith.constant 0 : i32
    return %c0_i32, %c0_i32_0, %c0_i32_1 : i32, i32, i32
  }
  func.func @transform_9(%arg0: i32) -> (i32, i32, i32) {
    %c0_i32 = arith.constant 0 : i32
    %c0_i32_0 = arith.constant 0 : i32
    %c0_i32_1 = arith.constant 0 : i32
    %c0_i32_2 = arith.constant 0 : i32
    return %c0_i32, %c0_i32_0, %c0_i32_1 : i32, i32, i32
  }
  func.func @transform_10(%arg0: i32) -> (i32, i32, i32) {
    %c0_i32 = arith.constant 0 : i32
    %c0_i32_0 = arith.constant 0 : i32
    %c0_i32_1 = arith.constant 0 : i32
    %c0_i32_2 = arith.constant 0 : i32
    return %c0_i32, %c0_i32_0, %c0_i32_1 : i32, i32, i32
  }
  func.func @transform_11(%arg0: i32) -> (i32, i32, i32) {
    %c0_i32 = arith.constant 0 : i32
    %c0_i32_0 = arith.constant 0 : i32
    %c0_i32_1 = arith.constant 0 : i32
    %c0_i32_2 = arith.constant 0 : i32
    return %c0_i32, %c0_i32_0, %c0_i32_1 : i32, i32, i32
  }
  func.func @transform_12(%arg0: i32) -> (i32, i32, i32) {
    %c0_i32 = arith.constant 0 : i32
    %c0_i32_0 = arith.constant 0 : i32
    %c0_i32_1 = arith.constant 0 : i32
    %c0_i32_2 = arith.constant 0 : i32
    return %c0_i32, %c0_i32_0, %c0_i32_1 : i32, i32, i32
  }
  func.func @transform_13(%arg0: i32) -> (i32, i32, i32) {
    %c0_i32 = arith.constant 0 : i32
    %c0_i32_0 = arith.constant 0 : i32
    %c0_i32_1 = arith.constant 0 : i32
    %c0_i32_2 = arith.constant 0 : i32
    return %c0_i32, %c0_i32_0, %c0_i32_1 : i32, i32, i32
  }
  func.func @transform_14(%arg0: i32) -> (i32, i32, i32) {
    %c0_i32 = arith.constant 0 : i32
    %c0_i32_0 = arith.constant 0 : i32
    %c0_i32_1 = arith.constant 0 : i32
    %c0_i32_2 = arith.constant 0 : i32
    return %c0_i32, %c0_i32_0, %c0_i32_1 : i32, i32, i32
  }
  func.func @transform_15(%arg0: i32) -> (i32, i32, i32) {
    %c0_i32 = arith.constant 0 : i32
    %c0_i32_0 = arith.constant 0 : i32
    %c0_i32_1 = arith.constant 0 : i32
    %c0_i32_2 = arith.constant 0 : i32
    return %c0_i32, %c0_i32_0, %c0_i32_1 : i32, i32, i32
  }
  func.func @transform_16(%arg0: i32) -> (i32, i32, i32) {
    %c0_i32 = arith.constant 0 : i32
    %c0_i32_0 = arith.constant 0 : i32
    %c0_i32_1 = arith.constant 0 : i32
    %c0_i32_2 = arith.constant 0 : i32
    return %c0_i32, %c0_i32_0, %c0_i32_1 : i32, i32, i32
  }
  func.func @transform_17(%arg0: i32) -> (i32, i32, i32) {
    %c0_i32 = arith.constant 0 : i32
    %c0_i32_0 = arith.constant 0 : i32
    %c0_i32_1 = arith.constant 0 : i32
    %c0_i32_2 = arith.constant 0 : i32
    return %c0_i32, %c0_i32_0, %c0_i32_1 : i32, i32, i32
  }
  func.func @transform_18(%arg0: i32) -> (i32, i32) {
    %c0_i32 = arith.constant 0 : i32
    %c0_i32_0 = arith.constant 0 : i32
    %c0_i32_1 = arith.constant 0 : i32
    return %c0_i32, %c0_i32_0 : i32, i32
  }
  func.func @transform_19(%arg0: i32) -> (i32, i32) {
    %c0_i32 = arith.constant 0 : i32
    %c0_i32_0 = arith.constant 0 : i32
    %c0_i32_1 = arith.constant 0 : i32
    return %c0_i32, %c0_i32_0 : i32, i32
  }
  func.func @transform_20(%arg0: i32) -> (i32, i32) {
    %c0_i32 = arith.constant 0 : i32
    %c0_i32_0 = arith.constant 0 : i32
    %c0_i32_1 = arith.constant 0 : i32
    return %c0_i32, %c0_i32_0 : i32, i32
  }
  func.func @transform_21(%arg0: i32) -> (i32, i32) {
    %c0_i32 = arith.constant 0 : i32
    %c0_i32_0 = arith.constant 0 : i32
    %c0_i32_1 = arith.constant 0 : i32
    return %c0_i32, %c0_i32_0 : i32, i32
  }
  func.func @transform_22(%arg0: i32) -> (i32, i32) {
    %c0_i32 = arith.constant 0 : i32
    %c0_i32_0 = arith.constant 0 : i32
    return %arg0, %c0_i32 : i32, i32
  }
}

</mosaic_0001>

<bundles_post_ra>
// kernel: tpu_custom_call.1
= control target key start
LH: loop header
LB: loop body
LE: loop exit
PB: predicated region body
PF: predicated region fallthrough
CT: control target
= control target key end

     0   :  { %s9423_s0 = inlined_call_operand.hbm [shape: s32[8,8], index: 0, kind: input, shape index: {}]   ;;  %s9424_s1 = inlined_call_operand.hbm [shape: f32[10,64], index: 1, kind: input, shape index: {}]   ;;  %s9425_s2 = inlined_call_operand.vmem [shape: bf16[2,64,64], index: 2, kind: input, shape index: {}]   ;;  %s9426_s3 = inlined_call_operand.vmem [shape: bf16[2,64,64], index: 3, kind: input, shape index: {}]   ;;  %s9427_s4 = inlined_call_operand.vmem [shape: bf16[2,64,64], index: 4, kind: input, shape index: {}]   ;;  %s9428_s5 = inlined_call_operand.vmem [shape: f32[2,1,64], index: 5, kind: input, shape index: {}]   ;;  %s9429_s6 = inlined_call_operand.vmem [shape: f32[2,1,64], index: 6, kind: input, shape index: {}]   ;;  %s9430_s7 = inlined_call_operand.vmem [shape: f32[2,1,64], index: 7, kind: input, shape index: {}]   ;;  %s9431_s8 = inlined_call_operand.vmem [shape: bf16[2,64,64], index: 8, kind: input, shape index: {}]   ;;  %s9432_s9 = inlined_call_operand.vmem [shape: f32[2,1,64], index: 9, kind: input, shape index: {}]   ;;  %s9433_s10 = inlined_call_operand.vmem [shape: f32[2,1,64], index: 10, kind: input, shape index: {}]   ;;  %s9434_s11 = inlined_call_operand.vmem [shape: f32[2,1,64], index: 11, kind: input, shape index: {}]   ;;  %s9435_s12 = inlined_call_operand.vmem [shape: f32[2,1,64], index: 12, kind: input, shape index: {}]   ;;  %s9436_s13 = inlined_call_operand.vmem [shape: f32[2,1,64], index: 13, kind: input, shape index: {}]   ;;  %s9437_s14 = inlined_call_operand.vmem [shape: bf16[2,64,256], index: 14, kind: input, shape index: {}]   ;;  %s9438_s15 = inlined_call_operand.vmem [shape: f32[2,1,256], index: 15, kind: input, shape index: {}]   ;;  %s9439_s16 = inlined_call_operand.vmem [shape: bf16[2,256,64], index: 16, kind: input, shape index: {}]   ;;  %s9440_s17 = inlined_call_operand.vmem [shape: f32[2,1,64], index: 17, kind: input, shape index: {}]   ;;  %s9441_s18 = inlined_call_operand.vmem [shape: f32[1,64], index: 18, kind: input, shape index: {}]   ;;  %s9442_s19 = inlined_call_operand.<no memory space> [shape: f32[1,1], index: 19, kind: input, shape index: {}]   ;;  %s9443_s20 = inlined_call_operand.hbm [shape: f32[64,128], index: 20, kind: input, shape index: {}]   ;;  %s9444_s21 = inlined_call_operand.vmem [shape: f32[1,128], index: 21, kind: input, shape index: {}]   ;;  %s9445_s22 = inlined_call_operand.hbm [shape: f32[8,128], index: 22, kind: output, shape index: {}]  }
   0x1   :  { %9471 = sst [smem:[#allocation32_spill]] %s9423_s0  ;;  %v27_v0 = vstv %s9442_s19 }
   0x2   :  { %9472 = sst [smem:[#allocation33_spill]] %s9424_s1  ;;  %28 = vst [vmem:[#allocation2] sm:$0x1] %v27_v0 }
   0x3   :  { %9473 = sst [smem:[#allocation34_spill]] %s9425_s2 }
   0x4   :  { %9474 = sst [smem:[#allocation35_spill]] %s9426_s3 }
   0x5   :  { %9475 = sst [smem:[#allocation36_spill]] %s9427_s4 }
   0x6   :  { %9476 = sst [smem:[#allocation37_spill]] %s9428_s5 }
   0x7   :  { %9477 = sst [smem:[#allocation38_spill]] %s9429_s6 }
   0x8   :  { %29 = vsyncpa [#allocation4], 0 }
   0x9   :  { %30 = vsyncpa [#allocation7], 0 }
   0xa   :  { %31 = vsyncpa [#allocation5], 0  ;;  %s7583_s29 = smov [#allocation6]  }
   0xb   :  { %s47_s30 = sshll.u32 %s7583_s29, 4  ;;  %s48_s30 = int_to_ptr.vmem [resolvable:$true] %s47_s30 }
   0xc   :  { %s7505_s4 = scalar_lea.vmem %s48_s30, 256  ;;  %p7510_p1 = scmp.lt.s32.totalorder %s48_s30, %s48_s30 }
   0xd   :  { %p7506_p0 = scmp.ne.s32.totalorder %s48_s30, %s7505_s4  ;;  %p7511_p2 = scmp.lt.s32.totalorder %s7505_s4, %s7505_s4 }
   0xf   :  { %p7512_p3 = por %p7511_p2, %p7510_p1 }
  0x11   :  { %p7513_p4 = pnand %p7512_p3, %p7506_p0 }
  0x13   :  { %7516 = shalt.err (!%p7513_p4)
}
  0x14   :  { %s7584_s0 = smov 128   ;;  %s7585_s23 = smov 8  }
  0x15   :  { %s9478_s24 = sld [smem:[#allocation33_spill]]  ;;  %s7586_s19 = smov [#allocation3]  }
  0x16   :  { %s38_s6 = sshll.u32 %s7586_s19, 4  ;;  %s7587_s25 = smov [#allocation8]   ;;  %s39_s6 = int_to_ptr.vmem [resolvable:$true] %s38_s6 }
  0x17   :  { %s95_s26 = sshll.u32 %s7587_s25, 4  ;;  %s7525_s2 = scalar_lea.vmem %s39_s6, 128  ;;  %s96_s26 = int_to_ptr.vmem [resolvable:$true] %s95_s26 }
  0x18   :  { %p7526_p5 = scmp.ne.s32.totalorder %s39_s6, %s7525_s2  ;;  %p7530_p6 = scmp.lt.s32.totalorder %s39_s6, %s39_s6 }
  0x19   :  { %p7531_p7 = scmp.lt.s32.totalorder %s7525_s2, %s7525_s2 }
  0x1b   :  { %53 = dma.hbm_to_vmem [thread:$0]  %s9478_s24, 256, %s48_s30, [#allocation7], %s7584_s0, %s7584_s0, %s7585_s23  }
  0x1c   :  { %p7532_p8 = por %p7531_p7, %p7530_p6 }
  0x1e   :  { %p7533_p9 = pnand %p7532_p8, %p7526_p5 }
  0x20   :  { %7536 = shalt.err (!%p7533_p9)
}
  0x21   :  { %s9479_s28 = sld [smem:[#allocation32_spill]]  ;;  %s7545_s29 = scalar_lea.vmem %s96_s26, 1024 }
  0x22   :  { %p7546_p10 = scmp.ne.s32.totalorder %s96_s26, %s7545_s29  ;;  %p7550_p11 = scmp.lt.s32.totalorder %s96_s26, %s96_s26 }
  0x23   :  { %p7551_p12 = scmp.lt.s32.totalorder %s7545_s29, %s7545_s29 }
  0x25   :  { %p7552_p13 = por %p7551_p12, %p7550_p11 }
  0x27   :  { %41 = dma.hbm_to_vmem [thread:$0]  %s9479_s28, 128, %s39_s6, [#allocation4]  }
  0x28   :  { %p7553_p0 = pnand %p7552_p13, %p7546_p10 }
  0x2a   :  { %7556 = shalt.err (!%p7553_p0)
}
  0x2b   :  { %101 = dma.hbm_to_vmem [thread:$0]  %s9443_s20, 1024, %s96_s26, [#allocation7], %s7584_s0, %s7584_s0, %s7585_s23  }
  0x2c   :  { %7577 = dma.done.wait [#allocation4], 128  }
  0x2d   :  { %7578 = vsyncadd [#allocation4], 4294967168 }
  0x2e   :  { %7579 = dma.done.wait [#allocation7], 1280  }
  0x2f   :  { %7580 = vsyncadd [#allocation7], 4294966016  ;;  %v9451_v1 = vlaneseq  ;;  %v7726_v4 = vld [vmem:[#allocation3] sm:$0xff]  ;;  %v9452_v6 = vmov 0.0   ;;  %s9489_s23 = sld [smem:[#allocation34_spill]]  ;;  %vm1001_vm10 = vcmask 523264  }
  0x30   :  { %9481 = vst [vmem:[#allocation14_spill] sm:$0xff] %v7726_v4  ;;  %vm247_vm0 = vcmp.eq.s32.totalorder %v7726_v4, 1  ;;  %vm115_vm1 = vcmp.eq.s32.totalorder %v7726_v4, 0  ;;  %vm326_vm2 = vcmp.eq.s32.totalorder %v7726_v4, 2  ;;  %vm405_vm3 = vcmp.eq.s32.totalorder %v7726_v4, 3  ;;  %s9490_s24 = sld [smem:[#allocation36_spill]] }
  0x31   :  { %v7721_v2 = vshrl.u32 %v9451_v1, 7  ;;  %v7734_v7 = vsel %vm247_vm0, 1.0, %v9452_v6  ;;  %v7739_v8 = vsel %vm115_vm1, 1.0, %v9452_v6  ;;  %v7768_v20 = vsel %vm326_vm2, 1.0, %v9452_v6  ;;  %s9491_s5 = sld [smem:[#allocation35_spill]] }
  0x32   :  { %vm484_vm4 = vcmp.eq.s32.totalorder %v7726_v4, 4  ;;  %v7783_v25 = vsel %vm405_vm3, 1.0, %v9452_v6  ;;  %vm563_vm5 = vcmp.eq.s32.totalorder %v7726_v4, 5  ;;  %vm642_vm6 = vcmp.eq.s32.totalorder %v7726_v4, 6  ;;  %s9513_s4 = sld [smem:[#allocation38_spill]] }
  0x33   :  { %9480 = vst [vmem:[#allocation13_spill] sm:$0xff] %v7721_v2  ;;  %v7724_v3 = vsub.s32 0, %v7721_v2  ;;  %v7731_v5 = vsub.s32 1, %v7721_v2  ;;  %v7742_v9 = vsub.s32 3, %v7721_v2  ;;  %v7753_v14 = vsub.s32 2, %v7721_v2  ;;  %s9514_s1 = sld [smem:[#allocation37_spill]] }
  0x34   :  { %v7761_v17 = vsub.s32 5, %v7721_v2  ;;  %v7771_v21 = vsub.s32 4, %v7721_v2  ;;  %v7775_v22 = vsub.s32 7, %v7721_v2  ;;  %v7790_v28 = vsel %vm484_vm4, 1.0, %v9452_v6 }
  0x35   :  { %9482 = vst [vmem:[#allocation15_spill] sm:$0xff] %v7731_v5  ;;  %9483 = vst [vmem:[#allocation16_spill] sm:$0xff] %v7742_v9  ;;  %v253_v10 = vrot.slane %v7734_v7, %v7724_v3  ;;  %v174_v11 = vrot.slane %v7739_v8, %v7724_v3  ;;  %v260_v12 = vrot.slane %v7734_v7, %v7731_v5  ;;  %v7814_v39 = vsel %vm563_vm5, 1.0, %v9452_v6 }
  0x36   :  { %v181_v13 = vrot.slane %v7739_v8, %v7731_v5  ;;  %9484 = vst [vmem:[#allocation17_spill] sm:$0xff] %v7753_v14  ;;  %v195_v15 = vrot.slane %v7739_v8, %v7742_v9  ;;  %v188_v16 = vrot.slane %v7739_v8, %v7753_v14  ;;  %9485 = vst [vmem:[#allocation18_spill] sm:$0xff] %v7761_v17  ;;  %v7817_v40 = vsub.s32 6, %v7721_v2 }
  0x37   :  { %255 = vbcast.lane.b32.xlu1 %v253_v10, 256  ;;  %176 = vbcast.lane.b32.xlu0 %v174_v11, 256  ;;  %v274_v18 = vrot.slane %v7734_v7, %v7742_v9  ;;  %v267_v19 = vrot.slane %v7734_v7, %v7753_v14  ;;  %9486 = vst [vmem:[#allocation19_spill] sm:$0xff] %v7771_v21  ;;  %9487 = vst [vmem:[#allocation20_spill] sm:$0xff] %v7775_v22  ;;  %v7845_v53 = vsel %vm642_vm6, 1.0, %v9452_v6  ;;  %vm7589_vm11 = vmmov 0  }
  0x38   :  { %v339_v23 = vrot.slane %v7768_v20, %v7731_v5  ;;  %v332_v24 = vrot.slane %v7768_v20, %v7724_v3  ;;  %v353_v26 = vrot.slane %v7768_v20, %v7742_v9  ;;  %v346_v27 = vrot.slane %v7768_v20, %v7753_v14  ;;  %9488 = vst [vmem:[#allocation21_spill] sm:$0xff] %v7817_v40 }
  0x39   :  { %v418_v29 = vrot.slane %v7783_v25, %v7731_v5  ;;  %v411_v30 = vrot.slane %v7783_v25, %v7724_v3  ;;  %v432_v31 = vrot.slane %v7783_v25, %v7742_v9  ;;  %v425_v32 = vrot.slane %v7783_v25, %v7753_v14 }
  0x3a   :  { %v497_v33 = vrot.slane %v7790_v28, %v7731_v5  ;;  %v490_v34 = vrot.slane %v7790_v28, %v7724_v3  ;;  %v511_v35 = vrot.slane %v7790_v28, %v7742_v9  ;;  %v504_v36 = vrot.slane %v7790_v28, %v7753_v14 }
  0x3b   :  { %262 = vbcast.lane.b32.xlu1 %v260_v12, 256  ;;  %183 = vbcast.lane.b32.xlu0 %v181_v13, 256  ;;  %v209_v37 = vrot.slane %v7739_v8, %v7761_v17  ;;  %v202_v38 = vrot.slane %v7739_v8, %v7771_v21  ;;  %v288_v41 = vrot.slane %v7734_v7, %v7761_v17  ;;  %vm721_vm7 = vcmp.eq.s32.totalorder %v7726_v4, 7 }
  0x3c   :  { %v281_v42 = vrot.slane %v7734_v7, %v7771_v21  ;;  %v576_v43 = vrot.slane %v7814_v39, %v7731_v5  ;;  %v569_v44 = vrot.slane %v7814_v39, %v7724_v3  ;;  %v223_v45 = vrot.slane %v7739_v8, %v7775_v22 }
  0x3d   :  { %v216_v46 = vrot.slane %v7739_v8, %v7817_v40  ;;  %v302_v47 = vrot.slane %v7734_v7, %v7775_v22  ;;  %v295_v48 = vrot.slane %v7734_v7, %v7817_v40  ;;  %v590_v49 = vrot.slane %v7814_v39, %v7742_v9 }
  0x3e   :  { %v583_v50 = vrot.slane %v7814_v39, %v7753_v14  ;;  %v367_v51 = vrot.slane %v7768_v20, %v7761_v17  ;;  %v360_v52 = vrot.slane %v7768_v20, %v7771_v21  ;;  %v655_v54 = vrot.slane %v7845_v53, %v7731_v5 }
  0x3f   :  { %197 = vbcast.lane.b32.xlu1 %v195_v15, 256  ;;  %190 = vbcast.lane.b32.xlu0 %v188_v16, 256  ;;  %v648_v55 = vrot.slane %v7845_v53, %v7724_v3  ;;  %v381_v56 = vrot.slane %v7768_v20, %v7775_v22  ;;  %v374_v57 = vrot.slane %v7768_v20, %v7817_v40  ;;  %v7865_v62 = vsel %vm721_vm7, 1.0, %v9452_v6  ;;  %v7264_v20 = vld [vmem:[%s9490_s24 + $0x18] sm:$0xff]  }
  0x40   :  { %v669_v58 = vrot.slane %v7845_v53, %v7742_v9  ;;  %v662_v59 = vrot.slane %v7845_v53, %v7753_v14  ;;  %v446_v60 = vrot.slane %v7783_v25, %v7761_v17  ;;  %v439_v61 = vrot.slane %v7783_v25, %v7771_v21  ;;  %6976 = vmatprep.subr.bf16.mxu0 %v7264_v20 }
  0x41   :  { %v734_v63 = vrot.slane %v7865_v62, %v7731_v5  ;;  %v727_v0 = vrot.slane %v7865_v62, %v7724_v3  ;;  %v460_v7 = vrot.slane %v7783_v25, %v7775_v22  ;;  %v453_v8 = vrot.slane %v7783_v25, %v7817_v40  ;;  %6977 = vmatpush3.bf16.msra.mxu0 %v7264_v20  ;;  %v7265_v25 = vld [vmem:[%s9489_s23 + $0x10] sm:$0xff]  }
  0x42   :  { %v748_v10 = vrot.slane %v7865_v62, %v7742_v9  ;;  %v741_v11 = vrot.slane %v7865_v62, %v7753_v14  ;;  %vm800_vm8 = vcmp.eq.s32.totalorder %v7726_v4, 8  ;;  %v525_v12 = vrot.slane %v7790_v28, %v7761_v17 }
  0x43   :  { %276 = vbcast.lane.b32.xlu1 %v274_v18, 256  ;;  %269 = vbcast.lane.b32.xlu0 %v267_v19, 256  ;;  %v518_v13 = vrot.slane %v7790_v28, %v7771_v21  ;;  %v7885_v15 = vsel %vm800_vm8, 1.0, %v9452_v6  ;;  %v7263_v19 = vld [vmem:[%s9489_s23 + $0x18] sm:$0xff]   ;;  %vm879_vm9 = vcmp.eq.s32.totalorder %v7726_v4, 9  ;;  %vm1951_vm12 = vcmask 64512  }
  0x44   :  { %v813_v16 = vrot.slane %v7885_v15, %v7731_v5  ;;  %v806_v18 = vrot.slane %v7885_v15, %v7724_v3  ;;  %6944 = vmatprep.subr.bf16.mxu1 %v7263_v19  ;;  %vm6014_vm13 = vcmask 1041409   ;;  %vm6016_vm14 = vcmask 1042434  }
  0x45   :  { %6945 = vmatpush3.bf16.msra.mxu1 %v7263_v19  ;;  %vm6018_vm15 = vcmask 1043459   ;;  %vm6020_vm0 = vcmask 1044484   ;;  %vm6024_vm2 = vcmask 1046534   ;;  %vm6026_vm3 = vcmask 1047559  }
  0x46   :  { %6946 = vmatprep.subr.bf16.mxu1 %v7265_v25 }
  0x47   :  { %341 = vbcast.lane.b32.xlu1 %v339_v23, 256  ;;  %334 = vbcast.lane.b32.xlu0 %v332_v24, 256  ;;  %v539_v23 = vrot.slane %v7790_v28, %v7775_v22  ;;  %v532_v24 = vrot.slane %v7790_v28, %v7817_v40  ;;  %v820_v28 = vrot.slane %v7885_v15, %v7753_v14 }
  0x49   :  { %6947 = vmatpush3.bf16.msra.mxu1 %v7265_v25 }
  0x4b   :  { %355 = vbcast.lane.b32.xlu1 %v353_v26, 256  ;;  %348 = vbcast.lane.b32.xlu0 %v346_v27, 256  ;;  %v7266_v26 = vld [vmem:[%s9490_s24 + $0x10] sm:$0xff]   ;;  %v827_v27 = vrot.slane %v7885_v15, %v7742_v9 }
  0x4c   :  { %6978 = vmatprep.subr.bf16.mxu0 %v7266_v26 }
  0x4d   :  { %6979 = vmatpush3.bf16.msra.mxu0 %v7266_v26 }
  0x4f   :  { %420 = vbcast.lane.b32.xlu1 %v418_v29, 256  ;;  %413 = vbcast.lane.b32.xlu0 %v411_v30, 256  ;;  %v7267_v29 = vld [vmem:[%s9489_s23 + $0x8] sm:$0xff]  }
  0x50   :  { %v7268_v30 = vld [vmem:[%s9490_s24 + $0x8] sm:$0xff]   ;;  %6948 = vmatprep.subr.bf16.mxu1 %v7267_v29 }
  0x51   :  { %6980 = vmatprep.subr.bf16.mxu0 %v7268_v30  ;;  %6949 = vmatpush3.bf16.msra.mxu1 %v7267_v29 }
  0x52   :  { %6981 = vmatpush3.bf16.msra.mxu0 %v7268_v30 }
  0x53   :  { %434 = vbcast.lane.b32.xlu1 %v432_v31, 256  ;;  %427 = vbcast.lane.b32.xlu0 %v425_v32, 256  ;;  %v604_v31 = vrot.slane %v7814_v39, %v7761_v17  ;;  %v597_v32 = vrot.slane %v7814_v39, %v7771_v21 }
  0x57   :  { %499 = vbcast.lane.b32.xlu1 %v497_v33, 256  ;;  %492 = vbcast.lane.b32.xlu0 %v490_v34, 256  ;;  %v7923_v33 = vsel %vm879_vm9, 1.0, %v9452_v6  ;;  %v7269_v34 = vld [vmem:[%s9489_s23] sm:$0xff]  }
  0x58   :  { %6950 = vmatprep.subr.bf16.mxu1 %v7269_v34  ;;  %v920_v20 = vrot.slane %v7923_v33, %v7761_v17  ;;  %v927_v26 = vrot.slane %v7923_v33, %v7817_v40 }
  0x59   :  { %6951 = vmatpush3.bf16.msra.mxu1 %v7269_v34 }
  0x5b   :  { %513 = vbcast.lane.b32.xlu1 %v511_v35, 256  ;;  %506 = vbcast.lane.b32.xlu0 %v504_v36, 256  ;;  %v7270_v35 = vld [vmem:[%s9490_s24] sm:$0xff]   ;;  %v892_v36 = vrot.slane %v7923_v33, %v7731_v5 }
  0x5c   :  { %6982 = vmatprep.subr.bf16.mxu0 %v7270_v35 }
  0x5d   :  { %6983 = vmatpush3.bf16.msra.mxu0 %v7270_v35 }
  0x5e   :  { %7012 = vmatprep.subr.mxu0 %v9452_v6 }
  0x5f   :  { %211 = vbcast.lane.b32.xlu1 %v209_v37, 256  ;;  %204 = vbcast.lane.b32.xlu0 %v202_v38, 256  ;;  %v885_v37 = vrot.slane %v7923_v33, %v7724_v3 }
  0x63   :  { %290 = vbcast.lane.b32.xlu1 %v288_v41, 256  ;;  %283 = vbcast.lane.b32.xlu0 %v281_v42, 256  ;;  %v618_v42 = vrot.slane %v7814_v39, %v7775_v22 }
  0x67   :  { %578 = vbcast.lane.b32.xlu1 %v576_v43, 256  ;;  %571 = vbcast.lane.b32.xlu0 %v569_v44, 256  ;;  %v611_v43 = vrot.slane %v7814_v39, %v7817_v40  ;;  %v683_v39 = vrot.slane %v7845_v53, %v7761_v17 }
  0x6b   :  { %225 = vbcast.lane.b32.xlu1 %v223_v45, 256  ;;  %218 = vbcast.lane.b32.xlu0 %v216_v46, 256  ;;  %v906_v46 = vrot.slane %v7923_v33, %v7742_v9 }
  0x6f   :  { %304 = vbcast.lane.b32.xlu1 %v302_v47, 256  ;;  %297 = vbcast.lane.b32.xlu0 %v295_v48, 256  ;;  %v899_v47 = vrot.slane %v7923_v33, %v7753_v14 }
  0x73   :  { %592 = vbcast.lane.b32.xlu1 %v590_v49, 256  ;;  %585 = vbcast.lane.b32.xlu0 %v583_v50, 256  ;;  %v676_v50 = vrot.slane %v7845_v53, %v7771_v21 }
  0x77   :  { %369 = vbcast.lane.b32.xlu1 %v367_v51, 256  ;;  %362 = vbcast.lane.b32.xlu0 %v360_v52, 256 }
  0x7b   :  { %657 = vbcast.lane.b32.xlu1 %v655_v54, 256  ;;  %650 = vbcast.lane.b32.xlu0 %v648_v55, 256  ;;  %v697_v54 = vrot.slane %v7845_v53, %v7775_v22  ;;  %v690_v55 = vrot.slane %v7845_v53, %v7817_v40  ;;  %v776_v53 = vrot.slane %v7865_v62, %v7775_v22 }
  0x7f   :  { %383 = vbcast.lane.b32.xlu1 %v381_v56, 256  ;;  %376 = vbcast.lane.b32.xlu0 %v374_v57, 256 }
  0x83   :  { %671 = vbcast.lane.b32.xlu1 %v669_v58, 256  ;;  %664 = vbcast.lane.b32.xlu0 %v662_v59, 256  ;;  %v762_v58 = vrot.slane %v7865_v62, %v7761_v17  ;;  %v755_v59 = vrot.slane %v7865_v62, %v7771_v21 }
  0x87   :  { %448 = vbcast.lane.b32.xlu1 %v446_v60, 256  ;;  %441 = vbcast.lane.b32.xlu0 %v439_v61, 256 }
  0x8b   :  { %736 = vbcast.lane.b32.xlu1 %v734_v63, 256  ;;  %729 = vbcast.lane.b32.xlu0 %v727_v0, 256  ;;  %v769_v63 = vrot.slane %v7865_v62, %v7817_v40 }
  0x8f   :  { %462 = vbcast.lane.b32.xlu1 %v460_v7, 256  ;;  %455 = vbcast.lane.b32.xlu0 %v453_v8, 256  ;;  %v7991_v8 = vld [vmem:[%s9491_s5 + $0x18] sm:$0xff]  }
  0x90   :  { %6960 = vmatprep.subr.bf16.mxu1 %v7991_v8 }
  0x93   :  { %750 = vbcast.lane.b32.xlu1 %v748_v10, 256  ;;  %743 = vbcast.lane.b32.xlu0 %v741_v11, 256  ;;  %v841_v10 = vrot.slane %v7885_v15, %v7761_v17  ;;  %v834_v11 = vrot.slane %v7885_v15, %v7771_v21 }
  0x97   :  { %527 = vbcast.lane.b32.xlu1 %v525_v12, 256  ;;  %520 = vbcast.lane.b32.xlu0 %v518_v13, 256  ;;  %v855_v13 = vrot.slane %v7885_v15, %v7775_v22 }
  0x9b   :  { %815 = vbcast.lane.b32.xlu1 %v813_v16, 256  ;;  %808 = vbcast.lane.b32.xlu0 %v806_v18, 256  ;;  %v848_v16 = vrot.slane %v7885_v15, %v7817_v40  ;;  %v934_v15 = vrot.slane %v7923_v33, %v7775_v22 }
  0x9f   :  { %541 = vbcast.lane.b32.xlu1 %v539_v23, 256  ;;  %534 = vbcast.lane.b32.xlu0 %v532_v24, 256  ;;  %v913_v23 = vrot.slane %v7923_v33, %v7771_v21 }
  0xa3   :  { %829 = vbcast.lane.b32.xlu1 %v827_v27, 256  ;;  %822 = vbcast.lane.b32.xlu0 %v820_v28, 256 }
  0xa7   :  { %606 = vbcast.lane.b32.xlu1 %v604_v31, 256  ;;  %599 = vbcast.lane.b32.xlu0 %v597_v32, 256 }
  0xa9   :  { %v7935_v38 = vpop.permute.xlu1 %255  ;;  %v7937_v41 = vpop.permute.xlu0 %176 }
  0xab   :  { %894 = vbcast.lane.b32.xlu1 %v892_v36, 256  ;;  %887 = vbcast.lane.b32.xlu0 %v885_v37, 256 }
  0xad   :  { %v7944_v44 = vpop.permute.xlu1 %262  ;;  %v7946_v45 = vpop.permute.xlu0 %183 }
  0xaf   :  { %620 = vbcast.lane.b32.xlu1 %v618_v42, 256  ;;  %613 = vbcast.lane.b32.xlu0 %v611_v43, 256 }
  0xb1   :  { %v7952_v48 = vpop.permute.xlu1 %197  ;;  %v7954_v49 = vpop.permute.xlu0 %190 }
  0xb3   :  { %908 = vbcast.lane.b32.xlu1 %v906_v46, 256  ;;  %901 = vbcast.lane.b32.xlu0 %v899_v47, 256 }
  0xb5   :  { %v7960_v51 = vpop.permute.xlu1 %276  ;;  %v7962_v52 = vpop.permute.xlu0 %269 }
  0xb7   :  { %685 = vbcast.lane.b32.xlu1 %v683_v39, 256  ;;  %678 = vbcast.lane.b32.xlu0 %v676_v50, 256 }
  0xb9   :  { %v7968_v56 = vpop.permute.xlu1 %341  ;;  %v7970_v57 = vpop.permute.xlu0 %334 }
  0xbb   :  { %699 = vbcast.lane.b32.xlu1 %v697_v54, 256  ;;  %692 = vbcast.lane.b32.xlu0 %v690_v55, 256 }
  0xbd   :  { %v7976_v60 = vpop.permute.xlu1 %355  ;;  %v7978_v61 = vpop.permute.xlu0 %348 }
  0xbf   :  { %764 = vbcast.lane.b32.xlu1 %v762_v58, 256  ;;  %757 = vbcast.lane.b32.xlu0 %v755_v59, 256 }
  0xc1   :  { %v7984_v0 = vpop.permute.xlu1 %420  ;;  %v7986_v7 = vpop.permute.xlu0 %413 }
  0xc3   :  { %778 = vbcast.lane.b32.xlu1 %v776_v53, 256  ;;  %771 = vbcast.lane.b32.xlu0 %v769_v63, 256 }
  0xc5   :  { %v7998_v62 = vpop.permute.xlu1 %434  ;;  %v8000_v12 = vpop.permute.xlu0 %427 }
  0xc7   :  { %843 = vbcast.lane.b32.xlu1 %v841_v10, 256  ;;  %836 = vbcast.lane.b32.xlu0 %v834_v11, 256 }
  0xc9   :  { %v8006_v18 = vpop.permute.xlu1 %499  ;;  %v8008_v19 = vpop.permute.xlu0 %492 }
  0xcb   :  { %857 = vbcast.lane.b32.xlu1 %v855_v13, 256  ;;  %850 = vbcast.lane.b32.xlu0 %v848_v16, 256  ;;  %v167_v16 = vld [vmem:[#allocation6] sm:$0xff] }
  0xcc   :  { %v8077_v4 = vrot.slane %v167_v16, %v7753_v14  ;;  %v8080_v2 = vrot.slane %v167_v16, %v7742_v9 }
  0xcd   :  { %v8014_v24 = vpop.permute.xlu1 %513  ;;  %v8016_v25 = vpop.permute.xlu0 %506 }
  0xce   :  { %v390_v14 = vmul.f32 %v8077_v4, %v7968_v56  ;;  %v389_v9 = vmul.f32 %v8077_v4, %v7970_v57  ;;  %v8105_v56 = vrot.slane %v167_v16, %v7817_v40  ;;  %v8108_v57 = vrot.slane %v167_v16, %v7775_v22 }
  0xcf   :  { %922 = vbcast.lane.b32.xlu1 %v920_v20, 256  ;;  %915 = vbcast.lane.b32.xlu0 %v913_v23, 256 }
  0xd1   :  { %v8022_v27 = vpop.permute.xlu1 %211  ;;  %v8024_v28 = vpop.permute.xlu0 %204 }
  0xd3   :  { %936 = vbcast.lane.b32.xlu1 %v934_v15, 256  ;;  %929 = vbcast.lane.b32.xlu0 %v927_v26, 256  ;;  %v8067_v15 = vrot.slane %v167_v16, %v7731_v5  ;;  %v8070_v26 = vrot.slane %v167_v16, %v7724_v3 }
  0xd5   :  { %v8026_v29 = vpop.permute.xlu1 %290  ;;  %v8028_v30 = vpop.permute.xlu0 %283 }
  0xd9   :  { %v579_v31 = vpop.permute.xlu1 %578  ;;  %v572_v32 = vpop.permute.xlu0 %571 }
  0xdd   :  { %v8030_v34 = vpop.permute.xlu1 %225  ;;  %v8032_v35 = vpop.permute.xlu0 %218 }
  0xde   :  { %9492 = vst [vmem:[#allocation22_spill] sm:$0xff] %v8032_v35  ;;  %v168_v35 = vld [vmem:[#allocation6 + $0x8] sm:$0x3] }
  0xe1   :  { %v8034_v36 = vpop.permute.xlu1 %304  ;;  %v8036_v37 = vpop.permute.xlu0 %297 }
  0xe5   :  { %v8038_v33 = vpop.permute.xlu1 %592  ;;  %v8040_v42 = vpop.permute.xlu0 %585 }
  0xe9   :  { %v8042_v43 = vpop.permute.xlu1 %369  ;;  %v8044_v46 = vpop.permute.xlu0 %362 }
  0xea   :  { %9493 = vst [vmem:[#allocation23_spill] sm:$0xff] %v8044_v46 }
  0xed   :  { %v658_v47 = vpop.permute.xlu1 %657  ;;  %v651_v39 = vpop.permute.xlu0 %650 }
  0xf1   :  { %v8046_v50 = vpop.permute.xlu1 %383  ;;  %v8048_v54 = vpop.permute.xlu0 %376 }
  0xf2   :  { %9494 = vst [vmem:[#allocation24_spill] sm:$0xff] %v8046_v50  ;;  %9495 = vst [vmem:[#allocation25_spill] sm:$0xff] %v8048_v54  ;;  %v8095_v54 = vrot.slane %v167_v16, %v7771_v21 }
  0xf5   :  { %v8050_v55 = vpop.permute.xlu1 %671  ;;  %v8052_v58 = vpop.permute.xlu0 %664 }
  0xf9   :  { %v8054_v59 = vpop.permute.xlu1 %448  ;;  %v8056_v53 = vpop.permute.xlu0 %441 }
  0xfa   :  { %9496 = vst [vmem:[#allocation26_spill] sm:$0xff] %v8054_v59  ;;  %9497 = vst [vmem:[#allocation27_spill] sm:$0xff] %v8056_v53  ;;  %v311_v53 = vmul.f32 %v8067_v15, %v7944_v44  ;;  %v469_v44 = vmul.f32 %v8080_v2, %v7984_v0  ;;  %v547_v0 = vmul.f32 %v8095_v54, %v8008_v19 }
  0xfb   :  { %v234_v19 = vmul.f32 %v8070_v26, %v7952_v48  ;;  %v471_v48 = vmul.f32 %v8080_v2, %v7998_v62 }
  0xfd   :  { %v737_v63 = vpop.permute.xlu1 %736  ;;  %v730_v10 = vpop.permute.xlu0 %729 }
 0x101   :  { %v8058_v11 = vpop.permute.xlu1 %462  ;;  %v8060_v13 = vpop.permute.xlu0 %455 }
 0x102   :  { %9498 = vst [vmem:[#allocation28_spill] sm:$0xff] %v8058_v11  ;;  %9499 = vst [vmem:[#allocation29_spill] sm:$0xff] %v8060_v13  ;;  %v310_v13 = vmul.f32 %v8067_v15, %v7935_v38  ;;  %v231_v11 = vmul.f32 %v8070_v26, %v7937_v41  ;;  %v8098_v38 = vrot.slane %v167_v16, %v7761_v17 }
 0x103   :  { %v8126_v16 = vrot.slane %v168_v35, %v7731_v5  ;;  %v784_v5 = vmul.f32 %v8108_v57, %v730_v10 }
 0x104   :  { %v318_v41 = vadd.f32 %v310_v13, %v231_v11  ;;  %v8123_v13 = vrot.slane %v168_v35, %v7724_v3 }
 0x105   :  { %v8062_v20 = vpop.permute.xlu1 %750  ;;  %v8064_v23 = vpop.permute.xlu0 %743 }
 0x106   :  { %v397_v11 = vadd.f32 %v389_v9, %v318_v41  ;;  %v391_v41 = vmul.f32 %v8077_v4, %v7978_v61  ;;  %v785_v61 = vmul.f32 %v8108_v57, %v737_v63 }
 0x109   :  { %v8072_v1 = vpop.permute.xlu1 %527  ;;  %v8074_v6 = vpop.permute.xlu0 %520 }
 0x10a   :  { %9500 = vst [vmem:[#allocation30_spill] sm:$0xff] %v8072_v1  ;;  %9501 = vst [vmem:[#allocation31_spill] sm:$0xff] %v8074_v6  ;;  %v232_v1 = vmul.f32 %v8070_v26, %v7946_v45  ;;  %v468_v45 = vmul.f32 %v8080_v2, %v7986_v7  ;;  %v313_v7 = vmul.f32 %v8067_v15, %v7960_v51 }
 0x10b   :  { %v233_v51 = vmul.f32 %v8070_v26, %v7954_v49  ;;  %v470_v49 = vmul.f32 %v8080_v2, %v8000_v12 }
 0x10c   :  { %v319_v50 = vadd.f32 %v311_v53, %v232_v1  ;;  %v548_v1 = vmul.f32 %v8095_v54, %v8006_v18  ;;  %v312_v53 = vmul.f32 %v8067_v15, %v7962_v52  ;;  %v476_v9 = vadd.f32 %v468_v45, %v397_v11 }
 0x10d   :  { %v816_v59 = vpop.permute.xlu1 %815  ;;  %v809_v6 = vpop.permute.xlu0 %808  ;;  %v626_v18 = vmul.f32 %v8098_v38, %v572_v32  ;;  %v392_v52 = vmul.f32 %v8077_v4, %v7976_v60  ;;  %v705_v32 = vmul.f32 %v8105_v56, %v651_v39  ;;  %v321_v45 = vadd.f32 %v313_v7, %v234_v19 }
 0x10e   :  { %v398_v17 = vadd.f32 %v390_v14, %v319_v50  ;;  %v627_v50 = vmul.f32 %v8098_v38, %v579_v31  ;;  %v706_v31 = vmul.f32 %v8105_v56, %v658_v47  ;;  %v320_v11 = vadd.f32 %v312_v53, %v233_v51 }
 0x10f   :  { %v550_v47 = vmul.f32 %v8095_v54, %v8014_v24  ;;  %v549_v39 = vmul.f32 %v8095_v54, %v8016_v25  ;;  %v863_v63 = vmul.f32 %v8123_v13, %v809_v6  ;;  %v628_v24 = vmul.f32 %v8098_v38, %v8040_v42 }
 0x110   :  { %v477_v14 = vadd.f32 %v469_v44, %v398_v17  ;;  %v555_v44 = vadd.f32 %v547_v0, %v476_v9  ;;  %v399_v0 = vadd.f32 %v391_v41, %v320_v11 }
 0x111   :  { %v8110_v21 = vpop.permute.xlu1 %541  ;;  %v8112_v46 = vpop.permute.xlu0 %534 }
 0x112   :  { %v556_v17 = vadd.f32 %v548_v1, %v477_v14  ;;  %v634_v40 = vadd.f32 %v626_v18, %v555_v44  ;;  %v400_v1 = vadd.f32 %v392_v52, %v321_v45  ;;  %v864_v14 = vmul.f32 %v8123_v13, %v816_v59 }
 0x113   :  { %v478_v10 = vadd.f32 %v470_v49, %v399_v0  ;;  %v708_v52 = vmul.f32 %v8105_v56, %v8050_v55 }
 0x114   :  { %v635_v60 = vadd.f32 %v627_v50, %v556_v17  ;;  %v713_v12 = vadd.f32 %v705_v32, %v634_v40  ;;  %v479_v9 = vadd.f32 %v471_v48, %v400_v1  ;;  %v629_v50 = vmul.f32 %v8098_v38, %v8038_v33 }
 0x115   :  { %v830_v35 = vpop.permute.xlu1 %829  ;;  %v823_v22 = vpop.permute.xlu0 %822  ;;  %v557_v51 = vadd.f32 %v549_v39, %v478_v10  ;;  %v707_v40 = vmul.f32 %v8105_v56, %v8052_v58  ;;  %v786_v32 = vmul.f32 %v8108_v57, %v8064_v23 }
 0x116   :  { %v714_v53 = vadd.f32 %v706_v31, %v635_v60  ;;  %v792_v25 = vadd.f32 %v784_v5, %v713_v12  ;;  %v558_v19 = vadd.f32 %v550_v47, %v479_v9  ;;  %v787_v5 = vmul.f32 %v8108_v57, %v8062_v20 }
 0x117   :  { %v636_v42 = vadd.f32 %v628_v24, %v557_v51  ;;  %v866_v60 = vmul.f32 %v8123_v13, %v830_v35  ;;  %v236_v51 = vmul.f32 %v8070_v26, %v8022_v27  ;;  %v238_v27 = vmul.f32 %v8070_v26, %v8030_v34 }
 0x118   :  { %v793_v18 = vadd.f32 %v785_v61, %v714_v53  ;;  %v871_v17 = vadd.f32 %v863_v63, %v792_v25  ;;  %v637_v31 = vadd.f32 %v629_v50, %v558_v19  ;;  %v865_v61 = vmul.f32 %v8123_v13, %v823_v22  ;;  %v7272_v50 = vld [vmem:[%s9491_s5 + $0x10] sm:$0xff]   ;;  %v7273_v19 = vld [vmem:[%s9491_s5 + $0x8] sm:$0xff]  }
 0x119   :  { %v8150_v7 = vpop.permute.xlu1 %606  ;;  %v8152_v62 = vpop.permute.xlu0 %599  ;;  %v715_v49 = vadd.f32 %v707_v40, %v636_v42  ;;  %v315_v25 = vmul.f32 %v8067_v15, %v8026_v29  ;;  %v317_v40 = vmul.f32 %v8067_v15, %v8034_v36  ;;  %v394_v29 = vmul.f32 %v8077_v4, %v8042_v43  ;;  %v7274_v36 = vld [vmem:[%s9491_s5] sm:$0xff]   ;;  %v9506_v42 = vld [vmem:[#allocation26_spill] sm:$0xff] }
 0x11a   :  { %v872_v41 = vadd.f32 %v864_v14, %v793_v18  ;;  %v716_v58 = vadd.f32 %v708_v52, %v637_v31  ;;  %v314_v52 = vmul.f32 %v8067_v15, %v8028_v30  ;;  %v9502_v30 = vld [vmem:[#allocation23_spill] sm:$0xff]  ;;  %v9505_v31 = vld [vmem:[#allocation25_spill] sm:$0xff]  ;;  %v473_v34 = vmul.f32 %v8080_v2, %v9506_v42 }
 0x11b   :  { %v794_v1 = vadd.f32 %v786_v32, %v715_v49  ;;  %v9507_v32 = vld [vmem:[#allocation27_spill] sm:$0xff]  ;;  %v325_v49 = vadd.f32 %v317_v40, %v238_v27  ;;  %v631_v40 = vmul.f32 %v8098_v38, %v8150_v7 }
 0x11c   :  { %v795_v23 = vadd.f32 %v787_v5, %v716_v58  ;;  %v472_v58 = vmul.f32 %v8080_v2, %v9507_v32 }
 0x11d   :  { %v895_v59 = vpop.permute.xlu1 %894  ;;  %v888_v6 = vpop.permute.xlu0 %887  ;;  %v873_v53 = vadd.f32 %v865_v61, %v794_v1 }
 0x11e   :  { %v943_v44 = vmul.f32 %v8126_v16, %v895_v59  ;;  %v942_v33 = vmul.f32 %v8126_v16, %v888_v6  ;;  %v874_v39 = vadd.f32 %v866_v60, %v795_v23  ;;  %v9508_v23 = vld [vmem:[#allocation30_spill] sm:$0xff] }
 0x11f   :  { %v552_v1 = vmul.f32 %v8095_v54, %v9508_v23 }
 0x120   :  { %v8170_v55 = vadd.f32 %v943_v44, %v872_v41  ;;  %v8172_v45 = vadd.f32 %v942_v33, %v871_v17  ;;  %v235_v41 = vmul.f32 %v8070_v26, %v8024_v28  ;;  %v323_v17 = vadd.f32 %v315_v25, %v236_v51 }
 0x121   :  { %v8174_v11 = vpop.permute.xlu1 %620  ;;  %v8176_v48 = vpop.permute.xlu0 %613  ;;  %v393_v44 = vmul.f32 %v8077_v4, %v9502_v30  ;;  %v395_v28 = vmul.f32 %v8077_v4, %v9505_v31 }
 0x122   :  { %v8182_v20 = vpack.c.bf16 %v8170_v55, %v8172_v45  ;;  %v322_v5 = vadd.f32 %v314_v52, %v235_v41  ;;  %v402_v61 = vadd.f32 %v394_v29, %v323_v17  ;;  %v553_v29 = vmul.f32 %v8095_v54, %v8112_v46 }
 0x123   :  { %v633_v46 = vmul.f32 %v8098_v38, %v8174_v11 }
 0x124   :  { %6952 = vmatprep.mubr.msk.bf16.mxu1 %vm1001_vm10, %v8182_v20  ;;  %6984 = vmatprep.mubr.msk.bf16.mxu0 %vm1001_vm10, %v8182_v20  ;;  %v481_v52 = vadd.f32 %v473_v34, %v402_v61 }
 0x125   :  { %v909_v0 = vpop.permute.xlu1 %908  ;;  %v902_v47 = vpop.permute.xlu0 %901 }
 0x126   :  { %v945_v35 = vmul.f32 %v8126_v16, %v909_v0  ;;  %v944_v22 = vmul.f32 %v8126_v16, %v902_v47  ;;  %v401_v47 = vadd.f32 %v393_v44, %v322_v5  ;;  %v560_v41 = vadd.f32 %v552_v1, %v481_v52 }
 0x128   :  { %v8190_v12 = vadd.f32 %v945_v35, %v874_v39  ;;  %v8192_v14 = vadd.f32 %v944_v22, %v873_v53  ;;  %v9509_v39 = vld [vmem:[#allocation28_spill] sm:$0xff]  ;;  %v9510_v53 = vld [vmem:[#allocation29_spill] sm:$0xff]  ;;  %v9511_v22 = vld [vmem:[#allocation31_spill] sm:$0xff] }
 0x129   :  { %v686_v63 = vpop.permute.xlu1 %685  ;;  %v679_v9 = vpop.permute.xlu0 %678  ;;  %v474_v35 = vmul.f32 %v8080_v2, %v9510_v53 }
 0x12a   :  { %v8196_v10 = vpack.c.bf16 %v8190_v12, %v8192_v14  ;;  %v710_v17 = vmul.f32 %v8105_v56, %v686_v63  ;;  %v709_v7 = vmul.f32 %v8105_v56, %v679_v9 }
 0x12c   :  { %6953 = vmatmul.mubr.msk.bf16.vlgmr.msra.gmra.mxu1 %vm1001_vm10, %v8196_v10  ;;  %6985 = vmatmul.mubr.msk.bf16.vlgmr.msra.gmra.mxu0 %vm1001_vm10, %v8196_v10 }
 0x12d   :  { %v8205_v24 = vpop.permute.xlu1 %699  ;;  %v8207_v18 = vpop.permute.xlu0 %692  ;;  %6961 = vmatpush3.bf16.msra.mxu1 %v7991_v8  ;;  %v316_v8 = vmul.f32 %v8067_v15, %v8036_v37  ;;  %v9503_v37 = vld [vmem:[#allocation22_spill] sm:$0xff]  ;;  %v9504_v15 = vld [vmem:[#allocation24_spill] sm:$0xff] }
 0x12e   :  { %6962 = vmatprep.subr.bf16.mxu1 %v7272_v50  ;;  %v237_v43 = vmul.f32 %v8070_v26, %v9503_v37  ;;  %v396_v33 = vmul.f32 %v8077_v4, %v9504_v15  ;;  %v475_v4 = vmul.f32 %v8080_v2, %v9509_v39  ;;  %v630_v2 = vmul.f32 %v8098_v38, %v8152_v62 }
 0x12f   :  { %v9512_v15 = vmov 0.0   ;;  %v712_v9 = vmul.f32 %v8105_v56, %v8205_v24  ;;  %v711_v42 = vmul.f32 %v8105_v56, %v8207_v18 }
 0x130   :  { %v324_v60 = vadd.f32 %v316_v8, %v237_v43  ;;  %v404_v25 = vadd.f32 %v396_v33, %v325_v49  ;;  %v480_v8 = vadd.f32 %v472_v58, %v401_v47 }
 0x131   :  { %v765_v59 = vpop.permute.xlu1 %764  ;;  %v758_v6 = vpop.permute.xlu0 %757  ;;  %6963 = vmatpush3.bf16.msra.mxu1 %v7272_v50  ;;  %v551_v50 = vmul.f32 %v8095_v54, %v9511_v22 }
 0x132   :  { %6964 = vmatprep.subr.bf16.mxu1 %v7273_v19  ;;  %v403_v51 = vadd.f32 %v395_v28, %v324_v60  ;;  %v483_v44 = vadd.f32 %v475_v4, %v404_v25  ;;  %v789_v62 = vmul.f32 %v8108_v57, %v765_v59 }
 0x133   :  { %v559_v43 = vadd.f32 %v551_v50, %v480_v8 }
 0x134   :  { %v482_v37 = vadd.f32 %v474_v35, %v403_v51 }
 0x135   :  { %v779_v26 = vpop.permute.xlu1 %778  ;;  %v772_v0 = vpop.permute.xlu0 %771  ;;  %6965 = vmatpush3.bf16.msra.mxu1 %v7273_v19  ;;  %v554_v19 = vmul.f32 %v8095_v54, %v8110_v21  ;;  %v639_v21 = vadd.f32 %v631_v40, %v560_v41  ;;  %v632_v54 = vmul.f32 %v8098_v38, %v8176_v48  ;;  %v638_v31 = vadd.f32 %v630_v2, %v559_v43 }
 0x136   :  { %6966 = vmatprep.subr.bf16.mxu1 %v7274_v36  ;;  %v561_v33 = vadd.f32 %v553_v29, %v482_v37  ;;  %v791_v49 = vmul.f32 %v8108_v57, %v779_v26  ;;  %v790_v60 = vmul.f32 %v8108_v57, %v772_v0 }
 0x137   :  { %v562_v63 = vadd.f32 %v554_v19, %v483_v44  ;;  %v718_v28 = vadd.f32 %v710_v17, %v639_v21  ;;  %v717_v32 = vadd.f32 %v709_v7, %v638_v31 }
 0x138   :  { %v640_v59 = vadd.f32 %v632_v54, %v561_v33 }
 0x139   :  { %v844_v27 = vpop.permute.xlu1 %843  ;;  %v837_v30 = vpop.permute.xlu0 %836  ;;  %6967 = vmatpush3.bf16.msra.mxu1 %v7274_v36  ;;  %v788_v36 = vmul.f32 %v8108_v57, %v758_v6  ;;  %v641_v48 = vadd.f32 %v633_v46, %v562_v63  ;;  %v797_v58 = vadd.f32 %v789_v62, %v718_v28 }
 0x13a   :  { %6992 = vmatprep.subr.mxu1 %v9512_v15  ;;  %v868_v34 = vmul.f32 %v8123_v13, %v844_v27  ;;  %v867_v38 = vmul.f32 %v8123_v13, %v837_v30  ;;  %v719_v24 = vadd.f32 %v711_v42, %v640_v59  ;;  %v6464_v42 = vld [vmem:[%s9513_s4] ss:$0 sm:$0xff] }
 0x13b   :  { %v796_v6 = vadd.f32 %v788_v36, %v717_v32  ;;  %v720_v61 = vadd.f32 %v712_v9, %v641_v48  ;;  %v6455_v32 = vld [vmem:[%s9514_s1] ss:$0 sm:$0xff] }
 0x13c   :  { %v876_v23 = vadd.f32 %v868_v34, %v797_v58  ;;  %v798_v22 = vadd.f32 %v790_v60, %v719_v24 }
 0x13d   :  { %v858_v11 = vpop.permute.xlu1 %857  ;;  %v851_v5 = vpop.permute.xlu0 %850  ;;  %v875_v47 = vadd.f32 %v867_v38, %v796_v6  ;;  %v799_v35 = vadd.f32 %v791_v49, %v720_v61 }
 0x13e   :  { %v870_v56 = vmul.f32 %v8123_v13, %v858_v11  ;;  %v869_v39 = vmul.f32 %v8123_v13, %v851_v5 }
 0x140   :  { %v878_v57 = vadd.f32 %v870_v56, %v799_v35  ;;  %v877_v51 = vadd.f32 %v869_v39, %v798_v22 }
 0x141   :  { %v923_v18 = vpop.permute.xlu1 %922  ;;  %v916_v1 = vpop.permute.xlu0 %915 }
 0x142   :  { %v947_v4 = vmul.f32 %v8126_v16, %v923_v18  ;;  %v946_v53 = vmul.f32 %v8126_v16, %v916_v1 }
 0x144   :  { %v8281_v26 = vadd.f32 %v947_v4, %v876_v23  ;;  %v8283_v50 = vadd.f32 %v946_v53, %v875_v47 }
 0x145   :  { %v937_v0 = vpop.permute.xlu1 %936  ;;  %v930_v25 = vpop.permute.xlu0 %929 }
 0x146   :  { %v960_v52 = vpack.c.bf16 %v8281_v26, %v8283_v50  ;;  %v949_v40 = vmul.f32 %v8126_v16, %v937_v0  ;;  %v948_v13 = vmul.f32 %v8126_v16, %v930_v25  ;;  %v8312_v16 = vld [vmem:[%s9430_s7] ss:$0 sm:$0xff] }
 0x148   :  { %v8289_v8 = vadd.f32 %v949_v40, %v878_v57  ;;  %v8291_v19 = vadd.f32 %v948_v13, %v877_v51  ;;  %6956 = vmatprep.mubr.msk.bf16.mxu1 %vm1001_vm10, %v960_v52  ;;  %6988 = vmatprep.mubr.msk.bf16.mxu0 %vm1001_vm10, %v960_v52  ;;  %v7590_v51 = vmov 1966171168   ;;  %v9515_v13 = vld [vmem:[#allocation13_spill] sm:$0xff] }
 0x14a   :  { %v961_v29 = vpack.c.bf16 %v8289_v8, %v8291_v19 }
 0x14c   :  { %6957 = vmatmul.mubr.msk.bf16.gmra.mxu1 %vm1001_vm10, %v961_v29  ;;  %6989 = vmatmul.mubr.msk.bf16.gmra.mxu0 %vm1001_vm10, %v961_v29 }
 0x14d   :  { %6968 = vmatprep.mubr.msk.bf16.mxu1 %vm1001_vm10, %v8182_v20  ;;  %7014 = vmatprep.mubr.msk.f32.mxu0 %vm7589_vm11, %v9512_v15 }
 0x154   :  { %6969 = vmatmul.mubr.msk.bf16.vlgmr.msra.gmra.mxu1 %vm1001_vm10, %v8196_v10 }
 0x155   :  { %6972 = vmatprep.mubr.msk.bf16.mxu1 %vm1001_vm10, %v960_v52  ;;  %v120_v52 = vunpack.c.l.s4 %v7590_v51 }
 0x157   :  { %v121_v40 = vunpack.c.0.s8 %v120_v52 }
 0x15c   :  { %6973 = vmatmul.mubr.msk.bf16.gmra.mxu1 %vm1001_vm10, %v961_v29  ;;  %v124_v29 = vsub.s32 %v121_v40, %v9515_v13 }
 0x15d   :  { %6994 = vmatprep.mubr.msk.f32.mxu1 %vm7589_vm11, %v9512_v15 }
 0x1ec   :  { %v6986_v20 = vpop.f32.mrf.mxu0  ;;  %v6954_v27 = vpop.f32.mrf.mxu1 }
 0x1ed   :  { %v8315_v2 = vadd.f32 %v6986_v20, %v8312_v16  ;;  %v1057_v23 = vadd.f32 %v6954_v27, %v6455_v32 }
 0x1ee   :  { %v1256_v10 = vpop.f32.mrf.mxu0  ;;  %v1048_v30 = vpop.f32.mrf.mxu1 }
 0x1ef   :  { %v1049_v38 = vadd.f32 %v6455_v32, %v1048_v30  ;;  %v1257_v53 = vadd.f32 %v8312_v16, %v1256_v10  ;;  %v8386_v10 = vsel %vm115_vm1, -1e+30, %v9512_v15  ;;  %vm6022_vm1 = vcmask 1045509  }
 0x1f0   :  { %v6987_v41 = vpop.f32.mrf.mxu0  ;;  %v6955_v44 = vpop.f32.mrf.mxu1 }
 0x1f1   :  { %v8318_v17 = vadd.f32 %v6987_v41, %v8312_v16  ;;  %v1060_v39 = vadd.f32 %v6955_v44, %v6455_v32  ;;  %v125_v41 = vrot.slane %v8386_v10, %v124_v29  ;;  %v118_v44 = vcombine.high %v8386_v10, %v8386_v10 }
 0x1f2   :  { %v1051_v37 = vpop.f32.mrf.mxu1  ;;  %v8320_v43 = vpop.f32.mrf.mxu0 }
 0x1f3   :  { %v1052_v49 = vadd.f32 %v6455_v32, %v1051_v37  ;;  %v1260_v25 = vadd.f32 %v8312_v16, %v8320_v43  ;;  %v141_v27 = vrot.slane %v125_v41, %v124_v29  ;;  %v133_v30 = vcombine.high %v125_v41, %v125_v41 }
 0x1f5   :  { %v8392_v37 = vrot.slane %v141_v27, %v7724_v3  ;;  %v155_v43 = vrot.slane %v133_v30, %v124_v29 }
 0x20c   :  { %v6958_v7 = vpop.f32.mrf.mxu1  ;;  %v6990_v21 = vpop.f32.mrf.mxu0 }
 0x20d   :  { %v8323_v46 = vadd.f32 %v6990_v21, %v8312_v16  ;;  %v1073_v4 = vadd.f32 %v6958_v7, %v6455_v32  ;;  %v132_v7 = vrot.slane %v118_v44, %v124_v29 }
 0x20e   :  { %v1064_v54 = vpop.f32.mrf.mxu1  ;;  %v1272_v62 = vpop.f32.mrf.mxu0 }
 0x20f   :  { %v8326_v63 = vadd.f32 %v8312_v16, %v1272_v62  ;;  %v1065_v56 = vadd.f32 %v6455_v32, %v1064_v54 }
 0x210   :  { %v6959_v33 = vpop.f32.mrf.mxu1  ;;  %v6991_v31 = vpop.f32.mrf.mxu0 }
 0x211   :  { %v8329_v36 = vadd.f32 %v6991_v31, %v8312_v16  ;;  %v1076_v0 = vadd.f32 %v6959_v33, %v6455_v32  ;;  %v163_v33 = vcombine.high %v141_v27, %v141_v27 }
 0x212   :  { %v1067_v28 = vpop.f32.mrf.mxu1 }
 0x213   :  { %v1068_v22 = vadd.f32 %v6455_v32, %v1067_v28  ;;  %v8396_v28 = vrot.slane %v155_v43, %v7724_v3 }
 0x214   :  { %v6970_v9 = vpop.f32.mrf.mxu1 }
 0x215   :  { %v1161_v60 = vadd.f32 %v6970_v9, %v6464_v42  ;;  %v148_v9 = vrot.slane %v132_v7, %v124_v29 }
 0x216   :  { %v1152_v34 = vpop.f32.mrf.mxu1 }
 0x217   :  { %v1153_v11 = vadd.f32 %v6464_v42, %v1152_v34 }
 0x218   :  { %v6971_v5 = vpop.f32.mrf.mxu1 }
 0x219   :  { %6993 = vmatpush3.xpose.msk.msra.mxu1 %vm1001_vm10, %v1153_v11  ;;  %v1164_v18 = vadd.f32 %v6971_v5, %v6464_v42  ;;  %v8399_v5 = vpop.f32.mrf.mxu0 }
 0x21a   :  { %v1155_v48 = vpop.f32.mrf.mxu1  ;;  %6997 = vmatprep.subr.mxu1 %v9512_v15 }
 0x21b   :  { %v1156_v59 = vadd.f32 %v6464_v42, %v1155_v48  ;;  %v165_v48 = vcombine.high %v155_v43, %v155_v43 }
 0x21c   :  { %v6974_v58 = vpop.f32.mrf.mxu1  ;;  %6995 = vmatmul.mubr.msk.f32.vlgmr.msra.gmra.mxu1 %vm1001_vm10, %v1049_v38  ;;  %v8402_v38 = vrot.slane %v163_v33, %v7724_v3 }
 0x21d   :  { %6998 = vmatpush3.xpose.msk.msra.mxu1 %vm1001_vm10, %v1156_v59  ;;  %6999 = vmatprep.mubr.msk.f32.mxu1 %vm7589_vm11, %v9512_v15  ;;  %v1177_v1 = vadd.f32 %v6974_v58, %v6464_v42  ;;  %v8406_v58 = vrot.slane %v148_v9, %v7724_v3 }
 0x21e   :  { %v1168_v6 = vpop.f32.mrf.mxu1  ;;  %7002 = vmatprep.subr.mxu1 %v9512_v15 }
 0x21f   :  { %v1169_v61 = vadd.f32 %v6464_v42, %v1168_v6  ;;  %v134_v6 = vcombine.high %v132_v7, %v132_v7 }
 0x220   :  { %v6975_v24 = vpop.f32.mrf.mxu1  ;;  %7000 = vmatmul.mubr.msk.f32.vlgmr.msra.gmra.mxu1 %vm1001_vm10, %v1052_v49  ;;  %v164_v49 = vcombine.high %v148_v9, %v148_v9 }
 0x221   :  { %7003 = vmatpush3.xpose.msk.msra.mxu1 %vm1001_vm10, %v1161_v60  ;;  %7013 = vmatpush3.xpose.msk.msra.mxu0 %vm1001_vm10, %v1169_v61  ;;  %v1180_v57 = vadd.f32 %v6975_v24, %v6464_v42 }
 0x222   :  { %7004 = vmatprep.mubr.msk.f32.mxu1 %vm7589_vm11, %v9512_v15  ;;  %7007 = vmatprep.subr.mxu1 %v9512_v15  ;;  %v1171_v47 = vpop.f32.mrf.mxu1 }
 0x223   :  { %7022 = vmatprep.subr.mxu0 %v9512_v15  ;;  %v1172_v35 = vadd.f32 %v6464_v42, %v1171_v47  ;;  %v8410_v47 = vrot.slane %v165_v48, %v7724_v3 }
 0x224   :  { %7005 = vmatmul.mubr.msk.f32.vlgmr.msra.gmra.mxu1 %vm1001_vm10, %v1057_v23  ;;  %7015 = vmatmul.mubr.msk.f32.vlgmr.msra.gmra.mxu0 %vm1001_vm10, %v1065_v56 }
 0x225   :  { %7008 = vmatpush3.xpose.msk.msra.mxu1 %vm1001_vm10, %v1164_v18  ;;  %7023 = vmatpush3.xpose.msk.msra.mxu0 %vm1001_vm10, %v1177_v1 }
 0x226   :  { %7009 = vmatprep.mubr.msk.f32.mxu1 %vm7589_vm11, %v9512_v15  ;;  %7024 = vmatprep.mubr.msk.f32.mxu0 %vm7589_vm11, %v9512_v15 }
 0x227   :  { %7017 = vmatprep.subr.mxu1 %v9512_v15  ;;  %7032 = vmatprep.subr.mxu0 %v9512_v15 }
 0x228   :  { %7010 = vmatmul.mubr.msk.f32.vlgmr.msra.gmra.mxu1 %vm1001_vm10, %v1060_v39  ;;  %7025 = vmatmul.mubr.msk.f32.vlgmr.msra.gmra.mxu0 %vm1001_vm10, %v1073_v4 }
 0x229   :  { %7018 = vmatpush3.xpose.msk.msra.mxu1 %vm1001_vm10, %v1172_v35  ;;  %7033 = vmatpush3.msra.mxu0 %v1257_v53  ;;  %v8415_v53 = vrot.slane %v164_v49, %v7724_v3  ;;  %v162_v35 = vrot.slane %v134_v6, %v124_v29 }
 0x22a   :  { %7019 = vmatprep.mubr.msk.f32.mxu1 %vm7589_vm11, %v9512_v15  ;;  %7027 = vmatprep.subr.mxu1 %v9512_v15 }
 0x22b   :  { %7034 = vmatprep.mubr.msk.f32.mxu0 %vm7589_vm11, %v9512_v15  ;;  %7042 = vmatprep.subr.mxu0 %v9512_v15  ;;  %v8422_v30 = vrot.slane %v162_v35, %v7724_v3  ;;  %v166_v29 = vcombine.high %v162_v35, %v162_v35 }
 0x22c   :  { %7020 = vmatmul.mubr.msk.f32.vlgmr.msra.gmra.mxu1 %vm1001_vm10, %v1068_v22 }
 0x22d   :  { %7028 = vmatpush3.xpose.msk.msra.mxu1 %vm1001_vm10, %v1180_v57  ;;  %7029 = vmatprep.mubr.msk.f32.mxu1 %vm7589_vm11, %v9512_v15  ;;  %v8428_v33 = vrot.slane %v166_v29, %v7724_v3 }
 0x22e   :  { %7037 = vmatprep.subr.mxu1 %v9512_v15 }
 0x230   :  { %7030 = vmatmul.mubr.msk.f32.vlgmr.msra.gmra.mxu1 %vm1001_vm10, %v1076_v0 }
 0x231   :  { %7038 = vmatpush3.msra.mxu1 %v1260_v25  ;;  %7039 = vmatprep.mubr.msk.f32.mxu1 %vm7589_vm11, %v9512_v15 }
 0x232   :  { %7047 = vmatprep.subr.mxu1 %v9512_v15 }
 0x2dc   :  { %v1359_v21 = vpop.f32.mrf.mxu1 }
 0x2dd   :  { %v1895_v54 = vmul.f32 0.125, %v1359_v21 }
 0x2de   :  { %v6996_v62 = vpop.f32.mrf.mxu1 }
 0x2df   :  { %v1943_v31 = vadd.f32 %v8392_v37, %v1895_v54 }
 0x2e0   :  { %v1435_v42 = vpop.f32.mrf.mxu1 }
 0x2e1   :  { %v1896_v34 = vmul.f32 0.125, %v1435_v42  ;;  %v1952_v11 = vsel %vm1951_vm12, %v1943_v31, -inf }
 0x2e2   :  { %v7001_v32 = vpop.f32.mrf.mxu1  ;;  %1953 = vmax.xlane.f32.xlu0 %v1952_v11 }
 0x2e3   :  { %v1944_v59 = vadd.f32 %v8396_v28, %v1896_v34 }
 0x2e4   :  { %v1511_v60 = vpop.f32.mrf.mxu1  ;;  %v1663_v61 = vpop.f32.mrf.mxu0 }
 0x2e5   :  { %v1897_v24 = vmul.f32 0.125, %v1511_v60  ;;  %v1899_v23 = vmul.f32 0.125, %v1663_v61  ;;  %v1955_v56 = vsel %vm1951_vm12, %v1944_v59, -inf }
 0x2e6   :  { %v7006_v18 = vpop.f32.mrf.mxu1  ;;  %v7016_v1 = vpop.f32.mrf.mxu0  ;;  %1956 = vmax.xlane.f32.xlu1 %v1955_v56 }
 0x2e7   :  { %v1945_v39 = vadd.f32 %v8402_v38, %v1897_v24  ;;  %v1947_v4 = vadd.f32 %v8406_v58, %v1899_v23 }
 0x2e8   :  { %v1587_v22 = vpop.f32.mrf.mxu1  ;;  %v1815_v57 = vpop.f32.mrf.mxu0 }
 0x2e9   :  { %v1898_v0 = vmul.f32 0.125, %v1587_v22  ;;  %v1901_v25 = vmul.f32 0.125, %v1815_v57  ;;  %v1958_v51 = vsel %vm1951_vm12, %v1945_v39, -inf  ;;  %v1964_v52 = vsel %vm1951_vm12, %v1947_v4, -inf }
 0x2ea   :  { %v7011_v40 = vpop.f32.mrf.mxu1  ;;  %v7026_v20 = vpop.f32.mrf.mxu0  ;;  %1959 = vmax.xlane.f32.xlu0 %v1958_v51  ;;  %1965 = vmax.xlane.f32.xlu1 %v1964_v52 }
 0x2eb   :  { %v1946_v41 = vadd.f32 %v8410_v47, %v1898_v0  ;;  %v1949_v27 = vadd.f32 %v8415_v53, %v1901_v25 }
 0x2ec   :  { %v1739_v44 = vpop.f32.mrf.mxu1 }
 0x2ed   :  { %v1900_v43 = vmul.f32 0.125, %v1739_v44  ;;  %v1961_v7 = vsel %vm1951_vm12, %v1946_v41, -inf  ;;  %v1970_v21 = vsel %vm1951_vm12, %v1949_v27, -inf }
 0x2ee   :  { %v7021_v54 = vpop.f32.mrf.mxu1  ;;  %1962 = vmax.xlane.f32.xlu0 %v1961_v7  ;;  %1971 = vmax.xlane.f32.xlu1 %v1970_v21 }
 0x2ef   :  { %v1948_v62 = vadd.f32 %v8422_v30, %v1900_v43 }
 0x2f0   :  { %v1891_v9 = vpop.f32.mrf.mxu1 }
 0x2f1   :  { %v1902_v42 = vmul.f32 0.125, %v1891_v9  ;;  %v1967_v34 = vsel %vm1951_vm12, %v1948_v62, -inf }
 0x2f2   :  { %v7031_v11 = vpop.f32.mrf.mxu1  ;;  %1968 = vmax.xlane.f32.xlu0 %v1967_v34 }
 0x2f3   :  { %v1950_v32 = vadd.f32 %v8428_v33, %v1902_v42 }
 0x2f5   :  { %v1973_v48 = vsel %vm1951_vm12, %v1950_v32, -inf }
 0x2f6   :  { %1974 = vmax.xlane.f32.xlu0 %v1973_v48 }
 0x36b   :  { %v1954_v49 = vpop.xlane.xlu0 %1953 }
 0x36c   :  { %v1976_v6 = vsub.f32 %v1943_v31, %v1954_v49 }
 0x36e   :  { %v1984_v60 = vmul.f32 1.442695, %v1976_v6 }
 0x36f   :  { %v1957_v61 = vpop.xlane.xlu1 %1956 }
 0x370   :  { %7351 = vpow2.f32 %v1984_v60  ;;  %v1977_v24 = vsub.f32 %v1944_v59, %v1957_v61 }
 0x372   :  { %v1986_v23 = vmul.f32 1.442695, %v1977_v24 }
 0x373   :  { %v1960_v56 = vpop.xlane.xlu0 %1959  ;;  %v1966_v18 = vpop.xlane.xlu1 %1965 }
 0x374   :  { %7353 = vpow2.f32 %v1986_v23  ;;  %v1978_v1 = vsub.f32 %v1945_v39, %v1960_v56  ;;  %v1980_v35 = vsub.f32 %v1947_v4, %v1966_v18 }
 0x376   :  { %v1988_v22 = vmul.f32 1.442695, %v1978_v1  ;;  %v1992_v57 = vmul.f32 1.442695, %v1980_v35 }
 0x377   :  { %v1963_v0 = vpop.xlane.xlu0 %1962  ;;  %v1972_v25 = vpop.xlane.xlu1 %1971 }
 0x378   :  { %7355 = vpow2.f32 %v1988_v22  ;;  %v1979_v51 = vsub.f32 %v1946_v41, %v1963_v0  ;;  %v1982_v52 = vsub.f32 %v1949_v27, %v1972_v25 }
 0x379   :  { %7357 = vpow2.f32 %v1992_v57 }
 0x37a   :  { %v1990_v40 = vmul.f32 1.442695, %v1979_v51  ;;  %v1996_v31 = vmul.f32 1.442695, %v1982_v52 }
 0x37b   :  { %v1969_v20 = vpop.xlane.xlu0 %1968 }
 0x37c   :  { %7359 = vpow2.f32 %v1990_v40  ;;  %v1981_v29 = vsub.f32 %v1948_v62, %v1969_v20 }
 0x37d   :  { %v7352_v59 = vpop.eup %7351  ;;  %7361 = vpow2.f32 %v1996_v31 }
 0x37e   :  { %v1994_v44 = vmul.f32 1.442695, %v1981_v29  ;;  %v2000_v43 = vsel %vm1951_vm12, %v7352_v59, 0.0 }
 0x37f   :  { %2001 = vadd.xlane.f32.xlu1 %v2000_v43  ;;  %v1975_v39 = vpop.xlane.xlu0 %1974 }
 0x380   :  { %7363 = vpow2.f32 %v1994_v44  ;;  %v1983_v4 = vsub.f32 %v1950_v32, %v1975_v39  ;;  %v7276_v39 = vld [vmem:[%s9431_s8 + $0x10] sm:$0xff]  }
 0x381   :  { %v7354_v7 = vpop.eup %7353 }
 0x382   :  { %v1998_v21 = vmul.f32 1.442695, %v1983_v4  ;;  %v2003_v41 = vsel %vm1951_vm12, %v7354_v7, 0.0  ;;  %v7277_v4 = vld [vmem:[%s9431_s8 + $0x8] sm:$0xff]  }
 0x383   :  { %2004 = vadd.xlane.f32.xlu0 %v2003_v41 }
 0x384   :  { %7365 = vpow2.f32 %v1998_v21 }
 0x385   :  { %v7356_v27 = vpop.eup %7355 }
 0x386   :  { %v2006_v54 = vsel %vm1951_vm12, %v7356_v27, 0.0  ;;  %v7358_v9 = vpop.eup %7357 }
 0x387   :  { %2007 = vadd.xlane.f32.xlu1 %v2006_v54  ;;  %v2012_v42 = vsel %vm1951_vm12, %v7358_v9, 0.0 }
 0x389   :  { %v7360_v62 = vpop.eup %7359 }
 0x38a   :  { %v2009_v34 = vsel %vm1951_vm12, %v7360_v62, 0.0  ;;  %v7362_v11 = vpop.eup %7361 }
 0x38b   :  { %2013 = vadd.xlane.f32.xlu1 %v2012_v42  ;;  %2010 = vadd.xlane.f32.xlu0 %v2009_v34  ;;  %v2018_v48 = vsel %vm1951_vm12, %v7362_v11, 0.0 }
 0x38d   :  { %v7364_v32 = vpop.eup %7363 }
 0x38e   :  { %v2015_v49 = vsel %vm1951_vm12, %v7364_v32, 0.0 }
 0x38f   :  { %2019 = vadd.xlane.f32.xlu1 %v2018_v48  ;;  %2016 = vadd.xlane.f32.xlu0 %v2015_v49 }
 0x391   :  { %v7366_v6 = vpop.eup %7365 }
 0x392   :  { %v2021_v60 = vsel %vm1951_vm12, %v7366_v6, 0.0 }
 0x393   :  { %2022 = vadd.xlane.f32.xlu0 %v2021_v60 }
 0x408   :  { %v2002_v61 = vpop.xlane.xlu1 %2001 }
 0x409   :  { %7367 = vrcp.f32 %v2002_v61 }
 0x40c   :  { %v2005_v24 = vpop.xlane.xlu0 %2004 }
 0x40d   :  { %7369 = vrcp.f32 %v2005_v24 }
 0x410   :  { %v2008_v23 = vpop.xlane.xlu1 %2007 }
 0x411   :  { %7371 = vrcp.f32 %v2008_v23 }
 0x414   :  { %v2014_v56 = vpop.xlane.xlu1 %2013  ;;  %v2011_v18 = vpop.xlane.xlu0 %2010 }
 0x415   :  { %7373 = vrcp.f32 %v2014_v56 }
 0x416   :  { %v7368_v1 = vpop.eup %7367  ;;  %7375 = vrcp.f32 %v2011_v18 }
 0x417   :  { %v2032_v35 = vmul.f32 %v7368_v1, %v7352_v59  ;;  %v7275_v59 = vld [vmem:[%s9431_s8 + $0x18] sm:$0xff]  }
 0x418   :  { %v2020_v22 = vpop.xlane.xlu1 %2019  ;;  %v2017_v57 = vpop.xlane.xlu0 %2016 }
 0x419   :  { %7377 = vrcp.f32 %v2020_v22  ;;  %7035 = vmatmul.mubr.msk.f32.vlgmr.msra.gmra.mxu0 %vm1951_vm12, %v2032_v35  ;;  %v6506_v35 = vld [vmem:[%s9432_s9] ss:$0 sm:$0xff] }
 0x41a   :  { %v7370_v0 = vpop.eup %7369  ;;  %7379 = vrcp.f32 %v2017_v57  ;;  %7043 = vmatpush3.msra.mxu0 %v8315_v2  ;;  %7044 = vmatprep.mubr.msk.f32.mxu0 %vm7589_vm11, %v9512_v15 }
 0x41b   :  { %v2033_v25 = vmul.f32 %v7370_v0, %v7354_v7  ;;  %7052 = vmatprep.subr.mxu0 %v9512_v15 }
 0x41c   :  { %v2023_v51 = vpop.xlane.xlu0 %2022 }
 0x41d   :  { %7381 = vrcp.f32 %v2023_v51  ;;  %7040 = vmatmul.mubr.msk.f32.vlgmr.msra.gmra.mxu1 %vm1951_vm12, %v2033_v25 }
 0x41e   :  { %v7372_v52 = vpop.eup %7371  ;;  %7048 = vmatpush3.msra.mxu1 %v8318_v17  ;;  %7049 = vmatprep.mubr.msk.f32.mxu1 %vm7589_vm11, %v9512_v15  ;;  %v1276_v17 = vadd.f32 %v8312_v16, %v8399_v5 }
 0x41f   :  { %v2034_v40 = vmul.f32 %v7372_v52, %v7356_v27  ;;  %7057 = vmatprep.subr.mxu1 %v9512_v15 }
 0x421   :  { %7045 = vmatmul.mubr.msk.f32.vlgmr.msra.gmra.mxu0 %vm1951_vm12, %v2034_v40 }
 0x422   :  { %v7374_v2 = vpop.eup %7373  ;;  %7053 = vmatpush3.msra.mxu0 %v8326_v63  ;;  %7054 = vmatprep.mubr.msk.f32.mxu0 %vm7589_vm11, %v9512_v15 }
 0x423   :  { %v7376_v31 = vpop.eup %7375  ;;  %7062 = vmatprep.subr.mxu0 %v9512_v15  ;;  %v2036_v20 = vmul.f32 %v7374_v2, %v7358_v9 }
 0x424   :  { %v2035_v29 = vmul.f32 %v7376_v31, %v7360_v62 }
 0x425   :  { %7055 = vmatmul.mubr.msk.f32.vlgmr.msra.gmra.mxu0 %vm1951_vm12, %v2036_v20 }
 0x426   :  { %v7378_v44 = vpop.eup %7377  ;;  %7050 = vmatmul.mubr.msk.f32.vlgmr.msra.gmra.mxu1 %vm1951_vm12, %v2035_v29  ;;  %7063 = vmatpush3.msra.mxu0 %v8323_v46 }
 0x427   :  { %v7380_v63 = vpop.eup %7379  ;;  %7058 = vmatpush3.msra.mxu1 %v1276_v17  ;;  %7059 = vmatprep.mubr.msk.f32.mxu1 %vm7589_vm11, %v9512_v15  ;;  %v2038_v43 = vmul.f32 %v7378_v44, %v7362_v11 }
 0x428   :  { %7064 = vmatprep.mubr.msk.f32.mxu0 %vm7589_vm11, %v9512_v15  ;;  %7067 = vmatprep.subr.mxu1 %v9512_v15  ;;  %v2037_v16 = vmul.f32 %v7380_v63, %v7364_v32 }
 0x429   :  { %7065 = vmatmul.mubr.msk.f32.vlgmr.msra.gmra.mxu0 %vm1951_vm12, %v2038_v43  ;;  %7072 = vmatprep.subr.bf16.mxu0 %v7275_v59 }
 0x42a   :  { %v7382_v5 = vpop.eup %7381  ;;  %7060 = vmatmul.mubr.msk.f32.vlgmr.msra.gmra.mxu1 %vm1951_vm12, %v2037_v16  ;;  %7073 = vmatpush3.bf16.msra.mxu0 %v7275_v59 }
 0x42b   :  { %7068 = vmatpush3.msra.mxu1 %v8329_v36  ;;  %7069 = vmatprep.mubr.msk.f32.mxu1 %vm7589_vm11, %v9512_v15  ;;  %v2039_v46 = vmul.f32 %v7382_v5, %v7366_v6  ;;  %v7278_v36 = vld [vmem:[%s9431_s8] sm:$0xff]  }
 0x42c   :  { %7074 = vmatprep.subr.bf16.mxu0 %v7276_v39 }
 0x42e   :  { %7070 = vmatmul.mubr.msk.f32.vlgmr.msra.gmra.mxu1 %vm1951_vm12, %v2039_v46  ;;  %7075 = vmatpush3.bf16.msra.mxu0 %v7276_v39 }
 0x42f   :  { %7076 = vmatprep.subr.bf16.mxu0 %v7277_v4 }
 0x432   :  { %7077 = vmatpush3.bf16.msra.mxu0 %v7277_v4 }
 0x433   :  { %7078 = vmatprep.subr.bf16.mxu0 %v7278_v36 }
 0x436   :  { %7079 = vmatpush3.bf16.msra.mxu0 %v7278_v36 }
 0x4d9   :  { %v2109_v7 = vpop.f32.mrf.mxu0 }
 0x4db   :  { %v7036_v21 = vpop.f32.mrf.mxu0 }
 0x4dd   :  { %v2182_v41 = vpop.f32.mrf.mxu1 }
 0x4de   :  { %v2624_v27 = vpack.c.bf16 %v2182_v41, %v2109_v7 }
 0x4df   :  { %v7041_v54 = vpop.f32.mrf.mxu1 }
 0x4e0   :  { %7080 = vmatprep.mubr.msk.bf16.mxu0 %vm1001_vm10, %v2624_v27 }
 0x4e1   :  { %v2255_v9 = vpop.f32.mrf.mxu0 }
 0x4e3   :  { %v7046_v62 = vpop.f32.mrf.mxu0 }
 0x4e5   :  { %v2401_v42 = vpop.f32.mrf.mxu0 }
 0x4e6   :  { %v2328_v34 = vpop.f32.mrf.mxu1 }
 0x4e7   :  { %v2625_v11 = vpack.c.bf16 %v2328_v34, %v2255_v9  ;;  %v7056_v32 = vpop.f32.mrf.mxu0 }
 0x4e8   :  { %v7051_v48 = vpop.f32.mrf.mxu1 }
 0x4e9   :  { %7081 = vmatmul.mubr.msk.bf16.vlgmr.msra.gmra.mxu0 %vm1001_vm10, %v2625_v11  ;;  %v2547_v49 = vpop.f32.mrf.mxu0 }
 0x4ea   :  { %v2474_v6 = vpop.f32.mrf.mxu1 }
 0x4eb   :  { %v2626_v60 = vpack.c.bf16 %v2474_v6, %v2401_v42  ;;  %v7066_v61 = vpop.f32.mrf.mxu0 }
 0x4ec   :  { %v7061_v24 = vpop.f32.mrf.mxu1 }
 0x4ed   :  { %7084 = vmatprep.mubr.msk.bf16.mxu0 %vm1001_vm10, %v2626_v60 }
 0x4ee   :  { %v2620_v23 = vpop.f32.mrf.mxu1 }
 0x4ef   :  { %v2627_v56 = vpack.c.bf16 %v2620_v23, %v2547_v49 }
 0x4f0   :  { %v7071_v18 = vpop.f32.mrf.mxu1 }
 0x4f1   :  { %7085 = vmatmul.mubr.msk.bf16.gmra.mxu0 %vm1001_vm10, %v2627_v56 }
 0x5a9   :  { %v7082_v1 = vpop.f32.mrf.mxu0 }
 0x5aa   :  { %v2722_v57 = vadd.f32 %v7082_v1, %v6506_v35 }
 0x5ab   :  { %v2713_v22 = vpop.f32.mrf.mxu0 }
 0x5ac   :  { %v2714_v0 = vadd.f32 %v6506_v35, %v2713_v22  ;;  %v2746_v20 = vadd.f32 %v2722_v57, %v8192_v14 }
 0x5ad   :  { %v7083_v25 = vpop.f32.mrf.mxu0 }
 0x5ae   :  { %v2744_v51 = vadd.f32 %v2714_v0, %v8172_v45  ;;  %v2725_v52 = vadd.f32 %v7083_v25, %v6506_v35  ;;  %v2760_v45 = vsel %vm1001_vm10, %v2746_v20, 0.0 }
 0x5af   :  { %v2716_v40 = vpop.f32.mrf.mxu0 }
 0x5b0   :  { %v2717_v2 = vadd.f32 %v6506_v35, %v2716_v40  ;;  %v2754_v31 = vsel %vm1001_vm10, %v2744_v51, 0.0  ;;  %v2747_v59 = vadd.f32 %v2725_v52, %v8190_v12 }
 0x5b1   :  { %2755 = vadd.xlane.f32.xlu1 %v2754_v31  ;;  %v7086_v29 = vpop.f32.mrf.mxu0 }
 0x5b2   :  { %v2745_v17 = vadd.f32 %v2717_v2, %v8170_v55  ;;  %v2738_v63 = vadd.f32 %v7086_v29, %v6506_v35  ;;  %v2763_v14 = vsel %vm1001_vm10, %v2747_v59, 0.0 }
 0x5b3   :  { %v2729_v44 = vpop.f32.mrf.mxu0 }
 0x5b4   :  { %v2730_v43 = vadd.f32 %v6506_v35, %v2729_v44  ;;  %v2757_v16 = vsel %vm1001_vm10, %v2745_v17, 0.0  ;;  %v2750_v4 = vadd.f32 %v2738_v63, %v8291_v19 }
 0x5b5   :  { %2758 = vadd.xlane.f32.xlu0 %v2757_v16  ;;  %2761 = vadd.xlane.f32.xlu1 %v2760_v45  ;;  %v7087_v5 = vpop.f32.mrf.mxu0 }
 0x5b6   :  { %v2748_v46 = vadd.f32 %v2730_v43, %v8283_v50  ;;  %v2741_v55 = vadd.f32 %v7087_v5, %v6506_v35  ;;  %v2772_v27 = vsel %vm1001_vm10, %v2750_v4, 0.0 }
 0x5b7   :  { %v2732_v39 = vpop.f32.mrf.mxu0 }
 0x5b8   :  { %v2733_v36 = vadd.f32 %v6506_v35, %v2732_v39  ;;  %v2766_v12 = vsel %vm1001_vm10, %v2748_v46, 0.0  ;;  %v2751_v21 = vadd.f32 %v2741_v55, %v8289_v8  ;;  %v7279_v39 = vld [vmem:[%s9437_s14 + $0x30] ss:$8 sps:$4 sm:$0xff]   ;;  %v7287_v55 = vld [vmem:[%s9437_s14 + $0x14] ss:$8 sps:$4 sm:$0xff]  }
 0x5b9   :  { %2764 = vadd.xlane.f32.xlu0 %v2763_v14  ;;  %2767 = vadd.xlane.f32.xlu1 %v2766_v12  ;;  %v7284_v14 = vld [vmem:[%s9437_s14 + $0x24] ss:$8 sps:$4 sm:$0xff]  }
 0x5ba   :  { %v2749_v7 = vadd.f32 %v2733_v36, %v8281_v26  ;;  %v2775_v50 = vsel %vm1001_vm10, %v2751_v21, 0.0  ;;  %v7285_v36 = vld [vmem:[%s9437_s14 + $0x10] ss:$8 sps:$4 sm:$0xff]   ;;  %v7290_v12 = vld [vmem:[%s9437_s14 + $0x4] ss:$8 sps:$4 sm:$0xff]  }
 0x5bc   :  { %v2769_v41 = vsel %vm1001_vm10, %v2749_v7, 0.0 }
 0x5bd   :  { %2770 = vadd.xlane.f32.xlu0 %v2769_v41  ;;  %2773 = vadd.xlane.f32.xlu1 %v2772_v27  ;;  %v7291_v41 = vld [vmem:[%s9439_s16 + $0x78] sm:$0xff]  }
 0x5be   :  { %v7292_v27 = vld [vmem:[%s9439_s16 + $0x38] sm:$0xff]   ;;  %6791 = vmatprep.subr.bf16.mxu0 %v7291_v41 }
 0x5bf   :  { %6792 = vmatpush3.bf16.msra.mxu0 %v7292_v27 }
 0x5c1   :  { %2776 = vadd.xlane.f32.xlu0 %v2775_v50  ;;  %v7293_v50 = vld [vmem:[%s9439_s16 + $0x70] sm:$0xff]  }
 0x5c2   :  { %6793 = vmatprep.subr.bf16.mxu0 %v7293_v50 }
 0x63a   :  { %v2756_v19 = vpop.xlane.xlu1 %2755 }
 0x63b   :  { %v2779_v54 = vmul.f32 0.015625, %v2756_v19  ;;  %v7294_v19 = vld [vmem:[%s9439_s16 + $0x30] sm:$0xff]  }
 0x63c   :  { %6794 = vmatpush3.bf16.msra.mxu0 %v7294_v19 }
 0x63d   :  { %v8507_v9 = vsub.f32 %v2744_v51, %v2779_v54  ;;  %v7295_v54 = vld [vmem:[%s9439_s16 + $0x68] sm:$0xff]  }
 0x63e   :  { %v2762_v62 = vpop.xlane.xlu1 %2761  ;;  %v2759_v42 = vpop.xlane.xlu0 %2758  ;;  %6795 = vmatprep.subr.bf16.mxu0 %v7295_v54 }
 0x63f   :  { %v2781_v34 = vmul.f32 0.015625, %v2762_v62  ;;  %v2780_v11 = vmul.f32 0.015625, %v2759_v42  ;;  %v2795_v26 = vmul.f32 %v8507_v9, %v8507_v9  ;;  %v7296_v62 = vld [vmem:[%s9439_s16 + $0x28] sm:$0xff]   ;;  %v7297_v42 = vld [vmem:[%s9439_s16 + $0x60] sm:$0xff]  }
 0x640   :  { %6796 = vmatpush3.bf16.msra.mxu0 %v7296_v62 }
 0x641   :  { %v8511_v8 = vsub.f32 %v2746_v20, %v2781_v34  ;;  %v8513_v32 = vsub.f32 %v2745_v17, %v2780_v11  ;;  %v2803_v48 = vsel %vm1001_vm10, %v2795_v26, 0.0  ;;  %v7298_v34 = vld [vmem:[%s9439_s16 + $0x20] sm:$0xff]   ;;  %6797 = vmatprep.subr.bf16.mxu0 %v7297_v42  ;;  %v7299_v11 = vld [vmem:[%s9439_s16 + $0x58] sm:$0xff]  }
 0x642   :  { %2804 = vadd.xlane.f32.xlu1 %v2803_v48  ;;  %v2768_v49 = vpop.xlane.xlu1 %2767  ;;  %v2765_v6 = vpop.xlane.xlu0 %2764  ;;  %v7300_v26 = vld [vmem:[%s9439_s16 + $0x18] sm:$0xff]  }
 0x643   :  { %v2783_v60 = vmul.f32 0.015625, %v2768_v49  ;;  %v2782_v61 = vmul.f32 0.015625, %v2765_v6  ;;  %v2797_v24 = vmul.f32 %v8511_v8, %v8511_v8  ;;  %v2796_v23 = vmul.f32 %v8513_v32, %v8513_v32 }
 0x644   :  { %6798 = vmatpush3.bf16.msra.mxu0 %v7298_v34 }
 0x645   :  { %v8520_v56 = vsub.f32 %v2748_v46, %v2783_v60  ;;  %v8522_v18 = vsub.f32 %v2747_v59, %v2782_v61  ;;  %v2809_v1 = vsel %vm1001_vm10, %v2797_v24, 0.0  ;;  %v2806_v35 = vsel %vm1001_vm10, %v2796_v23, 0.0  ;;  %v7281_v46 = vld [vmem:[%s9437_s14 + $0x34] ss:$8 sps:$4 sm:$0xff]   ;;  %6799 = vmatprep.subr.bf16.mxu0 %v7299_v11 }
 0x646   :  { %2810 = vadd.xlane.f32.xlu1 %v2809_v1  ;;  %v2774_v22 = vpop.xlane.xlu1 %2773  ;;  %2807 = vadd.xlane.f32.xlu0 %v2806_v35  ;;  %v2771_v57 = vpop.xlane.xlu0 %2770 }
 0x647   :  { %v2785_v0 = vmul.f32 0.015625, %v2774_v22  ;;  %v2784_v25 = vmul.f32 0.015625, %v2771_v57  ;;  %v2799_v51 = vmul.f32 %v8520_v56, %v8520_v56  ;;  %v2798_v52 = vmul.f32 %v8522_v18, %v8522_v18  ;;  %2971 = vmatprep.subr.bf16.mxu1 %v7281_v46 }
 0x648   :  { %2972 = vmatpush1.bf16.msra.mxu1 %v7279_v39  ;;  %6800 = vmatpush3.bf16.msra.mxu0 %v7300_v26 }
 0x649   :  { %v8530_v40 = vsub.f32 %v2750_v4, %v2785_v0  ;;  %v8532_v2 = vsub.f32 %v2749_v7, %v2784_v25  ;;  %v2815_v31 = vsel %vm1001_vm10, %v2799_v51, 0.0  ;;  %v2812_v20 = vsel %vm1001_vm10, %v2798_v52, 0.0  ;;  %v7282_v4 = vld [vmem:[%s9437_s14 + $0x20] ss:$8 sps:$4 sm:$0xff]   ;;  %2973 = vmatprep.subr.bf16.mxu1 %v7284_v14 }
 0x64a   :  { %2816 = vadd.xlane.f32.xlu1 %v2815_v31  ;;  %2813 = vadd.xlane.f32.xlu0 %v2812_v20  ;;  %v2777_v29 = vpop.xlane.xlu0 %2776  ;;  %v7288_v7 = vld [vmem:[%s9437_s14] ss:$8 sps:$4 sm:$0xff]  }
 0x64b   :  { %v2786_v17 = vmul.f32 0.015625, %v2777_v29  ;;  %v2801_v59 = vmul.f32 %v8530_v40, %v8530_v40  ;;  %v2800_v44 = vmul.f32 %v8532_v2, %v8532_v2 }
 0x64c   :  { %2974 = vmatpush1.bf16.msra.mxu1 %v7282_v4 }
 0x64d   :  { %v8540_v63 = vsub.f32 %v2751_v21, %v2786_v17  ;;  %v2821_v43 = vsel %vm1001_vm10, %v2801_v59, 0.0  ;;  %v2818_v16 = vsel %vm1001_vm10, %v2800_v44, 0.0  ;;  %2975 = vmatprep.subr.bf16.mxu1 %v7287_v55  ;;  %v7591_v21 = vmov 0  }
 0x64e   :  { %2822 = vadd.xlane.f32.xlu1 %v2821_v43  ;;  %2819 = vadd.xlane.f32.xlu0 %v2818_v16 }
 0x64f   :  { %v2802_v45 = vmul.f32 %v8540_v63, %v8540_v63  ;;  %2995 = vmatprep.mubr.bf16.mxu1 %v7591_v21  ;;  %7261 = vset.pattern.permute.xlu1 %v7591_v21 }
 0x650   :  { %2976 = vmatpush1.bf16.msra.mxu1 %v7285_v36  ;;  %7262 = vset.pattern.permute.xlu0 %v7591_v21 }
 0x651   :  { %v2824_v5 = vsel %vm1001_vm10, %v2802_v45, 0.0  ;;  %2977 = vmatprep.subr.bf16.mxu1 %v7290_v12  ;;  %v6516_v12 = vld [vmem:[%s9434_s11] ss:$0 sm:$0xff] }
 0x652   :  { %2825 = vadd.xlane.f32.xlu0 %v2824_v5  ;;  %v6515_v5 = vld [vmem:[%s9433_s10] ss:$0 sm:$0xff] }
 0x654   :  { %2978 = vmatpush1.bf16.msra.mxu1 %v7288_v7 }
 0x6cb   :  { %v2805_v48 = vpop.xlane.xlu1 %2804 }
 0x6cc   :  { %v2827_v49 = vmul.f32 0.015625, %v2805_v48 }
 0x6ce   :  { %v2835_v6 = vadd.f32 1e-05, %v2827_v49 }
 0x6cf   :  { %v2811_v60 = vpop.xlane.xlu1 %2810  ;;  %v2808_v61 = vpop.xlane.xlu0 %2807 }
 0x6d0   :  { %7383 = vrsqrt.f32 %v2835_v6  ;;  %v2829_v24 = vmul.f32 0.015625, %v2811_v60  ;;  %v2828_v23 = vmul.f32 0.015625, %v2808_v61 }
 0x6d2   :  { %v2836_v1 = vadd.f32 1e-05, %v2828_v23  ;;  %v2837_v35 = vadd.f32 1e-05, %v2829_v24 }
 0x6d3   :  { %v2814_v22 = vpop.xlane.xlu0 %2813  ;;  %v2817_v57 = vpop.xlane.xlu1 %2816 }
 0x6d4   :  { %v2830_v0 = vmul.f32 0.015625, %v2814_v22  ;;  %7385 = vrsqrt.f32 %v2836_v1  ;;  %v2831_v51 = vmul.f32 0.015625, %v2817_v57 }
 0x6d5   :  { %7387 = vrsqrt.f32 %v2837_v35 }
 0x6d6   :  { %v2838_v25 = vadd.f32 1e-05, %v2830_v0  ;;  %v2839_v29 = vadd.f32 1e-05, %v2831_v51  ;;  %v7303_v51 = vld [vmem:[%s9439_s16 + $0x48] sm:$0xff]  }
 0x6d7   :  { %v2820_v52 = vpop.xlane.xlu0 %2819  ;;  %v2823_v17 = vpop.xlane.xlu1 %2822 }
 0x6d8   :  { %v2832_v31 = vmul.f32 0.015625, %v2820_v52  ;;  %7389 = vrsqrt.f32 %v2838_v25  ;;  %v2833_v16 = vmul.f32 0.015625, %v2823_v17  ;;  %v7302_v25 = vld [vmem:[%s9439_s16 + $0x10] sm:$0xff]   ;;  %v7304_v52 = vld [vmem:[%s9439_s16 + $0x8] sm:$0xff]  }
 0x6da   :  { %v2840_v20 = vadd.f32 1e-05, %v2832_v31  ;;  %v2841_v14 = vadd.f32 1e-05, %v2833_v16  ;;  %v7305_v31 = vld [vmem:[%s9439_s16 + $0x40] sm:$0xff]  }
 0x6db   :  { %v2826_v59 = vpop.xlane.xlu0 %2825 }
 0x6dc   :  { %7391 = vrsqrt.f32 %v2840_v20  ;;  %v2834_v43 = vmul.f32 0.015625, %v2826_v59  ;;  %v7306_v20 = vld [vmem:[%s9439_s16] sm:$0xff]   ;;  %v9517_v59 = vld [vmem:[#allocation15_spill] sm:$0xff] }
 0x6dd   :  { %v7384_v44 = vpop.eup %7383  ;;  %7393 = vrsqrt.f32 %v2839_v29  ;;  %v2899_v29 = vld [vmem:[%s9438_s15] sm:$0x3] }
 0x6de   :  { %v2851_v45 = vmul.f32 %v7384_v44, %v8507_v9  ;;  %v2842_v46 = vadd.f32 1e-05, %v2834_v43  ;;  %v2908_v44 = vrot.slane %v2899_v29, %v9517_v59  ;;  %v2904_v43 = vrot.slane %v2899_v29, %v7724_v3 }
 0x6e0   :  { %v2865_v55 = vmul.f32 %v6515_v5, %v2851_v45  ;;  %7395 = vrsqrt.f32 %v2842_v46 }
 0x6e1   :  { %v7386_v39 = vpop.eup %7385  ;;  %7397 = vrsqrt.f32 %v2841_v14 }
 0x6e2   :  { %v2852_v4 = vmul.f32 %v7386_v39, %v8513_v32  ;;  %v7388_v36 = vpop.eup %7387  ;;  %v8612_v9 = vadd.f32 %v6516_v12, %v2865_v55 }
 0x6e3   :  { %v2853_v50 = vmul.f32 %v7388_v36, %v8511_v8 }
 0x6e4   :  { %v2866_v7 = vmul.f32 %v6515_v5, %v2852_v4 }
 0x6e5   :  { %v7390_v41 = vpop.eup %7389  ;;  %v2867_v42 = vmul.f32 %v6515_v5, %v2853_v50 }
 0x6e6   :  { %v8614_v27 = vadd.f32 %v6516_v12, %v2866_v7  ;;  %v2854_v19 = vmul.f32 %v7390_v41, %v8522_v18 }
 0x6e7   :  { %v8625_v48 = vadd.f32 %v6516_v12, %v2867_v42 }
 0x6e8   :  { %v2887_v32 = vpack.c.bf16 %v8614_v27, %v8612_v9  ;;  %v2868_v54 = vmul.f32 %v6515_v5, %v2854_v19 }
 0x6e9   :  { %v7392_v62 = vpop.eup %7391 }
 0x6ea   :  { %6525 = vmatmul.mubr.msk.bf16.vlgmr.msra.gmra.mxu1 %vm1001_vm10, %v2887_v32  ;;  %v7394_v34 = vpop.eup %7393  ;;  %v8622_v11 = vadd.f32 %v6516_v12, %v2868_v54  ;;  %v2856_v26 = vmul.f32 %v7392_v62, %v8532_v2 }
 0x6eb   :  { %3005 = vmatprep.mubr.bf16.mxu1 %v7591_v21  ;;  %v2855_v8 = vmul.f32 %v7394_v34, %v8520_v56 }
 0x6ec   :  { %v2888_v18 = vpack.c.bf16 %v8622_v11, %v8625_v48  ;;  %v2870_v49 = vmul.f32 %v6515_v5, %v2856_v26 }
 0x6ed   :  { %v7396_v6 = vpop.eup %7395  ;;  %v2869_v61 = vmul.f32 %v6515_v5, %v2855_v8 }
 0x6ee   :  { %v7398_v60 = vpop.eup %7397  ;;  %v8632_v24 = vadd.f32 %v6516_v12, %v2870_v49  ;;  %v2858_v23 = vmul.f32 %v7396_v6, %v8540_v63 }
 0x6ef   :  { %v8635_v2 = vadd.f32 %v6516_v12, %v2869_v61  ;;  %v2857_v1 = vmul.f32 %v7398_v60, %v8530_v40  ;;  %v7301_v40 = vld [vmem:[%s9439_s16 + $0x50] sm:$0xff]  }
 0x6f0   :  { %v2872_v35 = vmul.f32 %v6515_v5, %v2858_v23  ;;  %6801 = vmatprep.subr.bf16.mxu0 %v7301_v40 }
 0x6f1   :  { %v2889_v56 = vpack.c.bf16 %v8632_v24, %v8635_v2  ;;  %v2871_v22 = vmul.f32 %v6515_v5, %v2857_v1  ;;  %6802 = vmatpush3.bf16.msra.mxu0 %v7302_v25 }
 0x6f2   :  { %6526 = vmatmul.mubr.msk.bf16.gmra.mxu1 %vm1001_vm10, %v2888_v18  ;;  %v8642_v57 = vadd.f32 %v6516_v12, %v2872_v35  ;;  %6803 = vmatprep.subr.bf16.mxu0 %v7303_v51 }
 0x6f3   :  { %3015 = vmatprep.mubr.bf16.mxu1 %v7591_v21  ;;  %v8644_v0 = vadd.f32 %v6516_v12, %v2871_v22 }
 0x6f5   :  { %v2890_v63 = vpack.c.bf16 %v8642_v57, %v8644_v0  ;;  %6804 = vmatpush3.bf16.msra.mxu0 %v7304_v52 }
 0x6f6   :  { %6805 = vmatprep.subr.bf16.mxu0 %v7305_v31 }
 0x6f9   :  { %6806 = vmatpush3.bf16.msra.mxu0 %v7306_v20 }
 0x6fa   :  { %6527 = vmatmul.mubr.msk.bf16.gmra.mxu1 %vm1001_vm10, %v2889_v56 }
 0x6fb   :  { %3025 = vmatprep.mubr.bf16.mxu1 %v7591_v21 }
 0x702   :  { %6528 = vmatmul.mubr.msk.bf16.gmra.mxu1 %vm1001_vm10, %v2890_v63 }
 0x7aa   :  { %v2997_v17 = vpop.f32.mrf.mxu1 }
 0x7ab   :  { %v2998_v39 = vadd.f32 %v2997_v17, %v2904_v43 }
 0x7ac   :  { %v2999_v16 = vpop.f32.mrf.mxu1 }
 0x7ad   :  { %v3000_v5 = vadd.f32 %v2999_v16, %v2908_v44  ;;  %v3036_v41 = vmax.f32 %v2998_v39, 0.0 }
 0x7ae   :  { %v3001_v45 = vpop.f32.mrf.mxu1 }
 0x7af   :  { %v3002_v46 = vadd.f32 %v3001_v45, %v2904_v43  ;;  %v3037_v12 = vmax.f32 %v3000_v5, 0.0 }
 0x7b0   :  { %v3003_v14 = vpop.f32.mrf.mxu1 }
 0x7b1   :  { %v3004_v4 = vadd.f32 %v3003_v14, %v2908_v44  ;;  %v3038_v55 = vmax.f32 %v3002_v46, 0.0 }
 0x7b2   :  { %v3007_v36 = vpop.f32.mrf.mxu1 }
 0x7b3   :  { %v3039_v7 = vmax.f32 %v3004_v4, 0.0  ;;  %v3052_v32 = vpack.c.bf16 %v3038_v55, %v3036_v41  ;;  %v3008_v34 = vadd.f32 %v3007_v36, %v2904_v43 }
 0x7b4   :  { %v3009_v50 = vpop.f32.mrf.mxu1 }
 0x7b5   :  { %v3053_v19 = vpack.c.bf16 %v3039_v7, %v3037_v12  ;;  %v3010_v62 = vadd.f32 %v3009_v50, %v2908_v44  ;;  %v3040_v61 = vmax.f32 %v3008_v34, 0.0 }
 0x7b6   :  { %v3011_v54 = vpop.f32.mrf.mxu1 }
 0x7b7   :  { %v3012_v42 = vadd.f32 %v3011_v54, %v2904_v43  ;;  %3227 = vmatprep.mubr.bf16.mxu0 %v3053_v19  ;;  %v3041_v6 = vmax.f32 %v3010_v62, 0.0  ;;  %v6529_v62 = vld [vmem:[%s9440_s17] ss:$0 sm:$0xff] }
 0x7b8   :  { %v3013_v26 = vpop.f32.mrf.mxu1  ;;  %3228 = vmatmul.mubr.bf16.vlgmr.msra.gmra.mxu0 %v3052_v32 }
 0x7b9   :  { %v3014_v8 = vadd.f32 %v3013_v26, %v2908_v44  ;;  %v3042_v18 = vmax.f32 %v3012_v42, 0.0 }
 0x7ba   :  { %v3017_v49 = vpop.f32.mrf.mxu1 }
 0x7bb   :  { %v3043_v60 = vmax.f32 %v3014_v8, 0.0  ;;  %v3054_v56 = vpack.c.bf16 %v3042_v18, %v3040_v61  ;;  %v3018_v40 = vadd.f32 %v3017_v49, %v2904_v43 }
 0x7bc   :  { %v3019_v23 = vpop.f32.mrf.mxu1 }
 0x7bd   :  { %v3055_v1 = vpack.c.bf16 %v3043_v60, %v3041_v6  ;;  %v3020_v22 = vadd.f32 %v3019_v23, %v2908_v44  ;;  %v3044_v17 = vmax.f32 %v3018_v40, 0.0 }
 0x7be   :  { %v3021_v35 = vpop.f32.mrf.mxu1 }
 0x7bf   :  { %v3022_v63 = vadd.f32 %v3021_v35, %v2904_v43  ;;  %3235 = vmatprep.mubr.bf16.mxu0 %v3055_v1  ;;  %v3045_v20 = vmax.f32 %v3020_v22, 0.0 }
 0x7c0   :  { %v3023_v25 = vpop.f32.mrf.mxu1  ;;  %3236 = vmatmul.mubr.bf16.gmra.mxu0 %v3054_v56 }
 0x7c1   :  { %v3024_v51 = vadd.f32 %v3023_v25, %v2908_v44  ;;  %v3046_v52 = vmax.f32 %v3022_v63, 0.0 }
 0x7c2   :  { %v3027_v31 = vpop.f32.mrf.mxu1 }
 0x7c3   :  { %v3047_v29 = vmax.f32 %v3024_v51, 0.0  ;;  %v3056_v5 = vpack.c.bf16 %v3046_v52, %v3044_v17  ;;  %v3028_v4 = vadd.f32 %v3027_v31, %v2904_v43 }
 0x7c4   :  { %v3029_v16 = vpop.f32.mrf.mxu1 }
 0x7c5   :  { %v3057_v45 = vpack.c.bf16 %v3047_v29, %v3045_v20  ;;  %v3030_v39 = vadd.f32 %v3029_v16, %v2908_v44  ;;  %v3048_v50 = vmax.f32 %v3028_v4, 0.0 }
 0x7c6   :  { %v3031_v46 = vpop.f32.mrf.mxu1 }
 0x7c7   :  { %v3032_v14 = vadd.f32 %v3031_v46, %v2904_v43  ;;  %3243 = vmatprep.mubr.bf16.mxu0 %v3057_v45  ;;  %v3049_v7 = vmax.f32 %v3030_v39, 0.0 }
 0x7c8   :  { %v3033_v55 = vpop.f32.mrf.mxu1  ;;  %3244 = vmatmul.mubr.bf16.gmra.mxu0 %v3056_v5 }
 0x7c9   :  { %v3034_v36 = vadd.f32 %v3033_v55, %v2908_v44  ;;  %v3050_v12 = vmax.f32 %v3032_v14, 0.0 }
 0x7cb   :  { %v3051_v41 = vmax.f32 %v3034_v36, 0.0  ;;  %v3058_v32 = vpack.c.bf16 %v3050_v12, %v3048_v50 }
 0x7cd   :  { %v3059_v19 = vpack.c.bf16 %v3051_v41, %v3049_v7 }
 0x7cf   :  { %3251 = vmatprep.mubr.bf16.mxu0 %v3059_v19 }
 0x7d0   :  { %3252 = vmatmul.mubr.bf16.gmra.mxu0 %v3058_v32 }
 0x878   :  { %v6807_v54 = vpop.f32.mrf.mxu0 }
 0x87a   :  { %v6808_v42 = vpop.f32.mrf.mxu0 }
 0x87b   :  { %v6809_v34 = vadd.f32 %v6808_v42, %v6807_v54 }
 0x87c   :  { %v6810_v26 = vpop.f32.mrf.mxu0 }
 0x87d   :  { %v3230_v43 = vadd.f32 %v6809_v34, %v6529_v62 }
 0x87e   :  { %v6811_v8 = vpop.f32.mrf.mxu0 }
 0x87f   :  { %v6812_v18 = vadd.f32 %v6811_v8, %v6810_v26  ;;  %v3260_v44 = vadd.f32 %v3230_v43, %v8612_v9 }
 0x880   :  { %v6813_v49 = vpop.f32.mrf.mxu0 }
 0x881   :  { %v3233_v6 = vadd.f32 %v6812_v18, %v6529_v62  ;;  %v3270_v60 = vsel %vm1001_vm10, %v3260_v44, 0.0 }
 0x882   :  { %3271 = vadd.xlane.f32.xlu1 %v3270_v60  ;;  %v6814_v61 = vpop.f32.mrf.mxu0 }
 0x883   :  { %v6815_v23 = vadd.f32 %v6814_v61, %v6813_v49  ;;  %v3261_v1 = vadd.f32 %v3233_v6, %v8614_v27 }
 0x884   :  { %v6816_v56 = vpop.f32.mrf.mxu0 }
 0x885   :  { %v3238_v35 = vadd.f32 %v6815_v23, %v6529_v62  ;;  %v3273_v22 = vsel %vm1001_vm10, %v3261_v1, 0.0 }
 0x886   :  { %3274 = vadd.xlane.f32.xlu0 %v3273_v22  ;;  %v6817_v63 = vpop.f32.mrf.mxu0 }
 0x887   :  { %v6818_v40 = vadd.f32 %v6817_v63, %v6816_v56  ;;  %v3262_v25 = vadd.f32 %v3238_v35, %v8625_v48 }
 0x888   :  { %v6819_v51 = vpop.f32.mrf.mxu0 }
 0x889   :  { %v3241_v9 = vadd.f32 %v6818_v40, %v6529_v62  ;;  %v3276_v52 = vsel %vm1001_vm10, %v3262_v25, 0.0 }
 0x88a   :  { %3277 = vadd.xlane.f32.xlu1 %v3276_v52  ;;  %v6820_v31 = vpop.f32.mrf.mxu0 }
 0x88b   :  { %v6821_v20 = vadd.f32 %v6820_v31, %v6819_v51  ;;  %v3263_v29 = vadd.f32 %v3241_v9, %v8622_v11 }
 0x88c   :  { %v6822_v17 = vpop.f32.mrf.mxu0 }
 0x88d   :  { %v3246_v27 = vadd.f32 %v6821_v20, %v6529_v62  ;;  %v3279_v16 = vsel %vm1001_vm10, %v3263_v29, 0.0 }
 0x88e   :  { %3280 = vadd.xlane.f32.xlu0 %v3279_v16  ;;  %v6823_v45 = vpop.f32.mrf.mxu0 }
 0x88f   :  { %v6824_v5 = vadd.f32 %v6823_v45, %v6822_v17  ;;  %v3264_v46 = vadd.f32 %v3246_v27, %v8635_v2 }
 0x890   :  { %v6825_v39 = vpop.f32.mrf.mxu0 }
 0x891   :  { %v3249_v48 = vadd.f32 %v6824_v5, %v6529_v62  ;;  %v3282_v14 = vsel %vm1001_vm10, %v3264_v46, 0.0 }
 0x892   :  { %3283 = vadd.xlane.f32.xlu1 %v3282_v14  ;;  %v6826_v4 = vpop.f32.mrf.mxu0 }
 0x893   :  { %v6827_v55 = vadd.f32 %v6826_v4, %v6825_v39  ;;  %v3265_v36 = vadd.f32 %v3249_v48, %v8632_v24 }
 0x894   :  { %v6828_v12 = vpop.f32.mrf.mxu0 }
 0x895   :  { %v3254_v11 = vadd.f32 %v6827_v55, %v6529_v62  ;;  %v3285_v7 = vsel %vm1001_vm10, %v3265_v36, 0.0 }
 0x896   :  { %3286 = vadd.xlane.f32.xlu0 %v3285_v7  ;;  %v6829_v41 = vpop.f32.mrf.mxu0  ;;  %v7309_v7 = vld [vmem:[%s9489_s23 + $0x30] sm:$0xff]  }
 0x897   :  { %v6830_v50 = vadd.f32 %v6829_v41, %v6828_v12  ;;  %v3266_v19 = vadd.f32 %v3254_v11, %v8644_v0  ;;  %v7307_v12 = vld [vmem:[%s9489_s23 + $0x38] sm:$0xff]   ;;  %v7310_v41 = vld [vmem:[%s9490_s24 + $0x30] sm:$0xff]  }
 0x898   :  { %v7308_v11 = vld [vmem:[%s9490_s24 + $0x38] sm:$0xff]   ;;  %7088 = vmatprep.subr.bf16.mxu1 %v7307_v12 }
 0x899   :  { %v3257_v32 = vadd.f32 %v6830_v50, %v6529_v62  ;;  %v3288_v2 = vsel %vm1001_vm10, %v3266_v19, 0.0  ;;  %7120 = vmatprep.subr.bf16.mxu0 %v7308_v11  ;;  %7089 = vmatpush3.bf16.msra.mxu1 %v7307_v12  ;;  %v7311_v50 = vld [vmem:[%s9489_s23 + $0x28] sm:$0xff]  }
 0x89a   :  { %3289 = vadd.xlane.f32.xlu1 %v3288_v2  ;;  %7121 = vmatpush3.bf16.msra.mxu0 %v7308_v11  ;;  %v7314_v2 = vld [vmem:[%s9490_s24 + $0x20] sm:$0xff]  }
 0x89b   :  { %v3267_v54 = vadd.f32 %v3257_v32, %v8642_v57  ;;  %7090 = vmatprep.subr.bf16.mxu1 %v7309_v7  ;;  %7122 = vmatprep.subr.bf16.mxu0 %v7310_v41  ;;  %v7313_v32 = vld [vmem:[%s9489_s23 + $0x20] sm:$0xff]  }
 0x89d   :  { %v3291_v42 = vsel %vm1001_vm10, %v3267_v54, 0.0  ;;  %7091 = vmatpush3.bf16.msra.mxu1 %v7309_v7 }
 0x89e   :  { %3292 = vadd.xlane.f32.xlu0 %v3291_v42  ;;  %7123 = vmatpush3.bf16.msra.mxu0 %v7310_v41 }
 0x89f   :  { %7092 = vmatprep.subr.bf16.mxu1 %v7311_v50 }
 0x8a1   :  { %7093 = vmatpush3.bf16.msra.mxu1 %v7311_v50 }
 0x8a2   :  { %7094 = vmatprep.subr.bf16.mxu1 %v7313_v32 }
 0x8a5   :  { %7095 = vmatpush3.bf16.msra.mxu1 %v7313_v32 }
 0x90b   :  { %v3272_v34 = vpop.xlane.xlu1 %3271 }
 0x90c   :  { %v3294_v24 = vmul.f32 0.015625, %v3272_v34 }
 0x90e   :  { %v8691_v26 = vsub.f32 %v3260_v44, %v3294_v24 }
 0x90f   :  { %v3275_v43 = vpop.xlane.xlu0 %3274 }
 0x910   :  { %v3295_v8 = vmul.f32 0.015625, %v3275_v43  ;;  %v3310_v18 = vmul.f32 %v8691_v26, %v8691_v26 }
 0x912   :  { %v8695_v49 = vsub.f32 %v3261_v1, %v3295_v8  ;;  %v3318_v0 = vsel %vm1001_vm10, %v3310_v18, 0.0 }
 0x913   :  { %v3278_v62 = vpop.xlane.xlu1 %3277  ;;  %3319 = vadd.xlane.f32.xlu1 %v3318_v0 }
 0x914   :  { %v3296_v6 = vmul.f32 0.015625, %v3278_v62  ;;  %v3311_v57 = vmul.f32 %v8695_v49, %v8695_v49 }
 0x916   :  { %v8700_v60 = vsub.f32 %v3262_v25, %v3296_v6  ;;  %v3321_v44 = vsel %vm1001_vm10, %v3311_v57, 0.0 }
 0x917   :  { %3322 = vadd.xlane.f32.xlu0 %v3321_v44  ;;  %v3281_v61 = vpop.xlane.xlu0 %3280 }
 0x918   :  { %v3297_v23 = vmul.f32 0.015625, %v3281_v61  ;;  %v3312_v56 = vmul.f32 %v8700_v60, %v8700_v60 }
 0x91a   :  { %v8705_v1 = vsub.f32 %v3263_v29, %v3297_v23  ;;  %v3324_v35 = vsel %vm1001_vm10, %v3312_v56, 0.0 }
 0x91b   :  { %v3284_v22 = vpop.xlane.xlu1 %3283  ;;  %3325 = vadd.xlane.f32.xlu1 %v3324_v35 }
 0x91c   :  { %v3298_v63 = vmul.f32 0.015625, %v3284_v22  ;;  %v3313_v40 = vmul.f32 %v8705_v1, %v8705_v1 }
 0x91e   :  { %v8710_v25 = vsub.f32 %v3264_v46, %v3298_v63  ;;  %v3327_v51 = vsel %vm1001_vm10, %v3313_v40, 0.0  ;;  %v6546_v40 = vld [vmem:[%s9435_s12] ss:$0 sm:$0xff] }
 0x91f   :  { %3328 = vadd.xlane.f32.xlu0 %v3327_v51  ;;  %v3287_v9 = vpop.xlane.xlu0 %3286 }
 0x920   :  { %v3299_v52 = vmul.f32 0.015625, %v3287_v9  ;;  %v3314_v31 = vmul.f32 %v8710_v25, %v8710_v25 }
 0x922   :  { %v8715_v20 = vsub.f32 %v3265_v36, %v3299_v52  ;;  %v3330_v29 = vsel %vm1001_vm10, %v3314_v31, 0.0 }
 0x923   :  { %3331 = vadd.xlane.f32.xlu1 %v3330_v29  ;;  %v3290_v17 = vpop.xlane.xlu1 %3289 }
 0x924   :  { %v3300_v27 = vmul.f32 0.015625, %v3290_v17  ;;  %v3315_v16 = vmul.f32 %v8715_v20, %v8715_v20 }
 0x926   :  { %v8720_v45 = vsub.f32 %v3266_v19, %v3300_v27  ;;  %v3333_v5 = vsel %vm1001_vm10, %v3315_v16, 0.0  ;;  %v7312_v19 = vld [vmem:[%s9490_s24 + $0x28] sm:$0xff]   ;;  %v6547_v16 = vld [vmem:[%s9436_s13] ss:$0 sm:$0xff] }
 0x927   :  { %3334 = vadd.xlane.f32.xlu0 %v3333_v5  ;;  %v3293_v46 = vpop.xlane.xlu0 %3292  ;;  %7124 = vmatprep.subr.bf16.mxu0 %v7312_v19 }
 0x928   :  { %v3301_v39 = vmul.f32 0.015625, %v3293_v46  ;;  %v3316_v48 = vmul.f32 %v8720_v45, %v8720_v45  ;;  %7125 = vmatpush3.bf16.msra.mxu0 %v7312_v19 }
 0x929   :  { %7126 = vmatprep.subr.bf16.mxu0 %v7314_v2 }
 0x92a   :  { %v8725_v14 = vsub.f32 %v3267_v54, %v3301_v39  ;;  %v3336_v4 = vsel %vm1001_vm10, %v3316_v48, 0.0  ;;  %v8759_v54 = vld [vmem:[%s9491_s5 + $0x38] sm:$0xff]  }
 0x92b   :  { %3337 = vadd.xlane.f32.xlu1 %v3336_v4  ;;  %7104 = vmatprep.subr.bf16.mxu1 %v8759_v54 }
 0x92c   :  { %v3317_v55 = vmul.f32 %v8725_v14, %v8725_v14  ;;  %7127 = vmatpush3.bf16.msra.mxu0 %v7314_v2 }
 0x92d   :  { %7156 = vmatprep.subr.mxu0 %v9512_v15 }
 0x92e   :  { %v3339_v36 = vsel %vm1001_vm10, %v3317_v55, 0.0 }
 0x92f   :  { %3340 = vadd.xlane.f32.xlu0 %v3339_v36 }
 0x99c   :  { %v3320_v42 = vpop.xlane.xlu1 %3319 }
 0x99d   :  { %v3342_v34 = vmul.f32 0.015625, %v3320_v42 }
 0x99f   :  { %v3350_v24 = vadd.f32 1e-05, %v3342_v34 }
 0x9a0   :  { %v3323_v43 = vpop.xlane.xlu0 %3322 }
 0x9a1   :  { %7399 = vrsqrt.f32 %v3350_v24  ;;  %v3343_v8 = vmul.f32 0.015625, %v3323_v43 }
 0x9a3   :  { %v3351_v18 = vadd.f32 1e-05, %v3343_v8 }
 0x9a4   :  { %v3326_v0 = vpop.xlane.xlu1 %3325 }
 0x9a5   :  { %7401 = vrsqrt.f32 %v3351_v18  ;;  %v3344_v62 = vmul.f32 0.015625, %v3326_v0 }
 0x9a7   :  { %v3352_v6 = vadd.f32 1e-05, %v3344_v62 }
 0x9a8   :  { %v3329_v57 = vpop.xlane.xlu0 %3328 }
 0x9a9   :  { %7403 = vrsqrt.f32 %v3352_v6  ;;  %v3345_v44 = vmul.f32 0.015625, %v3329_v57 }
 0x9ab   :  { %v3353_v61 = vadd.f32 1e-05, %v3345_v44 }
 0x9ac   :  { %v3332_v23 = vpop.xlane.xlu1 %3331 }
 0x9ad   :  { %7405 = vrsqrt.f32 %v3353_v61  ;;  %v3346_v56 = vmul.f32 0.015625, %v3332_v23 }
 0x9ae   :  { %v7400_v35 = vpop.eup %7399 }
 0x9af   :  { %v3354_v22 = vadd.f32 1e-05, %v3346_v56  ;;  %v3366_v63 = vmul.f32 %v7400_v35, %v8691_v26 }
 0x9b0   :  { %v3335_v51 = vpop.xlane.xlu0 %3334 }
 0x9b1   :  { %7407 = vrsqrt.f32 %v3354_v22  ;;  %v3347_v9 = vmul.f32 0.015625, %v3335_v51  ;;  %v3380_v17 = vmul.f32 %v6546_v40, %v3366_v63 }
 0x9b2   :  { %v7402_v52 = vpop.eup %7401 }
 0x9b3   :  { %v3355_v31 = vadd.f32 1e-05, %v3347_v9  ;;  %v3367_v29 = vmul.f32 %v7402_v52, %v8695_v49  ;;  %v8771_v4 = vadd.f32 %v6547_v16, %v3380_v17 }
 0x9b4   :  { %v3338_v27 = vpop.xlane.xlu1 %3337 }
 0x9b5   :  { %7409 = vrsqrt.f32 %v3355_v31  ;;  %v3348_v5 = vmul.f32 0.015625, %v3338_v27  ;;  %v3381_v26 = vmul.f32 %v6546_v40, %v3367_v29 }
 0x9b6   :  { %v7404_v46 = vpop.eup %7403 }
 0x9b7   :  { %v3368_v39 = vmul.f32 %v7404_v46, %v8700_v60  ;;  %v3356_v48 = vadd.f32 1e-05, %v3348_v5  ;;  %v8773_v55 = vadd.f32 %v6547_v16, %v3381_v26 }
 0x9b8   :  { %v3341_v36 = vpop.xlane.xlu0 %3340 }
 0x9b9   :  { %7411 = vrsqrt.f32 %v3356_v48  ;;  %v3349_v49 = vmul.f32 0.015625, %v3341_v36  ;;  %v3402_v12 = vpack.c.bf16 %v8773_v55, %v8771_v4  ;;  %v3382_v7 = vmul.f32 %v6546_v40, %v3368_v39 }
 0x9ba   :  { %v7406_v11 = vpop.eup %7405 }
 0x9bb   :  { %v3369_v41 = vmul.f32 %v7406_v11, %v8705_v1  ;;  %v3357_v50 = vadd.f32 1e-05, %v3349_v49  ;;  %7096 = vmatprep.mubr.msk.bf16.mxu1 %vm1001_vm10, %v3402_v12  ;;  %7128 = vmatprep.mubr.msk.bf16.mxu0 %vm1001_vm10, %v3402_v12  ;;  %v8780_v32 = vadd.f32 %v6547_v16, %v3382_v7  ;;  %v7316_v1 = vld [vmem:[%s9491_s5 + $0x30] sm:$0xff]  }
 0x9bd   :  { %v3383_v60 = vmul.f32 %v6546_v40, %v3369_v41  ;;  %7413 = vrsqrt.f32 %v3357_v50  ;;  %v6575_v50 = vld [vmem:[%s9513_s4 + $0x1] ss:$0 sm:$0xff] }
 0x9be   :  { %v7408_v19 = vpop.eup %7407 }
 0x9bf   :  { %v8782_v2 = vadd.f32 %v6547_v16, %v3383_v60  ;;  %v3370_v42 = vmul.f32 %v7408_v19, %v8710_v25  ;;  %v7317_v25 = vld [vmem:[%s9491_s5 + $0x28] sm:$0xff]  }
 0x9c1   :  { %v3403_v34 = vpack.c.bf16 %v8782_v2, %v8780_v32  ;;  %v3384_v8 = vmul.f32 %v6546_v40, %v3370_v42 }
 0x9c2   :  { %v7410_v24 = vpop.eup %7409 }
 0x9c3   :  { %7097 = vmatmul.mubr.msk.bf16.vlgmr.msra.gmra.mxu1 %vm1001_vm10, %v3403_v34  ;;  %7129 = vmatmul.mubr.msk.bf16.vlgmr.msra.gmra.mxu0 %vm1001_vm10, %v3403_v34  ;;  %v3371_v43 = vmul.f32 %v7410_v24, %v8715_v20  ;;  %v8797_v62 = vadd.f32 %v6547_v16, %v3384_v8 }
 0x9c4   :  { %7105 = vmatpush3.bf16.msra.mxu1 %v8759_v54  ;;  %v7318_v54 = vld [vmem:[%s9491_s5 + $0x20] sm:$0xff]  }
 0x9c5   :  { %v3385_v18 = vmul.f32 %v6546_v40, %v3371_v43  ;;  %7106 = vmatprep.subr.bf16.mxu1 %v7316_v1 }
 0x9c6   :  { %v7412_v0 = vpop.eup %7411 }
 0x9c7   :  { %v8799_v6 = vadd.f32 %v6547_v16, %v3385_v18  ;;  %v3372_v57 = vmul.f32 %v7412_v0, %v8720_v45 }
 0x9c8   :  { %7107 = vmatpush3.bf16.msra.mxu1 %v7316_v1 }
 0x9c9   :  { %v3404_v20 = vpack.c.bf16 %v8799_v6, %v8797_v62  ;;  %7108 = vmatprep.subr.bf16.mxu1 %v7317_v25  ;;  %v3386_v23 = vmul.f32 %v6546_v40, %v3372_v57 }
 0x9ca   :  { %v7414_v44 = vpop.eup %7413 }
 0x9cb   :  { %7100 = vmatprep.mubr.msk.bf16.mxu1 %vm1001_vm10, %v3404_v20  ;;  %7132 = vmatprep.mubr.msk.bf16.mxu0 %vm1001_vm10, %v3404_v20  ;;  %v3373_v61 = vmul.f32 %v7414_v44, %v8725_v14  ;;  %v8810_v45 = vadd.f32 %v6547_v16, %v3386_v23  ;;  %v8830_v14 = vld [vmem:[%s9430_s7 + $0x1] ss:$0 sm:$0xff] }
 0x9cc   :  { %7109 = vmatpush3.bf16.msra.mxu1 %v7317_v25 }
 0x9cd   :  { %v3387_v56 = vmul.f32 %v6546_v40, %v3373_v61  ;;  %7110 = vmatprep.subr.bf16.mxu1 %v7318_v54 }
 0x9cf   :  { %v8812_v35 = vadd.f32 %v6547_v16, %v3387_v56 }
 0x9d0   :  { %7111 = vmatpush3.bf16.msra.mxu1 %v7318_v54 }
 0x9d1   :  { %v3405_v22 = vpack.c.bf16 %v8812_v35, %v8810_v45  ;;  %7136 = vmatprep.subr.mxu1 %v9512_v15 }
 0x9d3   :  { %7101 = vmatmul.mubr.msk.bf16.gmra.mxu1 %vm1001_vm10, %v3405_v22  ;;  %7133 = vmatmul.mubr.msk.bf16.gmra.mxu0 %vm1001_vm10, %v3405_v22 }
 0x9d4   :  { %7112 = vmatprep.mubr.msk.bf16.mxu1 %vm1001_vm10, %v3402_v12  ;;  %7158 = vmatprep.mubr.msk.f32.mxu0 %vm7589_vm11, %v9512_v15 }
 0x9db   :  { %7113 = vmatmul.mubr.msk.bf16.vlgmr.msra.gmra.mxu1 %vm1001_vm10, %v3403_v34  ;;  %v6557_v34 = vld [vmem:[%s9514_s1 + $0x1] ss:$0 sm:$0xff] }
 0x9dc   :  { %7116 = vmatprep.mubr.msk.bf16.mxu1 %vm1001_vm10, %v3404_v20 }
 0x9e3   :  { %7117 = vmatmul.mubr.msk.bf16.gmra.mxu1 %vm1001_vm10, %v3405_v22 }
 0x9e4   :  { %7138 = vmatprep.mubr.msk.f32.mxu1 %vm7589_vm11, %v9512_v15 }
 0xa83   :  { %v7130_v63 = vpop.f32.mrf.mxu0  ;;  %v7098_v51 = vpop.f32.mrf.mxu1 }
 0xa84   :  { %v8833_v40 = vadd.f32 %v7130_v63, %v8830_v14  ;;  %v3502_v54 = vadd.f32 %v7098_v51, %v6557_v34 }
 0xa85   :  { %v3705_v9 = vpop.f32.mrf.mxu0  ;;  %v3493_v29 = vpop.f32.mrf.mxu1 }
 0xa86   :  { %v3494_v1 = vadd.f32 %v6557_v34, %v3493_v29  ;;  %v3706_v51 = vadd.f32 %v8830_v14, %v3705_v9 }
 0xa87   :  { %v7131_v52 = vpop.f32.mrf.mxu0  ;;  %v7099_v17 = vpop.f32.mrf.mxu1 }
 0xa88   :  { %v8836_v31 = vadd.f32 %v7131_v52, %v8830_v14  ;;  %v3505_v22 = vadd.f32 %v7099_v17, %v6557_v34 }
 0xa89   :  { %v3496_v27 = vpop.f32.mrf.mxu1  ;;  %v8838_v16 = vpop.f32.mrf.mxu0 }
 0xa8a   :  { %v3497_v18 = vadd.f32 %v6557_v34, %v3496_v27  ;;  %v3709_v27 = vadd.f32 %v8830_v14, %v8838_v16 }
 0xa93   :  { %v7102_v5 = vpop.f32.mrf.mxu1  ;;  %v7134_v26 = vpop.f32.mrf.mxu0 }
 0xa94   :  { %v8841_v46 = vadd.f32 %v7134_v26, %v8830_v14  ;;  %v3518_v63 = vadd.f32 %v7102_v5, %v6557_v34 }
 0xa95   :  { %v3509_v39 = vpop.f32.mrf.mxu1  ;;  %v3721_v48 = vpop.f32.mrf.mxu0 }
 0xa96   :  { %v8844_v36 = vadd.f32 %v8830_v14, %v3721_v48  ;;  %v3510_v44 = vadd.f32 %v6557_v34, %v3509_v39 }
 0xa97   :  { %v7103_v49 = vpop.f32.mrf.mxu1  ;;  %v7135_v12 = vpop.f32.mrf.mxu0 }
 0xa98   :  { %v8847_v11 = vadd.f32 %v7135_v12, %v8830_v14  ;;  %v3521_v9 = vadd.f32 %v7103_v49, %v6557_v34 }
 0xa99   :  { %v3512_v7 = vpop.f32.mrf.mxu1 }
 0xa9a   :  { %v3513_v29 = vadd.f32 %v6557_v34, %v3512_v7 }
 0xa9b   :  { %v7114_v41 = vpop.f32.mrf.mxu1 }
 0xa9c   :  { %v3608_v0 = vadd.f32 %v7114_v41, %v6575_v50  ;;  %v8902_v41 = vpop.f32.mrf.mxu0 }
 0xa9d   :  { %v3599_v60 = vpop.f32.mrf.mxu1 }
 0xa9e   :  { %v3600_v19 = vadd.f32 %v6575_v50, %v3599_v60 }
 0xa9f   :  { %v7115_v42 = vpop.f32.mrf.mxu1 }
 0xaa0   :  { %7137 = vmatpush3.xpose.msk.msra.mxu1 %vm1001_vm10, %v3600_v19  ;;  %v3611_v61 = vadd.f32 %v7115_v42, %v6575_v50 }
 0xaa1   :  { %v3602_v24 = vpop.f32.mrf.mxu1  ;;  %7141 = vmatprep.subr.mxu1 %v9512_v15 }
 0xaa2   :  { %v3603_v43 = vadd.f32 %v6575_v50, %v3602_v24 }
 0xaa3   :  { %v7118_v8 = vpop.f32.mrf.mxu1  ;;  %7139 = vmatmul.mubr.msk.f32.vlgmr.msra.gmra.mxu1 %vm1001_vm10, %v3494_v1 }
 0xaa4   :  { %7142 = vmatpush3.xpose.msk.msra.mxu1 %vm1001_vm10, %v3603_v43  ;;  %7143 = vmatprep.mubr.msk.f32.mxu1 %vm7589_vm11, %v9512_v15  ;;  %v3624_v23 = vadd.f32 %v7118_v8, %v6575_v50 }
 0xaa5   :  { %v3615_v25 = vpop.f32.mrf.mxu1  ;;  %7146 = vmatprep.subr.mxu1 %v9512_v15 }
 0xaa6   :  { %v3616_v57 = vadd.f32 %v6575_v50, %v3615_v25 }
 0xaa7   :  { %v7119_v20 = vpop.f32.mrf.mxu1  ;;  %7144 = vmatmul.mubr.msk.f32.vlgmr.msra.gmra.mxu1 %vm1001_vm10, %v3497_v18 }
 0xaa8   :  { %7147 = vmatpush3.xpose.msk.msra.mxu1 %vm1001_vm10, %v3608_v0  ;;  %7157 = vmatpush3.xpose.msk.msra.mxu0 %vm1001_vm10, %v3616_v57  ;;  %v3627_v17 = vadd.f32 %v7119_v20, %v6575_v50 }
 0xaa9   :  { %7148 = vmatprep.mubr.msk.f32.mxu1 %vm7589_vm11, %v9512_v15  ;;  %7151 = vmatprep.subr.mxu1 %v9512_v15  ;;  %v3618_v56 = vpop.f32.mrf.mxu1 }
 0xaaa   :  { %7166 = vmatprep.subr.mxu0 %v9512_v15  ;;  %v3619_v52 = vadd.f32 %v6575_v50, %v3618_v56 }
 0xaab   :  { %7149 = vmatmul.mubr.msk.f32.vlgmr.msra.gmra.mxu1 %vm1001_vm10, %v3502_v54  ;;  %7159 = vmatmul.mubr.msk.f32.vlgmr.msra.gmra.mxu0 %vm1001_vm10, %v3510_v44 }
 0xaac   :  { %7152 = vmatpush3.xpose.msk.msra.mxu1 %vm1001_vm10, %v3611_v61  ;;  %7167 = vmatpush3.xpose.msk.msra.mxu0 %vm1001_vm10, %v3624_v23 }
 0xaad   :  { %7153 = vmatprep.mubr.msk.f32.mxu1 %vm7589_vm11, %v9512_v15  ;;  %7168 = vmatprep.mubr.msk.f32.mxu0 %vm7589_vm11, %v9512_v15 }
 0xaae   :  { %7161 = vmatprep.subr.mxu1 %v9512_v15  ;;  %7176 = vmatprep.subr.mxu0 %v9512_v15 }
 0xaaf   :  { %7154 = vmatmul.mubr.msk.f32.vlgmr.msra.gmra.mxu1 %vm1001_vm10, %v3505_v22  ;;  %7169 = vmatmul.mubr.msk.f32.vlgmr.msra.gmra.mxu0 %vm1001_vm10, %v3518_v63 }
 0xab0   :  { %7162 = vmatpush3.xpose.msk.msra.mxu1 %vm1001_vm10, %v3619_v52  ;;  %7177 = vmatpush3.msra.mxu0 %v3706_v51 }
 0xab1   :  { %7163 = vmatprep.mubr.msk.f32.mxu1 %vm7589_vm11, %v9512_v15  ;;  %7171 = vmatprep.subr.mxu1 %v9512_v15 }
 0xab2   :  { %7178 = vmatprep.mubr.msk.f32.mxu0 %vm7589_vm11, %v9512_v15  ;;  %7186 = vmatprep.subr.mxu0 %v9512_v15 }
 0xab3   :  { %7164 = vmatmul.mubr.msk.f32.vlgmr.msra.gmra.mxu1 %vm1001_vm10, %v3513_v29 }
 0xab4   :  { %7172 = vmatpush3.xpose.msk.msra.mxu1 %vm1001_vm10, %v3627_v17  ;;  %7173 = vmatprep.mubr.msk.f32.mxu1 %vm7589_vm11, %v9512_v15 }
 0xab5   :  { %7181 = vmatprep.subr.mxu1 %v9512_v15 }
 0xab7   :  { %7174 = vmatmul.mubr.msk.f32.vlgmr.msra.gmra.mxu1 %vm1001_vm10, %v3521_v9 }
 0xab8   :  { %7182 = vmatpush3.msra.mxu1 %v3709_v27  ;;  %7183 = vmatprep.mubr.msk.f32.mxu1 %vm7589_vm11, %v9512_v15 }
 0xab9   :  { %7191 = vmatprep.subr.mxu1 %v9512_v15 }
 0xb63   :  { %v3808_v5 = vpop.f32.mrf.mxu1 }
 0xb64   :  { %v4344_v26 = vmul.f32 0.125, %v3808_v5 }
 0xb65   :  { %v7140_v39 = vpop.f32.mrf.mxu1 }
 0xb66   :  { %v4352_v48 = vadd.f32 %v4344_v26, %v8392_v37 }
 0xb67   :  { %v3884_v12 = vpop.f32.mrf.mxu1 }
 0xb68   :  { %v4345_v49 = vmul.f32 0.125, %v3884_v12  ;;  %v4360_v7 = vsel %vm1951_vm12, %v4352_v48, -inf }
 0xb69   :  { %4361 = vmax.xlane.f32.xlu1 %v4360_v7  ;;  %v7145_v16 = vpop.f32.mrf.mxu1 }
 0xb6a   :  { %v4353_v50 = vadd.f32 %v4345_v49, %v8396_v28 }
 0xb6b   :  { %v3960_v60 = vpop.f32.mrf.mxu1  ;;  %v4112_v19 = vpop.f32.mrf.mxu0 }
 0xb6c   :  { %v4346_v42 = vmul.f32 0.125, %v3960_v60  ;;  %v4348_v34 = vmul.f32 0.125, %v4112_v19  ;;  %v4363_v1 = vsel %vm1951_vm12, %v4353_v50, -inf }
 0xb6d   :  { %4364 = vmax.xlane.f32.xlu0 %v4363_v1  ;;  %v7150_v24 = vpop.f32.mrf.mxu1  ;;  %v7160_v43 = vpop.f32.mrf.mxu0 }
 0xb6e   :  { %v4354_v37 = vadd.f32 %v4346_v42, %v8402_v38  ;;  %v4356_v25 = vadd.f32 %v4348_v34, %v8406_v58 }
 0xb6f   :  { %v4036_v8 = vpop.f32.mrf.mxu1  ;;  %v4264_v18 = vpop.f32.mrf.mxu0 }
 0xb70   :  { %v4347_v0 = vmul.f32 0.125, %v4036_v8  ;;  %v4350_v57 = vmul.f32 0.125, %v4264_v18  ;;  %v4366_v20 = vsel %vm1951_vm12, %v4354_v37, -inf  ;;  %v4372_v38 = vsel %vm1951_vm12, %v4356_v25, -inf }
 0xb71   :  { %4367 = vmax.xlane.f32.xlu1 %v4366_v20  ;;  %v7155_v28 = vpop.f32.mrf.mxu1  ;;  %v7170_v54 = vpop.f32.mrf.mxu0 }
 0xb72   :  { %v4355_v44 = vadd.f32 %v4347_v0, %v8410_v47  ;;  %v4358_v23 = vadd.f32 %v4350_v57, %v8415_v53 }
 0xb73   :  { %v4188_v61 = vpop.f32.mrf.mxu1 }
 0xb74   :  { %v4349_v56 = vmul.f32 0.125, %v4188_v61  ;;  %v4369_v22 = vsel %vm1951_vm12, %v4355_v44, -inf  ;;  %v4378_v17 = vsel %vm1951_vm12, %v4358_v23, -inf }
 0xb75   :  { %4370 = vmax.xlane.f32.xlu0 %v4369_v22  ;;  %v7165_v63 = vpop.f32.mrf.mxu1  ;;  %4373 = vmax.xlane.f32.xlu1 %v4372_v38 }
 0xb76   :  { %v4357_v58 = vadd.f32 %v4349_v56, %v8422_v30 }
 0xb77   :  { %v4340_v51 = vpop.f32.mrf.mxu1 }
 0xb78   :  { %v4351_v52 = vmul.f32 0.125, %v4340_v51  ;;  %v4375_v29 = vsel %vm1951_vm12, %v4357_v58, -inf }
 0xb79   :  { %4376 = vmax.xlane.f32.xlu0 %v4375_v29  ;;  %v7175_v47 = vpop.f32.mrf.mxu1  ;;  %4379 = vmax.xlane.f32.xlu1 %v4378_v17 }
 0xb7a   :  { %v4359_v53 = vadd.f32 %v4351_v52, %v8428_v33 }
 0xb7c   :  { %v4381_v9 = vsel %vm1951_vm12, %v4359_v53, -inf }
 0xb7d   :  { %4382 = vmax.xlane.f32.xlu0 %v4381_v9 }
 0xbf2   :  { %v4362_v27 = vpop.xlane.xlu1 %4361 }
 0xbf3   :  { %v4384_v5 = vsub.f32 %v4352_v48, %v4362_v27 }
 0xbf5   :  { %v4392_v26 = vmul.f32 1.442695, %v4384_v5 }
 0xbf6   :  { %v4365_v39 = vpop.xlane.xlu0 %4364 }
 0xbf7   :  { %7415 = vpow2.f32 %v4392_v26  ;;  %v4385_v30 = vsub.f32 %v4353_v50, %v4365_v39 }
 0xbf9   :  { %v4394_v12 = vmul.f32 1.442695, %v4385_v30 }
 0xbfa   :  { %v4368_v49 = vpop.xlane.xlu1 %4367 }
 0xbfb   :  { %7417 = vpow2.f32 %v4394_v12  ;;  %v4386_v7 = vsub.f32 %v4354_v37, %v4368_v49 }
 0xbfd   :  { %v4396_v16 = vmul.f32 1.442695, %v4386_v7 }
 0xbfe   :  { %v4371_v60 = vpop.xlane.xlu0 %4370  ;;  %v4374_v19 = vpop.xlane.xlu1 %4373 }
 0xbff   :  { %7419 = vpow2.f32 %v4396_v16  ;;  %v4387_v42 = vsub.f32 %v4355_v44, %v4371_v60  ;;  %v4388_v34 = vsub.f32 %v4356_v25, %v4374_v19 }
 0xc01   :  { %v4398_v33 = vmul.f32 1.442695, %v4387_v42  ;;  %v4400_v1 = vmul.f32 1.442695, %v4388_v34 }
 0xc02   :  { %v4377_v24 = vpop.xlane.xlu0 %4376  ;;  %v4380_v43 = vpop.xlane.xlu1 %4379 }
 0xc03   :  { %7421 = vpow2.f32 %v4398_v33  ;;  %v4389_v48 = vsub.f32 %v4357_v58, %v4377_v24  ;;  %v4390_v8 = vsub.f32 %v4358_v23, %v4380_v43 }
 0xc04   :  { %v7416_v18 = vpop.eup %7415  ;;  %7423 = vpow2.f32 %v4400_v1  ;;  %v7319_v1 = vld [vmem:[%s9431_s8 + $0x38] sm:$0xff]  }
 0xc05   :  { %v4402_v50 = vmul.f32 1.442695, %v4389_v48  ;;  %v4404_v0 = vmul.f32 1.442695, %v4390_v8  ;;  %v4408_v57 = vsel %vm1951_vm12, %v7416_v18, 0.0  ;;  %v7320_v48 = vld [vmem:[%s9431_s8 + $0x30] sm:$0xff]  }
 0xc06   :  { %v4383_v37 = vpop.xlane.xlu0 %4382  ;;  %4409 = vadd.xlane.f32.xlu1 %v4408_v57  ;;  %v7321_v8 = vld [vmem:[%s9431_s8 + $0x28] sm:$0xff]  }
 0xc07   :  { %7425 = vpow2.f32 %v4402_v50  ;;  %v4391_v20 = vsub.f32 %v4359_v53, %v4383_v37 }
 0xc08   :  { %v7418_v28 = vpop.eup %7417  ;;  %7427 = vpow2.f32 %v4404_v0 }
 0xc09   :  { %v4406_v25 = vmul.f32 1.442695, %v4391_v20  ;;  %v4411_v54 = vsel %vm1951_vm12, %v7418_v28, 0.0 }
 0xc0a   :  { %4412 = vadd.xlane.f32.xlu0 %v4411_v54 }
 0xc0b   :  { %7429 = vpow2.f32 %v4406_v25 }
 0xc0c   :  { %v7420_v44 = vpop.eup %7419 }
 0xc0d   :  { %v4414_v61 = vsel %vm1951_vm12, %v7420_v44, 0.0 }
 0xc0e   :  { %4415 = vadd.xlane.f32.xlu1 %v4414_v61 }
 0xc10   :  { %v7422_v23 = vpop.eup %7421 }
 0xc11   :  { %v7424_v56 = vpop.eup %7423  ;;  %v4417_v22 = vsel %vm1951_vm12, %v7422_v23, 0.0 }
 0xc12   :  { %4418 = vadd.xlane.f32.xlu0 %v4417_v22  ;;  %v4420_v38 = vsel %vm1951_vm12, %v7424_v56, 0.0 }
 0xc13   :  { %4421 = vadd.xlane.f32.xlu1 %v4420_v38 }
 0xc14   :  { %v7426_v63 = vpop.eup %7425 }
 0xc15   :  { %v7428_v58 = vpop.eup %7427  ;;  %v4423_v51 = vsel %vm1951_vm12, %v7426_v63, 0.0 }
 0xc16   :  { %4424 = vadd.xlane.f32.xlu0 %v4423_v51  ;;  %v4426_v52 = vsel %vm1951_vm12, %v7428_v58, 0.0 }
 0xc17   :  { %4427 = vadd.xlane.f32.xlu1 %v4426_v52 }
 0xc18   :  { %v7430_v29 = vpop.eup %7429 }
 0xc19   :  { %v4429_v17 = vsel %vm1951_vm12, %v7430_v29, 0.0 }
 0xc1a   :  { %4430 = vadd.xlane.f32.xlu0 %v4429_v17 }
 0xc8f   :  { %v4410_v47 = vpop.xlane.xlu1 %4409 }
 0xc90   :  { %7431 = vrcp.f32 %v4410_v47  ;;  %v6635_v47 = vld [vmem:[%s9432_s9 + $0x1] ss:$0 sm:$0xff] }
 0xc93   :  { %v4413_v53 = vpop.xlane.xlu0 %4412 }
 0xc94   :  { %7433 = vrcp.f32 %v4413_v53 }
 0xc97   :  { %v4416_v9 = vpop.xlane.xlu1 %4415 }
 0xc98   :  { %7435 = vrcp.f32 %v4416_v9 }
 0xc9b   :  { %v4419_v27 = vpop.xlane.xlu0 %4418 }
 0xc9c   :  { %7437 = vrcp.f32 %v4419_v27  ;;  %v4422_v5 = vpop.xlane.xlu1 %4421 }
 0xc9d   :  { %v7432_v26 = vpop.eup %7431  ;;  %7439 = vrcp.f32 %v4422_v5 }
 0xc9e   :  { %v4440_v39 = vmul.f32 %v7432_v26, %v7416_v18 }
 0xc9f   :  { %v4425_v30 = vpop.xlane.xlu0 %4424 }
 0xca0   :  { %7441 = vrcp.f32 %v4425_v30  ;;  %v4428_v12 = vpop.xlane.xlu1 %4427  ;;  %7179 = vmatmul.mubr.msk.f32.vlgmr.msra.gmra.mxu0 %vm1951_vm12, %v4440_v39 }
 0xca1   :  { %v7434_v49 = vpop.eup %7433  ;;  %7443 = vrcp.f32 %v4428_v12  ;;  %7187 = vmatpush3.msra.mxu0 %v8833_v40  ;;  %7188 = vmatprep.mubr.msk.f32.mxu0 %vm7589_vm11, %v9512_v15 }
 0xca2   :  { %v4441_v7 = vmul.f32 %v7434_v49, %v7418_v28  ;;  %7196 = vmatprep.subr.mxu0 %v9512_v15 }
 0xca3   :  { %v4431_v16 = vpop.xlane.xlu0 %4430 }
 0xca4   :  { %7445 = vrcp.f32 %v4431_v16  ;;  %7184 = vmatmul.mubr.msk.f32.vlgmr.msra.gmra.mxu1 %vm1951_vm12, %v4441_v7 }
 0xca5   :  { %v7436_v60 = vpop.eup %7435  ;;  %7192 = vmatpush3.msra.mxu1 %v8836_v31  ;;  %7193 = vmatprep.mubr.msk.f32.mxu1 %vm7589_vm11, %v9512_v15  ;;  %v3725_v31 = vadd.f32 %v8830_v14, %v8902_v41 }
 0xca6   :  { %v4442_v19 = vmul.f32 %v7436_v60, %v7420_v44  ;;  %7201 = vmatprep.subr.mxu1 %v9512_v15 }
 0xca8   :  { %7189 = vmatmul.mubr.msk.f32.vlgmr.msra.gmra.mxu0 %vm1951_vm12, %v4442_v19 }
 0xca9   :  { %v7438_v40 = vpop.eup %7437  ;;  %7197 = vmatpush3.msra.mxu0 %v8844_v36  ;;  %7198 = vmatprep.mubr.msk.f32.mxu0 %vm7589_vm11, %v9512_v15 }
 0xcaa   :  { %v7440_v42 = vpop.eup %7439  ;;  %7206 = vmatprep.subr.mxu0 %v9512_v15  ;;  %v4443_v34 = vmul.f32 %v7438_v40, %v7422_v23 }
 0xcab   :  { %v4444_v33 = vmul.f32 %v7440_v42, %v7424_v56 }
 0xcac   :  { %7194 = vmatmul.mubr.msk.f32.vlgmr.msra.gmra.mxu1 %vm1951_vm12, %v4443_v34 }
 0xcad   :  { %v7442_v24 = vpop.eup %7441  ;;  %7199 = vmatmul.mubr.msk.f32.vlgmr.msra.gmra.mxu0 %vm1951_vm12, %v4444_v33  ;;  %7202 = vmatpush3.msra.mxu1 %v3725_v31 }
 0xcae   :  { %v7444_v36 = vpop.eup %7443  ;;  %7207 = vmatpush3.msra.mxu0 %v8841_v46  ;;  %7203 = vmatprep.mubr.msk.f32.mxu1 %vm7589_vm11, %v9512_v15  ;;  %v4445_v43 = vmul.f32 %v7442_v24, %v7426_v63 }
 0xcaf   :  { %7208 = vmatprep.mubr.msk.f32.mxu0 %vm7589_vm11, %v9512_v15  ;;  %7211 = vmatprep.subr.mxu1 %v9512_v15  ;;  %v4446_v14 = vmul.f32 %v7444_v36, %v7428_v58 }
 0xcb0   :  { %7204 = vmatmul.mubr.msk.f32.vlgmr.msra.gmra.mxu1 %vm1951_vm12, %v4445_v43  ;;  %7216 = vmatprep.subr.bf16.mxu0 %v7319_v1 }
 0xcb1   :  { %v7446_v41 = vpop.eup %7445  ;;  %7209 = vmatmul.mubr.msk.f32.vlgmr.msra.gmra.mxu0 %vm1951_vm12, %v4446_v14  ;;  %7212 = vmatpush3.msra.mxu1 %v8847_v11  ;;  %v7322_v11 = vld [vmem:[%s9431_s8 + $0x20] sm:$0xff]  }
 0xcb2   :  { %7213 = vmatprep.mubr.msk.f32.mxu1 %vm7589_vm11, %v9512_v15  ;;  %v4447_v46 = vmul.f32 %v7446_v41, %v7430_v29  ;;  %7217 = vmatpush3.bf16.msra.mxu0 %v7319_v1 }
 0xcb3   :  { %7218 = vmatprep.subr.bf16.mxu0 %v7320_v48 }
 0xcb4   :  { %7214 = vmatmul.mubr.msk.f32.vlgmr.msra.gmra.mxu1 %vm1951_vm12, %v4447_v46 }
 0xcb5   :  { %5408 = vmatprep.mubr.bf16.mxu1 %v7591_v21 }
 0xcb6   :  { %7219 = vmatpush3.bf16.msra.mxu0 %v7320_v48 }
 0xcb7   :  { %7220 = vmatprep.subr.bf16.mxu0 %v7321_v8 }
 0xcba   :  { %7221 = vmatpush3.bf16.msra.mxu0 %v7321_v8 }
 0xcbb   :  { %7222 = vmatprep.subr.bf16.mxu0 %v7322_v11 }
 0xcbe   :  { %7223 = vmatpush3.bf16.msra.mxu0 %v7322_v11 }
 0xd60   :  { %v4517_v18 = vpop.f32.mrf.mxu0 }
 0xd62   :  { %v7180_v50 = vpop.f32.mrf.mxu0 }
 0xd64   :  { %v4590_v0 = vpop.f32.mrf.mxu1 }
 0xd65   :  { %v5032_v57 = vpack.c.bf16 %v4590_v0, %v4517_v18 }
 0xd66   :  { %v7185_v37 = vpop.f32.mrf.mxu1 }
 0xd67   :  { %7224 = vmatprep.mubr.msk.bf16.mxu0 %vm1001_vm10, %v5032_v57 }
 0xd68   :  { %v4663_v20 = vpop.f32.mrf.mxu0 }
 0xd6a   :  { %v7190_v28 = vpop.f32.mrf.mxu0 }
 0xd6c   :  { %v4736_v25 = vpop.f32.mrf.mxu1 }
 0xd6d   :  { %v5033_v54 = vpack.c.bf16 %v4736_v25, %v4663_v20  ;;  %v4809_v44 = vpop.f32.mrf.mxu0 }
 0xd6e   :  { %v7195_v61 = vpop.f32.mrf.mxu1 }
 0xd6f   :  { %v7200_v23 = vpop.f32.mrf.mxu0  ;;  %7225 = vmatmul.mubr.msk.bf16.vlgmr.msra.gmra.mxu0 %vm1001_vm10, %v5033_v54 }
 0xd70   :  { %v4882_v56 = vpop.f32.mrf.mxu1 }
 0xd71   :  { %v5034_v22 = vpack.c.bf16 %v4882_v56, %v4809_v44  ;;  %v4955_v38 = vpop.f32.mrf.mxu0 }
 0xd72   :  { %v7205_v63 = vpop.f32.mrf.mxu1 }
 0xd73   :  { %v7210_v58 = vpop.f32.mrf.mxu0  ;;  %7228 = vmatprep.mubr.msk.bf16.mxu0 %vm1001_vm10, %v5034_v22 }
 0xd74   :  { %v5028_v51 = vpop.f32.mrf.mxu1 }
 0xd75   :  { %v5035_v52 = vpack.c.bf16 %v5028_v51, %v4955_v38 }
 0xd76   :  { %v7215_v29 = vpop.f32.mrf.mxu1 }
 0xd77   :  { %7229 = vmatmul.mubr.msk.bf16.gmra.mxu0 %vm1001_vm10, %v5035_v52 }
 0xe2f   :  { %v7226_v17 = vpop.f32.mrf.mxu0 }
 0xe30   :  { %v5132_v9 = vadd.f32 %v7226_v17, %v6635_v47 }
 0xe31   :  { %v5123_v53 = vpop.f32.mrf.mxu0 }
 0xe32   :  { %v5124_v27 = vadd.f32 %v6635_v47, %v5123_v53  ;;  %v5156_v12 = vadd.f32 %v5132_v9, %v8780_v32 }
 0xe33   :  { %v7227_v5 = vpop.f32.mrf.mxu0 }
 0xe34   :  { %v5154_v26 = vadd.f32 %v5124_v27, %v8771_v4  ;;  %v5135_v39 = vadd.f32 %v7227_v5, %v6635_v47  ;;  %v5172_v4 = vsel %vm1001_vm10, %v5156_v12, 0.0 }
 0xe35   :  { %v5126_v30 = vpop.f32.mrf.mxu0 }
 0xe36   :  { %v5127_v49 = vadd.f32 %v6635_v47, %v5126_v30  ;;  %v5166_v7 = vsel %vm1001_vm10, %v5154_v26, 0.0  ;;  %v5157_v19 = vadd.f32 %v5135_v39, %v8782_v2 }
 0xe37   :  { %v7230_v16 = vpop.f32.mrf.mxu0  ;;  %5167 = vadd.xlane.f32.xlu1 %v5166_v7 }
 0xe38   :  { %v5155_v60 = vadd.f32 %v5127_v49, %v8773_v55  ;;  %v5148_v42 = vadd.f32 %v7230_v16, %v6635_v47  ;;  %v5175_v24 = vsel %vm1001_vm10, %v5157_v19, 0.0 }
 0xe39   :  { %v5139_v40 = vpop.f32.mrf.mxu0 }
 0xe3a   :  { %v5140_v34 = vadd.f32 %v6635_v47, %v5139_v40  ;;  %v5169_v31 = vsel %vm1001_vm10, %v5155_v60, 0.0  ;;  %v5160_v36 = vadd.f32 %v5148_v42, %v8810_v45  ;;  %v7325_v40 = vld [vmem:[%s9437_s14 + $0x74] ss:$8 sps:$4 sm:$0xff]   ;;  %v7323_v42 = vld [vmem:[%s9437_s14 + $0x70] ss:$8 sps:$4 sm:$0xff]  }
 0xe3b   :  { %v7231_v33 = vpop.f32.mrf.mxu0  ;;  %5170 = vadd.xlane.f32.xlu0 %v5169_v31  ;;  %5173 = vadd.xlane.f32.xlu1 %v5172_v4  ;;  %v7326_v31 = vld [vmem:[%s9437_s14 + $0x60] ss:$8 sps:$4 sm:$0xff]   ;;  %v7329_v4 = vld [vmem:[%s9437_s14 + $0x50] ss:$8 sps:$4 sm:$0xff]  }
 0xe3c   :  { %v5158_v32 = vadd.f32 %v5140_v34, %v8797_v62  ;;  %v5151_v55 = vadd.f32 %v7231_v33, %v6635_v47  ;;  %v5184_v48 = vsel %vm1001_vm10, %v5160_v36, 0.0  ;;  %5384 = vmatprep.subr.bf16.mxu1 %v7325_v40  ;;  %v7328_v34 = vld [vmem:[%s9437_s14 + $0x64] ss:$8 sps:$4 sm:$0xff]   ;;  %v7331_v33 = vld [vmem:[%s9437_s14 + $0x54] ss:$8 sps:$4 sm:$0xff]  }
 0xe3d   :  { %v5142_v1 = vpop.f32.mrf.mxu0  ;;  %5385 = vmatpush1.bf16.msra.mxu1 %v7323_v42 }
 0xe3e   :  { %v5143_v43 = vadd.f32 %v6635_v47, %v5142_v1  ;;  %v5178_v2 = vsel %vm1001_vm10, %v5158_v32, 0.0  ;;  %v5161_v41 = vadd.f32 %v5151_v55, %v8812_v35  ;;  %5386 = vmatprep.subr.bf16.mxu1 %v7328_v34  ;;  %v7332_v1 = vld [vmem:[%s9437_s14 + $0x40] ss:$8 sps:$4 sm:$0xff]   ;;  %v7337_v55 = vld [vmem:[%s9439_s16 + $0xf0] sm:$0xff]  }
 0xe3f   :  { %5176 = vadd.xlane.f32.xlu0 %v5175_v24  ;;  %5179 = vadd.xlane.f32.xlu1 %v5178_v2  ;;  %v7335_v24 = vld [vmem:[%s9439_s16 + $0xf8] sm:$0xff]   ;;  %v7339_v2 = vld [vmem:[%s9439_s16 + $0xe8] sm:$0xff]  }
 0xe40   :  { %v5159_v14 = vadd.f32 %v5143_v43, %v8799_v6  ;;  %v5187_v62 = vsel %vm1001_vm10, %v5161_v41, 0.0  ;;  %6895 = vmatprep.subr.bf16.mxu0 %v7335_v24  ;;  %v7338_v43 = vld [vmem:[%s9439_s16 + $0xb0] sm:$0xff]  }
 0xe41   :  { %5387 = vmatpush1.bf16.msra.mxu1 %v7326_v31 }
 0xe42   :  { %v5181_v46 = vsel %vm1001_vm10, %v5159_v14, 0.0  ;;  %5388 = vmatprep.subr.bf16.mxu1 %v7331_v33 }
 0xe43   :  { %5182 = vadd.xlane.f32.xlu0 %v5181_v46  ;;  %5185 = vadd.xlane.f32.xlu1 %v5184_v48  ;;  %v7342_v46 = vld [vmem:[%s9439_s16 + $0xa0] sm:$0xff]   ;;  %v7343_v48 = vld [vmem:[%s9439_s16 + $0xd8] sm:$0xff]  }
 0xe45   :  { %5389 = vmatpush1.bf16.msra.mxu1 %v7329_v4 }
 0xe47   :  { %5188 = vadd.xlane.f32.xlu0 %v5187_v62  ;;  %v7344_v62 = vld [vmem:[%s9439_s16 + $0x98] sm:$0xff]  }
 0xec0   :  { %v5168_v45 = vpop.xlane.xlu1 %5167 }
 0xec1   :  { %v5190_v8 = vmul.f32 0.015625, %v5168_v45 }
 0xec3   :  { %v8993_v11 = vsub.f32 %v5154_v26, %v5190_v8 }
 0xec4   :  { %v5171_v18 = vpop.xlane.xlu0 %5170  ;;  %v5174_v50 = vpop.xlane.xlu1 %5173 }
 0xec5   :  { %v5191_v0 = vmul.f32 0.015625, %v5171_v18  ;;  %v5192_v57 = vmul.f32 0.015625, %v5174_v50  ;;  %v5206_v6 = vmul.f32 %v8993_v11, %v8993_v11 }
 0xec7   :  { %v8997_v35 = vsub.f32 %v5155_v60, %v5191_v0  ;;  %v8999_v37 = vsub.f32 %v5156_v12, %v5192_v57  ;;  %v5214_v20 = vsel %vm1001_vm10, %v5206_v6, 0.0 }
 0xec8   :  { %v5177_v28 = vpop.xlane.xlu0 %5176  ;;  %5215 = vadd.xlane.f32.xlu1 %v5214_v20  ;;  %v5180_v25 = vpop.xlane.xlu1 %5179 }
 0xec9   :  { %v5193_v54 = vmul.f32 0.015625, %v5177_v28  ;;  %v5194_v44 = vmul.f32 0.015625, %v5180_v25  ;;  %v5207_v61 = vmul.f32 %v8997_v35, %v8997_v35  ;;  %v5208_v23 = vmul.f32 %v8999_v37, %v8999_v37 }
 0xecb   :  { %v9006_v56 = vsub.f32 %v5157_v19, %v5193_v54  ;;  %v9008_v22 = vsub.f32 %v5158_v32, %v5194_v44  ;;  %v5217_v38 = vsel %vm1001_vm10, %v5207_v61, 0.0  ;;  %v5220_v63 = vsel %vm1001_vm10, %v5208_v23, 0.0  ;;  %v7334_v32 = vld [vmem:[%s9437_s14 + $0x44] ss:$8 sps:$4 sm:$0xff]  }
 0xecc   :  { %5218 = vadd.xlane.f32.xlu0 %v5217_v38  ;;  %v5183_v58 = vpop.xlane.xlu0 %5182  ;;  %5221 = vadd.xlane.f32.xlu1 %v5220_v63  ;;  %v5186_v51 = vpop.xlane.xlu1 %5185 }
 0xecd   :  { %v5195_v52 = vmul.f32 0.015625, %v5183_v58  ;;  %v5196_v29 = vmul.f32 0.015625, %v5186_v51  ;;  %v5209_v17 = vmul.f32 %v9006_v56, %v9006_v56  ;;  %v5210_v47 = vmul.f32 %v9008_v22, %v9008_v22  ;;  %5390 = vmatprep.subr.bf16.mxu1 %v7334_v32 }
 0xece   :  { %5391 = vmatpush1.bf16.msra.mxu1 %v7332_v1 }
 0xecf   :  { %v9016_v53 = vsub.f32 %v5159_v14, %v5195_v52  ;;  %v9018_v9 = vsub.f32 %v5160_v36, %v5196_v29  ;;  %v5223_v27 = vsel %vm1001_vm10, %v5209_v17, 0.0  ;;  %v5226_v5 = vsel %vm1001_vm10, %v5210_v47, 0.0  ;;  %7232 = vmatprep.subr.mxu1 %v9512_v15  ;;  %v7336_v36 = vld [vmem:[%s9439_s16 + $0xb8] sm:$0xff]   ;;  %v7340_v14 = vld [vmem:[%s9439_s16 + $0xa8] sm:$0xff]  }
 0xed0   :  { %5224 = vadd.xlane.f32.xlu0 %v5223_v27  ;;  %v5189_v26 = vpop.xlane.xlu0 %5188  ;;  %5227 = vadd.xlane.f32.xlu1 %v5226_v5 }
 0xed1   :  { %v5197_v39 = vmul.f32 0.015625, %v5189_v26  ;;  %v5211_v30 = vmul.f32 %v9016_v53, %v9016_v53  ;;  %v5212_v12 = vmul.f32 %v9018_v9, %v9018_v9  ;;  %6896 = vmatpush3.bf16.msra.mxu0 %v7336_v36  ;;  %v6646_v26 = vld [vmem:[%s9433_s10 + $0x1] ss:$0 sm:$0xff] }
 0xed2   :  { %6897 = vmatprep.subr.bf16.mxu0 %v7337_v55 }
 0xed3   :  { %v9026_v49 = vsub.f32 %v5161_v41, %v5197_v39  ;;  %v5229_v7 = vsel %vm1001_vm10, %v5211_v30, 0.0  ;;  %v5232_v16 = vsel %vm1001_vm10, %v5212_v12, 0.0  ;;  %v7341_v41 = vld [vmem:[%s9439_s16 + $0xe0] sm:$0xff]  }
 0xed4   :  { %5230 = vadd.xlane.f32.xlu0 %v5229_v7  ;;  %5233 = vadd.xlane.f32.xlu1 %v5232_v16 }
 0xed5   :  { %v5213_v60 = vmul.f32 %v9026_v49, %v9026_v49  ;;  %6898 = vmatpush3.bf16.msra.mxu0 %v7338_v43 }
 0xed6   :  { %6899 = vmatprep.subr.bf16.mxu0 %v7339_v2 }
 0xed7   :  { %v5235_v19 = vsel %vm1001_vm10, %v5213_v60, 0.0 }
 0xed8   :  { %5236 = vadd.xlane.f32.xlu0 %v5235_v19  ;;  %v6647_v19 = vld [vmem:[%s9434_s11 + $0x1] ss:$0 sm:$0xff] }
 0xed9   :  { %6900 = vmatpush3.bf16.msra.mxu0 %v7340_v14 }
 0xeda   :  { %6901 = vmatprep.subr.bf16.mxu0 %v7341_v41 }
 0xedd   :  { %6902 = vmatpush3.bf16.msra.mxu0 %v7342_v46 }
 0xede   :  { %6903 = vmatprep.subr.bf16.mxu0 %v7343_v48 }
 0xee1   :  { %6904 = vmatpush3.bf16.msra.mxu0 %v7344_v62 }
 0xf51   :  { %v5216_v45 = vpop.xlane.xlu1 %5215 }
 0xf52   :  { %v5238_v8 = vmul.f32 0.015625, %v5216_v45 }
 0xf54   :  { %v5246_v18 = vadd.f32 1e-05, %v5238_v8 }
 0xf55   :  { %v5219_v50 = vpop.xlane.xlu0 %5218  ;;  %v5222_v0 = vpop.xlane.xlu1 %5221 }
 0xf56   :  { %7447 = vrsqrt.f32 %v5246_v18  ;;  %v5239_v57 = vmul.f32 0.015625, %v5219_v50  ;;  %v5240_v6 = vmul.f32 0.015625, %v5222_v0 }
 0xf58   :  { %v5247_v20 = vadd.f32 1e-05, %v5239_v57  ;;  %v5248_v28 = vadd.f32 1e-05, %v5240_v6  ;;  %v7347_v57 = vld [vmem:[%s9439_s16 + $0xc8] sm:$0xff]  }
 0xf59   :  { %v5225_v25 = vpop.xlane.xlu0 %5224  ;;  %v5228_v54 = vpop.xlane.xlu1 %5227  ;;  %v7348_v6 = vld [vmem:[%s9439_s16 + $0x88] sm:$0xff]  }
 0xf5a   :  { %7449 = vrsqrt.f32 %v5247_v20  ;;  %v5241_v44 = vmul.f32 0.015625, %v5225_v25  ;;  %v5242_v23 = vmul.f32 0.015625, %v5228_v54  ;;  %v7349_v20 = vld [vmem:[%s9439_s16 + $0xc0] sm:$0xff]  }
 0xf5b   :  { %7451 = vrsqrt.f32 %v5248_v28  ;;  %v7350_v28 = vld [vmem:[%s9439_s16 + $0x80] sm:$0xff]  }
 0xf5c   :  { %v5249_v61 = vadd.f32 1e-05, %v5241_v44  ;;  %v5250_v58 = vadd.f32 1e-05, %v5242_v23  ;;  %v6656_v25 = vld [vmem:[%s9438_s15 + $0x2] sm:$0x3] }
 0xf5d   :  { %v5231_v38 = vpop.xlane.xlu0 %5230  ;;  %v5234_v52 = vpop.xlane.xlu1 %5233  ;;  %v5321_v44 = vrot.slane %v6656_v25, %v9517_v59 }
 0xf5e   :  { %7453 = vrsqrt.f32 %v5249_v61  ;;  %v5243_v63 = vmul.f32 0.015625, %v5231_v38  ;;  %v5244_v27 = vmul.f32 0.015625, %v5234_v52  ;;  %v5317_v61 = vrot.slane %v6656_v25, %v7724_v3 }
 0xf60   :  { %v5251_v51 = vadd.f32 1e-05, %v5243_v63  ;;  %v5252_v12 = vadd.f32 1e-05, %v5244_v27 }
 0xf61   :  { %v5237_v29 = vpop.xlane.xlu0 %5236 }
 0xf62   :  { %7455 = vrsqrt.f32 %v5251_v51  ;;  %v5245_v17 = vmul.f32 0.015625, %v5237_v29 }
 0xf63   :  { %v7448_v47 = vpop.eup %7447  ;;  %7457 = vrsqrt.f32 %v5250_v58 }
 0xf64   :  { %v5262_v5 = vmul.f32 %v7448_v47, %v8993_v11  ;;  %v5253_v39 = vadd.f32 1e-05, %v5245_v17 }
 0xf66   :  { %v5276_v16 = vmul.f32 %v6646_v26, %v5262_v5  ;;  %7459 = vrsqrt.f32 %v5253_v39 }
 0xf67   :  { %v7450_v30 = vpop.eup %7449  ;;  %7461 = vrsqrt.f32 %v5252_v12 }
 0xf68   :  { %v5263_v7 = vmul.f32 %v7450_v30, %v8997_v35  ;;  %v7452_v60 = vpop.eup %7451  ;;  %v9096_v11 = vadd.f32 %v6647_v19, %v5276_v16 }
 0xf69   :  { %v5264_v31 = vmul.f32 %v7452_v60, %v8999_v37 }
 0xf6a   :  { %v5277_v40 = vmul.f32 %v6646_v26, %v5263_v7 }
 0xf6b   :  { %v7454_v42 = vpop.eup %7453  ;;  %v5278_v1 = vmul.f32 %v6646_v26, %v5264_v31 }
 0xf6c   :  { %v9098_v34 = vadd.f32 %v6647_v19, %v5277_v40  ;;  %v5265_v4 = vmul.f32 %v7454_v42, %v9006_v56 }
 0xf6d   :  { %v9109_v43 = vadd.f32 %v6647_v19, %v5278_v1 }
 0xf6e   :  { %v5298_v35 = vpack.c.bf16 %v9098_v34, %v9096_v11  ;;  %v5279_v33 = vmul.f32 %v6646_v26, %v5265_v4 }
 0xf6f   :  { %v7456_v32 = vpop.eup %7455 }
 0xf70   :  { %6665 = vmatmul.mubr.msk.bf16.vlgmr.msra.gmra.mxu1 %vm1001_vm10, %v5298_v35  ;;  %v7458_v24 = vpop.eup %7457  ;;  %v9106_v36 = vadd.f32 %v6647_v19, %v5279_v33  ;;  %v5267_v55 = vmul.f32 %v7456_v32, %v9016_v53 }
 0xf71   :  { %5418 = vmatprep.mubr.bf16.mxu1 %v7591_v21  ;;  %v5266_v37 = vmul.f32 %v7458_v24, %v9008_v22 }
 0xf72   :  { %v5299_v56 = vpack.c.bf16 %v9106_v36, %v9109_v43  ;;  %v5281_v2 = vmul.f32 %v6646_v26, %v5267_v55 }
 0xf73   :  { %v7460_v14 = vpop.eup %7459  ;;  %v5280_v46 = vmul.f32 %v6646_v26, %v5266_v37 }
 0xf74   :  { %v7462_v41 = vpop.eup %7461  ;;  %v9116_v48 = vadd.f32 %v6647_v19, %v5281_v2  ;;  %v5269_v62 = vmul.f32 %v7460_v14, %v9026_v49 }
 0xf75   :  { %v9119_v53 = vadd.f32 %v6647_v19, %v5280_v46  ;;  %v5268_v45 = vmul.f32 %v7462_v41, %v9018_v9  ;;  %v7345_v9 = vld [vmem:[%s9439_s16 + $0xd0] sm:$0xff]  }
 0xf76   :  { %v5283_v8 = vmul.f32 %v6646_v26, %v5269_v62  ;;  %6905 = vmatprep.subr.bf16.mxu0 %v7345_v9 }
 0xf77   :  { %v5300_v22 = vpack.c.bf16 %v9116_v48, %v9119_v53  ;;  %v5282_v18 = vmul.f32 %v6646_v26, %v5268_v45 }
 0xf78   :  { %6666 = vmatmul.mubr.msk.bf16.gmra.mxu1 %vm1001_vm10, %v5299_v56  ;;  %v9126_v50 = vadd.f32 %v6647_v19, %v5283_v8 }
 0xf79   :  { %5428 = vmatprep.mubr.bf16.mxu1 %v7591_v21  ;;  %v9128_v0 = vadd.f32 %v6647_v19, %v5282_v18 }
 0xf7b   :  { %v5301_v49 = vpack.c.bf16 %v9126_v50, %v9128_v0 }
 0xf80   :  { %6667 = vmatmul.mubr.msk.bf16.gmra.mxu1 %vm1001_vm10, %v5300_v22 }
 0xf81   :  { %5438 = vmatprep.mubr.bf16.mxu1 %v7591_v21  ;;  %v7346_v21 = vld [vmem:[%s9439_s16 + $0x90] sm:$0xff]  }
 0xf82   :  { %6906 = vmatpush3.bf16.msra.mxu0 %v7346_v21 }
 0xf83   :  { %6907 = vmatprep.subr.bf16.mxu0 %v7347_v57 }
 0xf86   :  { %6908 = vmatpush3.bf16.msra.mxu0 %v7348_v6 }
 0xf87   :  { %6909 = vmatprep.subr.bf16.mxu0 %v7349_v20 }
 0xf88   :  { %6668 = vmatmul.mubr.msk.bf16.gmra.mxu1 %vm1001_vm10, %v5301_v49 }
 0xf89   :  { %7248 = vmatprep.mubr.msk.f32.mxu1 %vm7589_vm11, %v9512_v15 }
 0xf8a   :  { %6910 = vmatpush3.bf16.msra.mxu0 %v7350_v28 }
0x1030   :  { %v5410_v54 = vpop.f32.mrf.mxu1 }
0x1031   :  { %v5411_v51 = vadd.f32 %v5410_v54, %v5317_v61 }
0x1032   :  { %v5412_v23 = vpop.f32.mrf.mxu1 }
0x1033   :  { %v5413_v63 = vadd.f32 %v5412_v23, %v5321_v44  ;;  %v5449_v26 = vmax.f32 %v5411_v51, 0.0 }
0x1034   :  { %v5414_v38 = vpop.f32.mrf.mxu1 }
0x1035   :  { %v5415_v58 = vadd.f32 %v5414_v38, %v5317_v61  ;;  %v5450_v27 = vmax.f32 %v5413_v63, 0.0 }
0x1036   :  { %v5416_v52 = vpop.f32.mrf.mxu1 }
0x1037   :  { %v5417_v29 = vadd.f32 %v5416_v52, %v5321_v44  ;;  %v5451_v17 = vmax.f32 %v5415_v58, 0.0 }
0x1038   :  { %v5420_v47 = vpop.f32.mrf.mxu1 }
0x1039   :  { %v5452_v5 = vmax.f32 %v5417_v29, 0.0  ;;  %v5465_v12 = vpack.c.bf16 %v5451_v17, %v5449_v26  ;;  %v5421_v19 = vadd.f32 %v5420_v47, %v5317_v61  ;;  %v6702_v17 = vld [vmem:[%s9440_s17 + $0x1] ss:$0 sm:$0xff] }
0x103a   :  { %v5422_v39 = vpop.f32.mrf.mxu1 }
0x103b   :  { %v5466_v30 = vpack.c.bf16 %v5452_v5, %v5450_v27  ;;  %v5423_v16 = vadd.f32 %v5422_v39, %v5321_v44  ;;  %v5453_v32 = vmax.f32 %v5421_v19, 0.0 }
0x103c   :  { %v5424_v7 = vpop.f32.mrf.mxu1 }
0x103d   :  { %v5425_v60 = vadd.f32 %v5424_v7, %v5317_v61  ;;  %5642 = vmatprep.mubr.bf16.mxu0 %v5466_v30  ;;  %v5454_v35 = vmax.f32 %v5423_v16, 0.0 }
0x103e   :  { %v5426_v40 = vpop.f32.mrf.mxu1  ;;  %5643 = vmatmul.mubr.bf16.vlgmr.msra.gmra.mxu0 %v5465_v12 }
0x103f   :  { %v5427_v42 = vadd.f32 %v5426_v40, %v5321_v44  ;;  %v5455_v31 = vmax.f32 %v5425_v60, 0.0 }
0x1040   :  { %v5430_v4 = vpop.f32.mrf.mxu1 }
0x1041   :  { %v5456_v33 = vmax.f32 %v5427_v42, 0.0  ;;  %v5467_v55 = vpack.c.bf16 %v5455_v31, %v5453_v32  ;;  %v5431_v14 = vadd.f32 %v5430_v4, %v5317_v61 }
0x1042   :  { %v5432_v1 = vpop.f32.mrf.mxu1 }
0x1043   :  { %v5468_v24 = vpack.c.bf16 %v5456_v33, %v5454_v35  ;;  %v5433_v56 = vadd.f32 %v5432_v1, %v5321_v44  ;;  %v5457_v18 = vmax.f32 %v5431_v14, 0.0 }
0x1044   :  { %v5434_v37 = vpop.f32.mrf.mxu1 }
0x1045   :  { %v5435_v2 = vadd.f32 %v5434_v37, %v5317_v61  ;;  %5650 = vmatprep.mubr.bf16.mxu0 %v5468_v24  ;;  %v5458_v22 = vmax.f32 %v5433_v56, 0.0 }
0x1046   :  { %v5436_v41 = vpop.f32.mrf.mxu1  ;;  %5651 = vmatmul.mubr.bf16.gmra.mxu0 %v5467_v55 }
0x1047   :  { %v5437_v46 = vadd.f32 %v5436_v41, %v5321_v44  ;;  %v5459_v62 = vmax.f32 %v5435_v2, 0.0 }
0x1048   :  { %v5440_v45 = vpop.f32.mrf.mxu1 }
0x1049   :  { %v5460_v8 = vmax.f32 %v5437_v46, 0.0  ;;  %v5469_v21 = vpack.c.bf16 %v5459_v62, %v5457_v18  ;;  %v5441_v28 = vadd.f32 %v5440_v45, %v5317_v61 }
0x104a   :  { %v5442_v49 = vpop.f32.mrf.mxu1 }
0x104b   :  { %v5470_v9 = vpack.c.bf16 %v5460_v8, %v5458_v22  ;;  %v5443_v6 = vadd.f32 %v5442_v49, %v5321_v44  ;;  %v5461_v58 = vmax.f32 %v5441_v28, 0.0 }
0x104c   :  { %v5444_v57 = vpop.f32.mrf.mxu1 }
0x104d   :  { %v5445_v20 = vadd.f32 %v5444_v57, %v5317_v61  ;;  %5658 = vmatprep.mubr.bf16.mxu0 %v5470_v9  ;;  %v5462_v38 = vmax.f32 %v5443_v6, 0.0 }
0x104e   :  { %v5446_v25 = vpop.f32.mrf.mxu1  ;;  %5659 = vmatmul.mubr.bf16.gmra.mxu0 %v5469_v21 }
0x104f   :  { %v5447_v54 = vadd.f32 %v5446_v25, %v5321_v44  ;;  %v5463_v23 = vmax.f32 %v5445_v20, 0.0 }
0x1051   :  { %v5464_v63 = vmax.f32 %v5447_v54, 0.0  ;;  %v5471_v52 = vpack.c.bf16 %v5463_v23, %v5461_v58 }
0x1053   :  { %v5472_v51 = vpack.c.bf16 %v5464_v63, %v5462_v38 }
0x1055   :  { %5666 = vmatprep.mubr.bf16.mxu0 %v5472_v51 }
0x1056   :  { %5667 = vmatmul.mubr.bf16.gmra.mxu0 %v5471_v52 }
0x10fe   :  { %v6911_v29 = vpop.f32.mrf.mxu0 }
0x1100   :  { %v6912_v47 = vpop.f32.mrf.mxu0 }
0x1101   :  { %v6913_v27 = vadd.f32 %v6912_v47, %v6911_v29 }
0x1102   :  { %v6914_v5 = vpop.f32.mrf.mxu0 }
0x1103   :  { %v5645_v61 = vadd.f32 %v6913_v27, %v6702_v17 }
0x1104   :  { %v6915_v26 = vpop.f32.mrf.mxu0 }
0x1105   :  { %v6916_v39 = vadd.f32 %v6915_v26, %v6914_v5  ;;  %v5675_v44 = vadd.f32 %v5645_v61, %v9096_v11 }
0x1106   :  { %v6917_v30 = vpop.f32.mrf.mxu0 }
0x1107   :  { %v5648_v12 = vadd.f32 %v6916_v39, %v6702_v17  ;;  %v5687_v7 = vsel %vm1001_vm10, %v5675_v44, 0.0 }
0x1108   :  { %5688 = vadd.xlane.f32.xlu1 %v5687_v7  ;;  %v6918_v16 = vpop.f32.mrf.mxu0 }
0x1109   :  { %v6919_v60 = vadd.f32 %v6918_v16, %v6917_v30  ;;  %v5676_v19 = vadd.f32 %v5648_v12, %v9098_v34 }
0x110a   :  { %v6920_v40 = vpop.f32.mrf.mxu0 }
0x110b   :  { %v5653_v42 = vadd.f32 %v6919_v60, %v6702_v17  ;;  %v5690_v31 = vsel %vm1001_vm10, %v5676_v19, 0.0 }
0x110c   :  { %5691 = vadd.xlane.f32.xlu0 %v5690_v31  ;;  %v6921_v4 = vpop.f32.mrf.mxu0 }
0x110d   :  { %v6922_v35 = vadd.f32 %v6921_v4, %v6920_v40  ;;  %v5677_v33 = vadd.f32 %v5653_v42, %v9109_v43 }
0x110e   :  { %v6923_v32 = vpop.f32.mrf.mxu0 }
0x110f   :  { %v5656_v11 = vadd.f32 %v6922_v35, %v6702_v17  ;;  %v5693_v1 = vsel %vm1001_vm10, %v5677_v33, 0.0 }
0x1110   :  { %5694 = vadd.xlane.f32.xlu1 %v5693_v1  ;;  %v6924_v24 = vpop.f32.mrf.mxu0 }
0x1111   :  { %v6925_v55 = vadd.f32 %v6924_v24, %v6923_v32  ;;  %v5678_v37 = vadd.f32 %v5656_v11, %v9106_v36 }
0x1112   :  { %v6926_v56 = vpop.f32.mrf.mxu0 }
0x1113   :  { %v5661_v34 = vadd.f32 %v6925_v55, %v6702_v17  ;;  %v5696_v2 = vsel %vm1001_vm10, %v5678_v37, 0.0 }
0x1114   :  { %5697 = vadd.xlane.f32.xlu0 %v5696_v2  ;;  %v6927_v14 = vpop.f32.mrf.mxu0 }
0x1115   :  { %v6928_v41 = vadd.f32 %v6927_v14, %v6926_v56  ;;  %v5679_v46 = vadd.f32 %v5661_v34, %v9119_v53  ;;  %v6724_v14 = vld [vmem:[#allocation2] ss:$0 sm:$0xff] }
0x1116   :  { %v6929_v62 = vpop.f32.mrf.mxu0 }
0x1117   :  { %v5664_v43 = vadd.f32 %v6928_v41, %v6702_v17  ;;  %v5699_v45 = vsel %vm1001_vm10, %v5679_v46, 0.0  ;;  %v5886_v41 = vrot.slane %v8386_v10, %v9517_v59 }
0x1118   :  { %5700 = vadd.xlane.f32.xlu1 %v5699_v45  ;;  %v6930_v22 = vpop.f32.mrf.mxu0  ;;  %v9519_v45 = vld [vmem:[#allocation19_spill] sm:$0xff] }
0x1119   :  { %v6931_v8 = vadd.f32 %v6930_v22, %v6929_v62  ;;  %v5680_v18 = vadd.f32 %v5664_v43, %v9116_v48  ;;  %v5879_v43 = vrot.slane %v8386_v10, %v7724_v3  ;;  %v5907_v22 = vrot.slane %v8386_v10, %v9519_v45 }
0x111a   :  { %v6932_v49 = vpop.f32.mrf.mxu0 }
0x111b   :  { %v5669_v36 = vadd.f32 %v6931_v8, %v6702_v17  ;;  %v5702_v9 = vsel %vm1001_vm10, %v5680_v18, 0.0  ;;  %v9520_v8 = vld [vmem:[#allocation16_spill] sm:$0xff] }
0x111c   :  { %5703 = vadd.xlane.f32.xlu0 %v5702_v9  ;;  %v6933_v21 = vpop.f32.mrf.mxu0 }
0x111d   :  { %v6934_v57 = vadd.f32 %v6933_v21, %v6932_v49  ;;  %v5681_v6 = vadd.f32 %v5669_v36, %v9128_v0  ;;  %v9521_v49 = vld [vmem:[#allocation18_spill] sm:$0xff] }
0x111e   :  { %v5914_v36 = vrot.slane %v8386_v10, %v9521_v49 }
0x111f   :  { %v5672_v20 = vadd.f32 %v6934_v57, %v6702_v17  ;;  %v5705_v53 = vsel %vm1001_vm10, %v5681_v6, 0.0 }
0x1120   :  { %5706 = vadd.xlane.f32.xlu1 %v5705_v53 }
0x1121   :  { %v5682_v28 = vadd.f32 %v5672_v20, %v9126_v50 }
0x1123   :  { %v5708_v25 = vsel %vm1001_vm10, %v5682_v28, 0.0 }
0x1124   :  { %5709 = vadd.xlane.f32.xlu0 %v5708_v25 }
0x1191   :  { %v5689_v54 = vpop.xlane.xlu1 %5688 }
0x1192   :  { %v5711_v48 = vmul.f32 0.015625, %v5689_v54 }
0x1194   :  { %v9177_v23 = vsub.f32 %v5675_v44, %v5711_v48 }
0x1195   :  { %v5692_v38 = vpop.xlane.xlu0 %5691 }
0x1196   :  { %v5712_v63 = vmul.f32 0.015625, %v5692_v38  ;;  %v5727_v58 = vmul.f32 %v9177_v23, %v9177_v23 }
0x1198   :  { %v9181_v51 = vsub.f32 %v5676_v19, %v5712_v63  ;;  %v5735_v0 = vsel %vm1001_vm10, %v5727_v58, 0.0 }
0x1199   :  { %5736 = vadd.xlane.f32.xlu1 %v5735_v0  ;;  %v5695_v52 = vpop.xlane.xlu1 %5694 }
0x119a   :  { %v5713_v29 = vmul.f32 0.015625, %v5695_v52  ;;  %v5728_v50 = vmul.f32 %v9181_v51, %v9181_v51 }
0x119c   :  { %v9186_v17 = vsub.f32 %v5677_v33, %v5713_v29  ;;  %v5738_v47 = vsel %vm1001_vm10, %v5728_v50, 0.0  ;;  %v9232_v29 = vld [vmem:[%s9435_s12 + $0x1] ss:$0 sm:$0xff] }
0x119d   :  { %v5698_v27 = vpop.xlane.xlu0 %5697  ;;  %5739 = vadd.xlane.f32.xlu0 %v5738_v47 }
0x119e   :  { %v5714_v5 = vmul.f32 0.015625, %v5698_v27  ;;  %v5729_v61 = vmul.f32 %v9186_v17, %v9186_v17 }
0x11a0   :  { %v9191_v26 = vsub.f32 %v5678_v37, %v5714_v5  ;;  %v5741_v39 = vsel %vm1001_vm10, %v5729_v61, 0.0  ;;  %v9238_v5 = vld [vmem:[%s9436_s13 + $0x1] ss:$0 sm:$0xff] }
0x11a1   :  { %5742 = vadd.xlane.f32.xlu1 %v5741_v39  ;;  %v5701_v44 = vpop.xlane.xlu1 %5700 }
0x11a2   :  { %v5715_v30 = vmul.f32 0.015625, %v5701_v44  ;;  %v5730_v12 = vmul.f32 %v9191_v26, %v9191_v26 }
0x11a4   :  { %v9196_v7 = vsub.f32 %v5679_v46, %v5715_v30  ;;  %v5744_v16 = vsel %vm1001_vm10, %v5730_v12, 0.0  ;;  %v9518_v46 = vld [vmem:[#allocation17_spill] sm:$0xff]  ;;  %v6723_v30 = vld [vmem:[%s9441_s18] ss:$0 sm:$0xff]  ;;  %s7592_s18 = smov [#allocation9]  }
0x11a5   :  { %v5704_v60 = vpop.xlane.xlu0 %5703  ;;  %5745 = vadd.xlane.f32.xlu0 %v5744_v16  ;;  %v5893_v62 = vrot.slane %v8386_v10, %v9518_v46  ;;  %s6435_s6 = sshll.u32 %s7592_s18, 4  ;;  %s6436_s6 = int_to_ptr.vmem [resolvable:$true] %s6435_s6 }
0x11a6   :  { %v5716_v19 = vmul.f32 0.015625, %v5704_v60  ;;  %v5731_v40 = vmul.f32 %v9196_v7, %v9196_v7  ;;  %s7557_s25 = scalar_lea.vmem %s6436_s6, 128  ;;  %p7562_p2 = scmp.lt.s32.totalorder %s6436_s6, %s6436_s6 }
0x11a7   :  { %p7558_p1 = scmp.ne.s32.totalorder %s6436_s6, %s7557_s25  ;;  %p7563_p3 = scmp.lt.s32.totalorder %s7557_s25, %s7557_s25 }
0x11a8   :  { %v9201_v42 = vsub.f32 %v5680_v18, %v5716_v19  ;;  %v5747_v31 = vsel %vm1001_vm10, %v5731_v40, 0.0  ;;  %v5900_v18 = vrot.slane %v8386_v10, %v9520_v8 }
0x11a9   :  { %5748 = vadd.xlane.f32.xlu1 %v5747_v31  ;;  %v5707_v4 = vpop.xlane.xlu1 %5706  ;;  %p7564_p4 = por %p7563_p3, %p7562_p2 }
0x11aa   :  { %v5717_v35 = vmul.f32 0.015625, %v5707_v4  ;;  %v5732_v33 = vmul.f32 %v9201_v42, %v9201_v42 }
0x11ab   :  { %p7565_p5 = pnand %p7564_p4, %p7558_p1 }
0x11ac   :  { %v9206_v32 = vsub.f32 %v5681_v6, %v5717_v35  ;;  %v5750_v11 = vsel %vm1001_vm10, %v5732_v33, 0.0 }
0x11ad   :  { %5751 = vadd.xlane.f32.xlu0 %v5750_v11  ;;  %v5710_v1 = vpop.xlane.xlu0 %5709 }
0x11ae   :  { %v5718_v24 = vmul.f32 0.015625, %v5710_v1  ;;  %v5733_v55 = vmul.f32 %v9206_v32, %v9206_v32 }
0x11b0   :  { %v9211_v37 = vsub.f32 %v5682_v28, %v5718_v24  ;;  %v5753_v56 = vsel %vm1001_vm10, %v5733_v55, 0.0 }
0x11b1   :  { %5754 = vadd.xlane.f32.xlu1 %v5753_v56 }
0x11b2   :  { %v5734_v34 = vmul.f32 %v9211_v37, %v9211_v37 }
0x11b4   :  { %v5756_v2 = vsel %vm1001_vm10, %v5734_v34, 0.0 }
0x11b5   :  { %5757 = vadd.xlane.f32.xlu0 %v5756_v2 }
0x11c2   :  { %5865 = vperm.xlu1 %7261, %v6724_v14  }
0x11c6   :  { %5888 = vbcast.lane.b32.xlu1 %v5886_v41, 256 }
0x11ca   :  { %5895 = vbcast.lane.b32.xlu1 %v5893_v62, 256 }
0x11cb   :  { %5881 = vbcast.lane.b32.xlu0 %v5879_v43, 256 }
0x11ce   :  { %5909 = vbcast.lane.b32.xlu1 %v5907_v22, 256 }
0x11cf   :  { %5902 = vbcast.lane.b32.xlu0 %v5900_v18, 256 }
0x11d3   :  { %5916 = vbcast.lane.b32.xlu0 %v5914_v36, 256 }
0x1222   :  { %v5737_v9 = vpop.xlane.xlu1 %5736 }
0x1223   :  { %v5759_v21 = vmul.f32 0.015625, %v5737_v9 }
0x1225   :  { %v5767_v57 = vadd.f32 1e-05, %v5759_v21 }
0x1226   :  { %v5740_v6 = vpop.xlane.xlu0 %5739 }
0x1227   :  { %7463 = vrsqrt.f32 %v5767_v57  ;;  %v5760_v20 = vmul.f32 0.015625, %v5740_v6 }
0x1229   :  { %v5768_v53 = vadd.f32 1e-05, %v5760_v20 }
0x122a   :  { %v5743_v28 = vpop.xlane.xlu1 %5742 }
0x122b   :  { %7465 = vrsqrt.f32 %v5768_v53  ;;  %v5761_v25 = vmul.f32 0.015625, %v5743_v28 }
0x122d   :  { %v5769_v54 = vadd.f32 1e-05, %v5761_v25 }
0x122e   :  { %v5746_v48 = vpop.xlane.xlu0 %5745 }
0x122f   :  { %7467 = vrsqrt.f32 %v5769_v54  ;;  %v5762_v38 = vmul.f32 0.015625, %v5746_v48 }
0x1231   :  { %v5770_v63 = vadd.f32 1e-05, %v5762_v38 }
0x1232   :  { %v5749_v58 = vpop.xlane.xlu1 %5748 }
0x1233   :  { %7469 = vrsqrt.f32 %v5770_v63  ;;  %v5763_v0 = vmul.f32 0.015625, %v5749_v58 }
0x1234   :  { %v7464_v52 = vpop.eup %7463 }
0x1235   :  { %v5771_v50 = vadd.f32 1e-05, %v5763_v0  ;;  %v5783_v47 = vmul.f32 %v7464_v52, %v9177_v23 }
0x1236   :  { %v5752_v27 = vpop.xlane.xlu0 %5751 }
0x1237   :  { %7471 = vrsqrt.f32 %v5771_v50  ;;  %v5764_v61 = vmul.f32 0.015625, %v5752_v27  ;;  %v5797_v39 = vmul.f32 %v9232_v29, %v5783_v47 }
0x1238   :  { %v7466_v44 = vpop.eup %7465 }
0x1239   :  { %v5772_v12 = vadd.f32 1e-05, %v5764_v61  ;;  %v9245_v16 = vadd.f32 %v9238_v5, %v5797_v39  ;;  %v5784_v23 = vmul.f32 %v7466_v44, %v9181_v51 }
0x123a   :  { %v5755_v60 = vpop.xlane.xlu1 %5754 }
0x123b   :  { %7473 = vrsqrt.f32 %v5772_v12  ;;  %v5765_v19 = vmul.f32 0.015625, %v5755_v60  ;;  %v5826_v40 = vmul.f32 %v6723_v30, %v9245_v16  ;;  %v5798_v31 = vmul.f32 %v9232_v29, %v5784_v23  ;;  %v9522_v12 = vld [vmem:[#allocation21_spill] sm:$0xff] }
0x123c   :  { %v7468_v4 = vpop.eup %7467  ;;  %v5921_v23 = vrot.slane %v8386_v10, %v9522_v12 }
0x123d   :  { %v5773_v35 = vadd.f32 1e-05, %v5765_v19  ;;  %v5834_v33 = vsel %vm1001_vm10, %v5826_v40, 0.0  ;;  %v9252_v11 = vadd.f32 %v9238_v5, %v5798_v31  ;;  %v5785_v1 = vmul.f32 %v7468_v4, %v9186_v17 }
0x123e   :  { %v5758_v24 = vpop.xlane.xlu0 %5757  ;;  %5835 = vadd.xlane.f32.xlu1 %v5834_v33 }
0x123f   :  { %7475 = vrsqrt.f32 %v5773_v35  ;;  %v5766_v51 = vmul.f32 0.015625, %v5758_v24  ;;  %v5827_v55 = vmul.f32 %v6723_v30, %v9252_v11  ;;  %v5799_v56 = vmul.f32 %v9232_v29, %v5785_v1 }
0x1240   :  { %v7470_v34 = vpop.eup %7469 }
0x1241   :  { %v5774_v2 = vadd.f32 1e-05, %v5766_v51  ;;  %v5837_v14 = vsel %vm1001_vm10, %v5827_v55, 0.0  ;;  %v9259_v41 = vadd.f32 %v9238_v5, %v5799_v56  ;;  %v5786_v62 = vmul.f32 %v7470_v34, %v9191_v26 }
0x1242   :  { %5838 = vadd.xlane.f32.xlu0 %v5837_v14  ;;  %v5882_v40 = vpop.permute.xlu0 %5881 }
0x1243   :  { %7477 = vrsqrt.f32 %v5774_v2  ;;  %v5828_v17 = vmul.f32 %v6723_v30, %v9259_v41  ;;  %v5800_v43 = vmul.f32 %v9232_v29, %v5786_v62 }
0x1244   :  { %v7472_v22 = vpop.eup %7471 }
0x1245   :  { %v5840_v18 = vsel %vm1001_vm10, %v5828_v17, 0.0  ;;  %v9266_v36 = vadd.f32 %v9238_v5, %v5800_v43  ;;  %v5787_v9 = vmul.f32 %v7472_v22, %v9196_v7 }
0x1246   :  { %5841 = vadd.xlane.f32.xlu1 %v5840_v18 }
0x1247   :  { %v5829_v21 = vmul.f32 %v6723_v30, %v9266_v36  ;;  %v5801_v57 = vmul.f32 %v9232_v29, %v5787_v9 }
0x1248   :  { %v7474_v26 = vpop.eup %7473 }
0x1249   :  { %v5843_v6 = vsel %vm1001_vm10, %v5829_v21, 0.0  ;;  %v9273_v20 = vadd.f32 %v9238_v5, %v5801_v57  ;;  %v5788_v53 = vmul.f32 %v7474_v26, %v9201_v42 }
0x124a   :  { %5844 = vadd.xlane.f32.xlu0 %v5843_v6 }
0x124b   :  { %v5830_v28 = vmul.f32 %v6723_v30, %v9273_v20  ;;  %v5802_v25 = vmul.f32 %v9232_v29, %v5788_v53 }
0x124c   :  { %v7476_v54 = vpop.eup %7475 }
0x124d   :  { %v5846_v7 = vsel %vm1001_vm10, %v5830_v28, 0.0  ;;  %v9280_v48 = vadd.f32 %v9238_v5, %v5802_v25  ;;  %v5789_v38 = vmul.f32 %v7476_v54, %v9206_v32 }
0x124e   :  { %5847 = vadd.xlane.f32.xlu1 %v5846_v7 }
0x124f   :  { %v5831_v63 = vmul.f32 %v6723_v30, %v9280_v48  ;;  %v5803_v58 = vmul.f32 %v9232_v29, %v5789_v38 }
0x1250   :  { %v7478_v0 = vpop.eup %7477 }
0x1251   :  { %v5849_v42 = vsel %vm1001_vm10, %v5831_v63, 0.0  ;;  %v9287_v52 = vadd.f32 %v9238_v5, %v5803_v58  ;;  %v5790_v50 = vmul.f32 %v7478_v0, %v9211_v37  ;;  %v9523_v37 = vld [vmem:[#allocation20_spill] sm:$0xff]  ;;  %v9524_v58 = vlaneseq }
0x1252   :  { %5850 = vadd.xlane.f32.xlu0 %v5849_v42  ;;  %v5928_v60 = vrot.slane %v8386_v10, %v9523_v37 }
0x1253   :  { %v5832_v47 = vmul.f32 %v6723_v30, %v9287_v52  ;;  %v5804_v27 = vmul.f32 %v9232_v29, %v5790_v50  ;;  %v5866_v29 = vpop.permute.xlu1 %5865  ;;  %v5981_v0 = vand.u32 127, %v9524_v58 }
0x1255   :  { %v5852_v32 = vsel %vm1001_vm10, %v5832_v47, 0.0  ;;  %v9294_v61 = vadd.f32 %v9238_v5, %v5804_v27  ;;  %v5903_v5 = vpop.permute.xlu0 %5902  ;;  %v9328_v47 = vsub.s32 %v5981_v0, %v9515_v13 }
0x1256   :  { %5853 = vadd.xlane.f32.xlu1 %v5852_v32 }
0x1257   :  { %v5833_v39 = vmul.f32 %v6723_v30, %v9294_v61  ;;  %v5889_v19 = vpop.permute.xlu1 %5888 }
0x1259   :  { %v5855_v44 = vsel %vm1001_vm10, %v5833_v39, 0.0  ;;  %v5917_v35 = vpop.permute.xlu0 %5916 }
0x125a   :  { %5856 = vadd.xlane.f32.xlu0 %v5855_v44 }
0x125b   :  { %v5896_v31 = vpop.permute.xlu1 %5895 }
0x125f   :  { %v5910_v4 = vpop.permute.xlu1 %5909 }
0x1267   :  { %5923 = vbcast.lane.b32.xlu1 %v5921_v23, 256 }
0x1270   :  { %5930 = vbcast.lane.b32.xlu0 %v5928_v60, 256 }
0x12c7   :  { %v5836_v33 = vpop.xlane.xlu1 %5835 }
0x12c8   :  { %v5868_v30 = vadd.f32 %v5866_v29, %v5836_v33 }
0x12ca   :  { %v9302_v1 = vadd.f32 %v5882_v40, %v5868_v30 }
0x12cb   :  { %v5839_v24 = vpop.xlane.xlu0 %5838 }
0x12cc   :  { %v5869_v51 = vadd.f32 %v5866_v29, %v5839_v24  ;;  %5957 = vperm.xlu1 %7261, %v9302_v1  }
0x12ce   :  { %v9305_v55 = vadd.f32 %v5889_v19, %v5869_v51 }
0x12cf   :  { %v5842_v56 = vpop.xlane.xlu1 %5841 }
0x12d0   :  { %v5870_v10 = vadd.f32 %v5866_v29, %v5842_v56  ;;  %5960 = vperm.xlu0 %7262, %v9305_v55  }
0x12d2   :  { %v9308_v34 = vadd.f32 %v5896_v31, %v5870_v10 }
0x12d3   :  { %v5845_v2 = vpop.xlane.xlu0 %5844 }
0x12d4   :  { %v5871_v14 = vadd.f32 %v5866_v29, %v5845_v2  ;;  %5963 = vperm.xlu1 %7261, %v9308_v34  }
0x12d6   :  { %v9311_v62 = vadd.f32 %v5903_v5, %v5871_v14 }
0x12d7   :  { %v5848_v17 = vpop.xlane.xlu1 %5847 }
0x12d8   :  { %v5872_v43 = vadd.f32 %v5866_v29, %v5848_v17  ;;  %5966 = vperm.xlu1 %7261, %v9311_v62  }
0x12da   :  { %v9314_v22 = vadd.f32 %v5910_v4, %v5872_v43 }
0x12db   :  { %v5851_v18 = vpop.xlane.xlu0 %5850 }
0x12dc   :  { %v5873_v9 = vadd.f32 %v5866_v29, %v5851_v18  ;;  %5969 = vperm.xlu0 %7262, %v9314_v22  }
0x12de   :  { %v9317_v21 = vadd.f32 %v5917_v35, %v5873_v9 }
0x12df   :  { %v5854_v57 = vpop.xlane.xlu1 %5853 }
0x12e0   :  { %5972 = vperm.xlu1 %7261, %v9317_v21   ;;  %v5874_v26 = vadd.f32 %v5866_v29, %v5854_v57 }
0x12e3   :  { %v5857_v6 = vpop.xlane.xlu0 %5856  ;;  %v5924_v53 = vpop.permute.xlu1 %5923 }
0x12e4   :  { %v9320_v28 = vadd.f32 %v5924_v53, %v5874_v26  ;;  %v5875_v25 = vadd.f32 %v5866_v29, %v5857_v6 }
0x12e6   :  { %5975 = vperm.xlu0 %7262, %v9320_v28  }
0x12e7   :  { %v5931_v54 = vpop.permute.xlu0 %5930 }
0x12e8   :  { %v9323_v7 = vadd.f32 %v5931_v54, %v5875_v25 }
0x12ea   :  { %5978 = vperm.xlu1 %7261, %v9323_v7  }
0x1347   :  { %v5958_v38 = vpop.permute.xlu1 %5957 }
0x1348   :  { %v5985_v23 = vrot.slane %v5958_v38, %v9328_v47 }
0x134b   :  { %v5961_v42 = vpop.permute.xlu0 %5960 }
0x134c   :  { %v5989_v32 = vrot.slane %v5961_v42, %v9328_v47 }
0x134e   :  { %v6015_v40 = vsel %vm6014_vm13, %v5989_v32, %v5985_v23 }
0x134f   :  { %v5964_v63 = vpop.permute.xlu1 %5963 }
0x1350   :  { %v5993_v39 = vrot.slane %v5964_v63, %v9328_v47 }
0x1352   :  { %v6017_v31 = vsel %vm6016_vm14, %v5993_v39, %v6015_v40 }
0x1353   :  { %v5967_v50 = vpop.permute.xlu1 %5966 }
0x1354   :  { %v5997_v60 = vrot.slane %v5967_v50, %v9328_v47 }
0x1356   :  { %v6019_v4 = vsel %vm6018_vm15, %v5997_v60, %v6017_v31 }
0x1357   :  { %v5970_v27 = vpop.permute.xlu0 %5969 }
0x1358   :  { %v6001_v29 = vrot.slane %v5970_v27, %v9328_v47 }
0x135a   :  { %v6021_v35 = vsel %vm6020_vm0, %v6001_v29, %v6019_v4 }
0x135b   :  { %v5973_v44 = vpop.permute.xlu1 %5972 }
0x135c   :  { %v6005_v13 = vrot.slane %v5973_v44, %v9328_v47 }
0x135e   :  { %v6023_v30 = vsel %vm6022_vm1, %v6005_v13, %v6021_v35 }
0x1361   :  { %v5976_v19 = vpop.permute.xlu0 %5975 }
0x1362   :  { %v6009_v5 = vrot.slane %v5976_v19, %v9328_v47 }
0x1364   :  { %v6025_v51 = vsel %vm6024_vm2, %v6009_v5, %v6023_v30 }
0x1365   :  { %v5979_v33 = vpop.permute.xlu1 %5978 }
0x1366   :  { %v6013_v24 = vrot.slane %v5979_v33, %v9328_v47 }
0x1368   :  { %v6027_v56 = vsel %vm6026_vm3, %v6013_v24, %v6025_v51 }
0x1369   :  { %v6029_v10 = vsel %vm1951_vm12, %v6027_v56, -inf }
0x136a   :  { %6030 = vmax.xlane.f32.xlu0 %v6029_v10 }
0x13f3   :  { %v6031_v2 = vpop.xlane.xlu0 %6030 }
0x13f4   :  { %v6036_v14 = vrot.slane %v6031_v2, %v7724_v3  ;;  %v6040_v17 = vrot.slane %v6031_v2, %v9517_v59  ;;  %v6044_v43 = vrot.slane %v6031_v2, %v9518_v46  ;;  %v6048_v26 = vrot.slane %v6031_v2, %v9520_v8 }
0x13f5   :  { %v6052_v25 = vrot.slane %v6031_v2, %v9519_v45  ;;  %v6056_v63 = vrot.slane %v6031_v2, %v9521_v49  ;;  %v6064_v50 = vrot.slane %v6031_v2, %v9523_v37 }
0x13f6   :  { %v6073_v18 = vsub.f32 %v9302_v1, %v6036_v14  ;;  %v6074_v9 = vsub.f32 %v9305_v55, %v6040_v17  ;;  %v6075_v6 = vsub.f32 %v9308_v34, %v6044_v43  ;;  %v6076_v54 = vsub.f32 %v9311_v62, %v6048_v26 }
0x13f7   :  { %v6077_v58 = vsub.f32 %v9314_v22, %v6052_v25  ;;  %v6060_v55 = vrot.slane %v6031_v2, %v9522_v12  ;;  %v6078_v0 = vsub.f32 %v9317_v21, %v6056_v63  ;;  %v6080_v22 = vsub.f32 %v9323_v7, %v6064_v50 }
0x13f8   :  { %v6081_v57 = vmul.f32 1.442695, %v6073_v18  ;;  %v6083_v53 = vmul.f32 1.442695, %v6074_v9  ;;  %v6085_v38 = vmul.f32 1.442695, %v6075_v6 }
0x13f9   :  { %v6087_v1 = vmul.f32 1.442695, %v6076_v54  ;;  %v6089_v34 = vmul.f32 1.442695, %v6077_v58  ;;  %v6079_v62 = vsub.f32 %v9320_v28, %v6060_v55  ;;  %v6091_v27 = vmul.f32 1.442695, %v6078_v0 }
0x13fa   :  { %7479 = vpow2.f32 %v6081_v57  ;;  %v6095_v21 = vmul.f32 1.442695, %v6080_v22 }
0x13fb   :  { %7481 = vpow2.f32 %v6083_v53  ;;  %v6093_v39 = vmul.f32 1.442695, %v6079_v62 }
0x13fc   :  { %7483 = vpow2.f32 %v6085_v38 }
0x13fd   :  { %7485 = vpow2.f32 %v6087_v1 }
0x13fe   :  { %7487 = vpow2.f32 %v6089_v34 }
0x13ff   :  { %7489 = vpow2.f32 %v6091_v27 }
0x1400   :  { %7491 = vpow2.f32 %v6093_v39  ;;  %v6329_v39 = vld [vmem:[#allocation8 + $0x18] sm:$0xff] }
0x1401   :  { %7493 = vpow2.f32 %v6095_v21  ;;  %v6326_v21 = vld [vmem:[#allocation8] sm:$0xff] }
0x1407   :  { %v7480_v42 = vpop.eup %7479 }
0x1408   :  { %6106 = vperm.xlu1 %7261, %v7480_v42   ;;  %v7482_v32 = vpop.eup %7481 }
0x1409   :  { %v7484_v44 = vpop.eup %7483 }
0x140a   :  { %v7486_v23 = vpop.eup %7485 }
0x140b   :  { %v7488_v60 = vpop.eup %7487 }
0x140c   :  { %6109 = vperm.xlu1 %7261, %v7482_v32   ;;  %v7490_v29 = vpop.eup %7489 }
0x140d   :  { %v7492_v28 = vpop.eup %7491 }
0x140e   :  { %v7494_v19 = vpop.eup %7493 }
0x1410   :  { %6112 = vperm.xlu1 %7261, %v7484_v44  }
0x1414   :  { %6115 = vperm.xlu1 %7261, %v7486_v23  }
0x1418   :  { %6118 = vperm.xlu1 %7261, %v7488_v60  }
0x141c   :  { %6121 = vperm.xlu1 %7261, %v7490_v29  }
0x1420   :  { %6124 = vperm.xlu1 %7261, %v7492_v28  }
0x1424   :  { %6127 = vperm.xlu1 %7261, %v7494_v19  }
0x1483   :  { %v6107_v40 = vpop.permute.xlu1 %6106 }
0x1484   :  { %v6132_v30 = vrot.slane %v6107_v40, %v9328_v47 }
0x1487   :  { %v6110_v13 = vpop.permute.xlu1 %6109 }
0x1488   :  { %v6136_v35 = vrot.slane %v6110_v13, %v9328_v47 }
0x148a   :  { %v6161_v10 = vsel %vm6014_vm13, %v6136_v35, %v6132_v30 }
0x148b   :  { %v6113_v7 = vpop.permute.xlu1 %6112 }
0x148c   :  { %v6140_v33 = vrot.slane %v6113_v7, %v9328_v47 }
0x148e   :  { %v6162_v14 = vsel %vm6016_vm14, %v6140_v33, %v6161_v10 }
0x148f   :  { %v6116_v31 = vpop.permute.xlu1 %6115 }
0x1490   :  { %v6144_v24 = vrot.slane %v6116_v31, %v9328_v47 }
0x1492   :  { %v6163_v43 = vsel %vm6018_vm15, %v6144_v24, %v6162_v14 }
0x1493   :  { %v6119_v5 = vpop.permute.xlu1 %6118 }
0x1494   :  { %v6148_v51 = vrot.slane %v6119_v5, %v9328_v47 }
0x1496   :  { %v6164_v18 = vsel %vm6020_vm0, %v6148_v51, %v6163_v43 }
0x1497   :  { %v6122_v4 = vpop.permute.xlu1 %6121 }
0x1498   :  { %v6152_v2 = vrot.slane %v6122_v4, %v9328_v47 }
0x149a   :  { %v6165_v57 = vsel %vm6022_vm1, %v6152_v2, %v6164_v18 }
0x149b   :  { %v6125_v56 = vpop.permute.xlu1 %6124 }
0x149c   :  { %v6156_v17 = vrot.slane %v6125_v56, %v9328_v47 }
0x149e   :  { %v6166_v6 = vsel %vm6024_vm2, %v6156_v17, %v6165_v57 }
0x149f   :  { %v6128_v9 = vpop.permute.xlu1 %6127 }
0x14a0   :  { %v6160_v26 = vrot.slane %v6128_v9, %v9328_v47 }
0x14a2   :  { %v6167_v53 = vsel %vm6026_vm3, %v6160_v26, %v6166_v6 }
0x14a3   :  { %v6169_v25 = vsel %vm1951_vm12, %v6167_v53, 0.0 }
0x14a4   :  { %6170 = vadd.xlane.f32.xlu0 %v6169_v25 }
0x152d   :  { %v6171_v54 = vpop.xlane.xlu0 %6170 }
0x152e   :  { %7495 = vrcp.f32 %v6171_v54 }
0x153b   :  { %v7496_v38 = vpop.eup %7495 }
0x153c   :  { %v6181_v63 = vrot.slane %v7496_v38, %v9517_v59  ;;  %v6177_v58 = vrot.slane %v7496_v38, %v7724_v3  ;;  %v6185_v0 = vrot.slane %v7496_v38, %v9518_v46  ;;  %v6189_v34 = vrot.slane %v7496_v38, %v9520_v8  ;;  %v6333_v8 = vld [vmem:[#allocation8 + $0x38] sm:$0xff] }
0x153d   :  { %v6193_v62 = vrot.slane %v7496_v38, %v9519_v45  ;;  %v6197_v22 = vrot.slane %v7496_v38, %v9521_v49  ;;  %v6201_v3 = vrot.slane %v7496_v38, %v9522_v12  ;;  %v6205_v46 = vrot.slane %v7496_v38, %v9523_v37  ;;  %7233 = vmatpush3.msra.mxu1 %v6333_v8  ;;  %v6332_v45 = vld [vmem:[#allocation8 + $0x30] sm:$0xff]  ;;  %v6331_v49 = vld [vmem:[#allocation8 + $0x28] sm:$0xff]  ;;  %v6330_v12 = vld [vmem:[#allocation8 + $0x20] sm:$0xff] }
0x153e   :  { %v6215_v1 = vmul.f32 %v7482_v32, %v6181_v63  ;;  %v6214_v55 = vmul.f32 %v7480_v42, %v6177_v58  ;;  %v6216_v47 = vmul.f32 %v7484_v44, %v6185_v0  ;;  %v6217_v50 = vmul.f32 %v7486_v23, %v6189_v34  ;;  %7234 = vmatprep.subr.mxu1 %v9512_v15  ;;  %v6328_v37 = vld [vmem:[#allocation8 + $0x10] sm:$0xff]  ;;  %v6327_v44 = vld [vmem:[#allocation8 + $0x8] sm:$0xff] }
0x153f   :  { %v6218_v27 = vmul.f32 %v7488_v60, %v6193_v62  ;;  %v6219_v59 = vmul.f32 %v7490_v29, %v6197_v22  ;;  %v6220_v42 = vmul.f32 %v7492_v28, %v6201_v3  ;;  %v6221_v32 = vmul.f32 %v7494_v19, %v6205_v46  ;;  %7235 = vmatpush3.msra.mxu1 %v6332_v45 }
0x1540   :  { %6229 = vperm.xlu0 %7262, %v6215_v1   ;;  %6224 = vperm.xlu1 %7261, %v6214_v55  }
0x1541   :  { %7236 = vmatprep.subr.mxu1 %v9512_v15 }
0x1542   :  { %7237 = vmatpush3.msra.mxu1 %v6331_v49 }
0x1543   :  { %7238 = vmatprep.subr.mxu1 %v9512_v15 }
0x1544   :  { %6234 = vperm.xlu1 %7261, %v6216_v47   ;;  %7239 = vmatpush3.msra.mxu1 %v6330_v12 }
0x1545   :  { %7240 = vmatprep.subr.mxu1 %v9512_v15 }
0x1546   :  { %7241 = vmatpush3.msra.mxu1 %v6329_v39 }
0x1547   :  { %7242 = vmatprep.subr.mxu1 %v9512_v15 }
0x1548   :  { %6239 = vperm.xlu1 %7261, %v6217_v50   ;;  %7243 = vmatpush3.msra.mxu1 %v6328_v37 }
0x1549   :  { %7244 = vmatprep.subr.mxu1 %v9512_v15 }
0x154a   :  { %7245 = vmatpush3.msra.mxu1 %v6327_v44 }
0x154b   :  { %7246 = vmatprep.subr.mxu1 %v9512_v15 }
0x154c   :  { %6244 = vperm.xlu1 %7261, %v6218_v27   ;;  %7247 = vmatpush3.msra.mxu1 %v6326_v21 }
0x1550   :  { %6249 = vperm.xlu1 %7261, %v6219_v59  }
0x1554   :  { %6254 = vperm.xlu1 %7261, %v6220_v42  }
0x1558   :  { %6259 = vperm.xlu1 %7261, %v6221_v32  }
0x15bb   :  { %v6230_v23 = vpop.permute.xlu0 %6229  ;;  %v6225_v60 = vpop.permute.xlu1 %6224 }
0x15bc   :  { %v6263_v29 = vmul.f32 %v6230_v23, %v9252_v11  ;;  %v6262_v28 = vmul.f32 %v6225_v60, %v9245_v16 }
0x15be   :  { %v6277_v13 = vsel %vm1001_vm10, %v6263_v29, 0.0  ;;  %v6270_v7 = vsel %vm1001_vm10, %v6262_v28, 0.0 }
0x15bf   :  { %v6235_v19 = vpop.permute.xlu1 %6234  ;;  %v6278_v4 = vrot.slane %v6277_v13, 4  ;;  %v6271_v35 = vrot.slane %v6270_v7, 4 }
0x15c0   :  { %v6264_v40 = vmul.f32 %v6235_v19, %v9259_v41 }
0x15c1   :  { %v6279_v16 = vadd.f32 %v6278_v4, %v6277_v13  ;;  %v6272_v41 = vadd.f32 %v6271_v35, %v6270_v7 }
0x15c2   :  { %v6284_v31 = vsel %vm1001_vm10, %v6264_v40, 0.0 }
0x15c3   :  { %v6240_v5 = vpop.permute.xlu1 %6239  ;;  %v6285_v33 = vrot.slane %v6284_v31, 4  ;;  %v6280_v43 = vrot.slane %v6279_v16, 2 }
0x15c4   :  { %v6265_v15 = vmul.f32 %v6240_v5, %v9266_v36  ;;  %v6273_v36 = vrot.slane %v6272_v41, 2 }
0x15c5   :  { %v6286_v56 = vadd.f32 %v6285_v33, %v6284_v31  ;;  %v6281_v54 = vadd.f32 %v6280_v43, %v6279_v16 }
0x15c6   :  { %v6291_v30 = vsel %vm1001_vm10, %v6265_v15, 0.0  ;;  %v6274_v63 = vadd.f32 %v6273_v36, %v6272_v41 }
0x15c7   :  { %v6292_v11 = vrot.slane %v6291_v30, 4  ;;  %v6245_v24 = vpop.permute.xlu1 %6244  ;;  %v6287_v57 = vrot.slane %v6286_v56, 2  ;;  %v6282_v50 = vrot.slane %v6281_v54, 1 }
0x15c8   :  { %v6266_v51 = vmul.f32 %v6245_v24, %v9273_v20  ;;  %v6275_v22 = vrot.slane %v6274_v63, 1 }
0x15c9   :  { %v6293_v2 = vadd.f32 %v6292_v11, %v6291_v30  ;;  %v6288_v1 = vadd.f32 %v6287_v57, %v6286_v56  ;;  %v6283_v45 = vadd.f32 %v6282_v50, %v6281_v54  ;;  %v6725_v11 = vld [vmem:[%s9444_s21] ss:$0 sm:$0xff] }
0x15ca   :  { %v6298_v10 = vsel %vm1001_vm10, %v6266_v51, 0.0  ;;  %v6276_v12 = vadd.f32 %v6275_v22, %v6274_v63 }
0x15cb   :  { %v6299_v14 = vrot.slane %v6298_v10, 4  ;;  %v6250_v17 = vpop.permute.xlu1 %6249  ;;  %v6294_v6 = vrot.slane %v6293_v2, 2  ;;  %v6289_v42 = vrot.slane %v6288_v1, 1 }
0x15cc   :  { %v6267_v18 = vmul.f32 %v6250_v17, %v9280_v48  ;;  %v6349_v28 = vsel %vm6014_vm13, %v6283_v45, %v6276_v12 }
0x15cd   :  { %v6300_v9 = vadd.f32 %v6299_v14, %v6298_v10  ;;  %v6295_v0 = vadd.f32 %v6294_v6, %v6293_v2  ;;  %v6290_v21 = vadd.f32 %v6289_v42, %v6288_v1 }
0x15ce   :  { %v6305_v26 = vsel %vm1001_vm10, %v6267_v18, 0.0 }
0x15cf   :  { %v6306_v53 = vrot.slane %v6305_v26, 4  ;;  %v6255_v25 = vpop.permute.xlu1 %6254  ;;  %v6301_v20 = vrot.slane %v6300_v9, 2  ;;  %v6350_v13 = vsel %vm6016_vm14, %v6290_v21, %v6349_v28 }
0x15d0   :  { %v6268_v38 = vmul.f32 %v6255_v25, %v9287_v52  ;;  %v6296_v52 = vrot.slane %v6295_v0, 1 }
0x15d1   :  { %v6307_v58 = vadd.f32 %v6306_v53, %v6305_v26  ;;  %v6302_v62 = vadd.f32 %v6301_v20, %v6300_v9 }
0x15d2   :  { %v6312_v55 = vsel %vm1001_vm10, %v6268_v38, 0.0  ;;  %v6297_v23 = vadd.f32 %v6296_v52, %v6295_v0 }
0x15d3   :  { %v6308_v47 = vrot.slane %v6307_v58, 2  ;;  %v6313_v48 = vrot.slane %v6312_v55, 4  ;;  %v6260_v34 = vpop.permute.xlu1 %6259  ;;  %v6303_v49 = vrot.slane %v6302_v62, 1 }
0x15d4   :  { %v6269_v27 = vmul.f32 %v6260_v34, %v9294_v61  ;;  %v6351_v31 = vsel %vm6018_vm15, %v6297_v23, %v6350_v13 }
0x15d5   :  { %v6309_v59 = vadd.f32 %v6308_v47, %v6307_v58  ;;  %v6314_v3 = vadd.f32 %v6313_v48, %v6312_v55  ;;  %v6304_v61 = vadd.f32 %v6303_v49, %v6302_v62 }
0x15d6   :  { %v6319_v46 = vsel %vm1001_vm10, %v6269_v27, 0.0 }
0x15d7   :  { %v6315_v32 = vrot.slane %v6314_v3, 2  ;;  %v6320_v8 = vrot.slane %v6319_v46, 4  ;;  %v6310_v39 = vrot.slane %v6309_v59, 1  ;;  %v6352_v4 = vsel %vm6020_vm0, %v6304_v61, %v6351_v31 }
0x15d9   :  { %v6316_v37 = vadd.f32 %v6315_v32, %v6314_v3  ;;  %v6321_v44 = vadd.f32 %v6320_v8, %v6319_v46  ;;  %v6311_v19 = vadd.f32 %v6310_v39, %v6309_v59 }
0x15db   :  { %v6317_v60 = vrot.slane %v6316_v37, 1  ;;  %v6322_v29 = vrot.slane %v6321_v44, 2  ;;  %v6353_v15 = vsel %vm6022_vm1, %v6311_v19, %v6352_v4 }
0x15dd   :  { %v6323_v40 = vadd.f32 %v6322_v29, %v6321_v44  ;;  %v6318_v7 = vadd.f32 %v6317_v60, %v6316_v37 }
0x15df   :  { %v6324_v5 = vrot.slane %v6323_v40, 1  ;;  %v6354_v33 = vsel %vm6024_vm2, %v6318_v7, %v6353_v15 }
0x15e1   :  { %v6325_v35 = vadd.f32 %v6324_v5, %v6323_v40 }
0x15e3   :  { %v6355_v30 = vsel %vm6026_vm3, %v6325_v35, %v6354_v33 }
0x15e4   :  { %7249 = vmatmul.mubr.msk.f32.vlgmr.msra.gmra.mxu1 %vm1001_vm10, %v6355_v30 }
0x16a4   :  { %v6424_v24 = vpop.f32.mrf.mxu1 }
0x16a5   :  { %v6425_v16 = vadd.f32 %v6725_v11, %v6424_v24 }
0x16a6   :  { %v7250_v51 = vpop.f32.mrf.mxu1 }
0x16a7   :  { %6428 = vst [vmem:[#allocation9] sm:$0xff] %v6425_v16 }
0x16a8   :  { %7568 = shalt.err (!%p7565_p5)
}
0x16a9   :  { %6438 = dma.vmem_to_hbm [thread:$0]  %s6436_s6, 128, %s9445_s22, [#allocation5]  }
0x16aa   :  { %7581 = dma.done.wait [#allocation5], 128  }
0x16ab   :  { %7582 = vsyncadd [#allocation5], 4294967168 }
0x16ac   :  { %6442 = vsyncpa [#allocation4], 1 }
0x16ad   :  { %6443 = vsyncpa [#allocation7], 1 }
0x16ae   :  { %6444 = vsyncpa [#allocation5], 1 }

</bundles_post_ra>
